<compile_context>
chip_gen: v7x
topology: tpu7x:2x2x1
jax: 0.10.0
libtpu: 0.0.40
codegen_flags: <defaults>
</compile_context>

<pallas_src>
import jax
import jax.numpy as jnp
import numpy as np
from jax import lax
from jax.experimental import pallas as pl
from jax.experimental.pallas import tpu as pltpu

LOG2 = float(np.log(2.0))
LANE = 128  # lane width -- pad the feature axis to this for lane-dense tiles

# Set to jnp.bfloat16 for ~3-4x MXU throughput (accumulation stays f32 via
# preferred_element_type); loosen the test tolerances if you do.
MATMUL_DTYPE = jnp.float32


def _sp(z):
    return jax.nn.softplus(z)


def _mm(a, b):
    return jnp.dot(a.astype(MATMUL_DTYPE), b.astype(MATMUL_DTYPE),
                   preferred_element_type=jnp.float32)


def physnet_interaction_kernel(
    emb_ref,        # [M, Fp]  f32  stacked atoms of Bt molecules (M = Bt*A)
    fij_ref,        # [Pm, R]  f32  stacked pairs (Pm = Bt*P, R unpadded)
    idx_i_ref,      # [1, Pm]  i32  block-local receiving-atom index (scatter)
    idx_j_ref,      # [Pm, 1]  i32  block-local neighbor-atom index (gather)
    gT_ref,         # [R, Fp]  AttentionMask G, transposed
    wi_ref, bi_ref,      # [Fp, Fp], [1, Fp]  (bi has the -log2 shift folded in)
    wj_ref, bj_ref,      # [Fp, Fp], [1, Fp]  (bj has the -log2 shift folded in)
    rw1_ref, rb1_ref,    # [NR, Fp, Fp], [NR, 1, Fp]
    rw2_ref, rb2_ref,    # [NR, Fp, Fp], [NR, 1, Fp]
    wv_ref, bv_ref,      # [Fp, Fp], [1, Fp]
    out_ref,        # [M, Fp] f32
):
    f32 = jnp.float32
    M, Fp = emb_ref.shape
    Pm = fij_ref.shape[0]

    # ShiftedSoftplus(emb) = softplus(emb) - log2; the constant shift is
    # folded into bi/bj (a row-wise affine commutes with a constant shift),
    # so only the raw softplus runs here (EUP).
    s = _sp(emb_ref[...])                                          # [M, Fp]

    # interaction_i / interaction_j on the ATOM axis: the gather below
    # commutes with the per-row Linear + Softplus, so the F x F matmuls see
    # M stacked atom rows instead of Pm pair rows.
    x_i_prime = _sp(_mm(s, wi_ref[...]) + bi_ref[...])             # [M, Fp]
    y_j = _sp(_mm(s, wj_ref[...]) + bj_ref[...])                   # [M, Fp]

    # Gather y_j[idx_j] via one-hot matmul (MXU), block-local indices.
    iota_pm_m = lax.broadcasted_iota(jnp.int32, (Pm, M), 1)
    onehot_j = (idx_j_ref[...] == iota_pm_m).astype(f32)           # [Pm, M]
    x_j_prime = _mm(onehot_j, y_j)                                 # [Pm, Fp]

    # Attention mask: f_ij @ G^T (R unpadded; padded G^T columns are zero).
    f_ij_prime = _mm(fij_ref[...], gT_ref[...])                    # [Pm, Fp]
    x_j_mod = x_j_prime * f_ij_prime

    # scatter_add over idx_i: one-hot built directly in [M, Pm] orientation
    # (no transpose). For inputs containing padded/invalid pairs, set their
    # index to >= M (or zero their f_ij rows) so they cannot hit a real atom.
    iota_m_pm = lax.broadcasted_iota(jnp.int32, (M, Pm), 0)
    scatter = (idx_i_ref[...] == iota_m_pm).astype(f32)            # [M, Pm]
    summed = _mm(scatter, x_j_mod)                                 # [M, Fp]

    v = x_i_prime + summed

    # PhysNetResidual blocks: v + Linear2(softplus(Linear1(v))). NR is small
    # and static (3); switch to lax.fori_loop with dynamic rw1_ref[r] indexing
    # if it grows beyond a handful.
    n_res = rw1_ref.shape[0]
    for r in range(n_res):
        h = _sp(_mm(v, rw1_ref[r]) + rb1_ref[r])
        v = v + _mm(h, rw2_ref[r]) + rb2_ref[r]

    # process_v: Softplus then Linear.
    out_ref[...] = _mm(_sp(v), wv_ref[...]) + bv_ref[...]


def _round_up(x, m):
    return (x + m - 1) // m * m


def _pad_axis(a, axis, target):
    pad = target - a.shape[axis]
    if pad <= 0:
        return a
    widths = [(0, 0)] * a.ndim
    widths[axis] = (0, pad)
    return jnp.pad(a, widths)


def prepare_params(params, number_of_atom_features):
    """Pad weights to lane-dense shapes and fold the -log2 ShiftedSoftplus
    shift into effective first-layer biases. Call ONCE at model init."""
    F = number_of_atom_features
    Fp = _round_up(F, LANE)
    f32 = jnp.float32

    Wi = params["Wi"].astype(f32)
    Wj = params["Wj"].astype(f32)
    # (softplus(e) - log2) @ W + b  ==  softplus(e) @ W + (b - log2*sum(W, 0))
    bi_eff = params["bi"].astype(f32) - LOG2 * jnp.sum(Wi, axis=0, keepdims=True)
    bj_eff = params["bj"].astype(f32) - LOG2 * jnp.sum(Wj, axis=0, keepdims=True)

    pad2 = lambda w: _pad_axis(_pad_axis(w.astype(f32), 0, Fp), 1, Fp)
    padb = lambda b: _pad_axis(b.astype(f32), b.ndim - 1, Fp)

    return {
        "G_T": _pad_axis(params["G_T"].astype(f32), 1, Fp),        # [R, Fp]
        "Wi": pad2(Wi), "bi": padb(bi_eff),
        "Wj": pad2(Wj), "bj": padb(bj_eff),
        "rW1": _pad_axis(_pad_axis(params["rW1"].astype(f32), 1, Fp), 2, Fp),
        "rb1": padb(params["rb1"]),
        "rW2": _pad_axis(_pad_axis(params["rW2"].astype(f32), 1, Fp), 2, Fp),
        "rb2": padb(params["rb2"]),
        "Wv": pad2(params["Wv"]), "bv": padb(params["bv"]),
        "F": F, "Fp": Fp, "R": params["G_T"].shape[0],
    }


def physnet_interaction(emb, f_ij, idx_i, idx_j, prepared,
                        *, molecules_per_block=16):
    """Batched PhysNet interaction.

    emb:   [B, A, F] f32   per-molecule atomic embeddings
    f_ij:  [B, P, R] f32   per-molecule RBF-expanded pair distances
    idx_i: [B, P]    i32   receiving-atom index of each pair (per molecule)
    idx_j: [B, P]    i32   neighbor-atom index of each pair (per molecule)
    prepared: output of prepare_params() (padded weights, folded biases).
    """
    B, A, F = emb.shape
    P, R = f_ij.shape[1], f_ij.shape[2]
    assert F == prepared["F"] and R == prepared["R"]
    Fp = prepared["Fp"]
    NR = prepared["rW1"].shape[0]

    Bt = max(1, min(molecules_per_block, B))   # molecules per grid step
    NB = pl.cdiv(B, Bt)
    Bp = NB * Bt
    M = Bt * A          # stacked atom rows per grid step (MXU M dimension)
    Pm = Bt * P         # stacked pair rows per grid step

    f32, i32 = jnp.float32, jnp.int32

    # Pad the molecule axis so B is a multiple of Bt. Padded molecules are
    # self-contained (zero features, indices stay inside the padded molecule)
    # and their output rows are sliced off below.
    emb_p = _pad_axis(_pad_axis(emb.astype(f32), 2, Fp), 0, Bp)
    fij_p = _pad_axis(f_ij.astype(f32), 0, Bp)
    idx_i_p = _pad_axis(idx_i.astype(i32), 0, Bp)
    idx_j_p = _pad_axis(idx_j.astype(i32), 0, Bp)

    # Block-local flat atom index: molecule m (within its block) occupies
    # atom rows [m*A, (m+1)*A) of the stacked [M, Fp] tile.
    mol_off = ((jnp.arange(Bp, dtype=i32) % Bt) * A)[:, None]      # [Bp, 1]
    idx_i_k = (idx_i_p + mol_off).reshape(NB, 1, Pm)   # scatter orientation
    idx_j_k = (idx_j_p + mol_off).reshape(NB, Pm, 1)   # gather orientation

    emb_flat = emb_p.reshape(Bp * A, Fp)
    fij_flat = fij_p.reshape(Bp * P, R)

    blk = lambda g: (g, 0)
    blk3 = lambda g: (g, 0, 0)
    shared2 = lambda g: (0, 0)
    shared3 = lambda g: (0, 0, 0)

    # VMEM budget: per-block tiles + resident weights, double-buffered, plus
    # headroom for intermediates and compiler scratch. Stays well under the
    # 64 MiB per-TensorCore budget of v7x (and 128 MiB of v5e/v6e).
    def tile_bytes(r, c, itemsize=4):
        return _round_up(r, 8) * _round_up(c, LANE) * itemsize

    block_bytes = (tile_bytes(M, Fp) * 2                       # emb in + out
                   + tile_bytes(Pm, R)                         # f_ij
                   + tile_bytes(1, Pm) + tile_bytes(Pm, 1))    # idx tiles
    weight_bytes = (tile_bytes(R, Fp) + 3 * tile_bytes(Fp, Fp)
                    + 2 * NR * tile_bytes(Fp, Fp)
                    + (3 + 2 * NR) * tile_bytes(1, Fp))
    vmem_limit = int(2 * (block_bytes + weight_bytes) + 8 * 2**20)
    vmem_limit = min(vmem_limit, 48 * 2**20)

    grid_spec = pltpu.PrefetchScalarGridSpec(
        num_scalar_prefetch=0,
        grid=(NB,),
        in_specs=[
            pl.BlockSpec((M, Fp), blk),              # stacked embeddings
            pl.BlockSpec((Pm, R), blk),              # stacked f_ij (R unpadded)
            pl.BlockSpec((None, 1, Pm), blk3),       # idx_i (scatter)
            pl.BlockSpec((None, Pm, 1), blk3),       # idx_j (gather)
            # Grid-invariant weights: constant index_map keeps them resident.
            # NOTE: pipeline_mode=pl.Buffered(1) would halve their resident
            # VMEM; omitted for portability since the budget is comfortable.
            pl.BlockSpec((R, Fp), shared2),          # G^T
            pl.BlockSpec((Fp, Fp), shared2),         # Wi
            pl.BlockSpec((1, Fp), shared2),          # bi (shift folded in)
            pl.BlockSpec((Fp, Fp), shared2),         # Wj
            pl.BlockSpec((1, Fp), shared2),          # bj (shift folded in)
            pl.BlockSpec((NR, Fp, Fp), shared3),     # rW1
            pl.BlockSpec((NR, 1, Fp), shared3),      # rb1
            pl.BlockSpec((NR, Fp, Fp), shared3),     # rW2
            pl.BlockSpec((NR, 1, Fp), shared3),      # rb2
            pl.BlockSpec((Fp, Fp), shared2),         # Wv
            pl.BlockSpec((1, Fp), shared2),          # bv
        ],
        out_specs=pl.BlockSpec((M, Fp), blk),        # lane-dense output tile
    )

    fn = pl.pallas_call(
        physnet_interaction_kernel,
        out_shape=jax.ShapeDtypeStruct((Bp * A, Fp), f32),
        grid_spec=grid_spec,
        compiler_params=pltpu.CompilerParams(
            dimension_semantics=("parallel",),   # molecule blocks independent
            vmem_limit_bytes=vmem_limit,
        ),
    )
    out = fn(emb_flat, fij_flat, idx_i_k, idx_j_k,
             prepared["G_T"],
             prepared["Wi"], prepared["bi"],
             prepared["Wj"], prepared["bj"],
             prepared["rW1"], prepared["rb1"],
             prepared["rW2"], prepared["rb2"],
             prepared["Wv"], prepared["bv"])
    return out.reshape(Bp, A, Fp)[:B, :, :F]   # strip molecule & lane padding


def reference_forward_single(emb, f_ij, idx_i, idx_j, params):
    """Pure-JAX reference identical to the PyTorch module (one molecule)."""
    sp = jax.nn.softplus
    x = sp(emb) - LOG2
    x_j = x[idx_j]
    x_i_p = sp(x @ params["Wi"] + params["bi"][0])
    x_j_p = sp(x_j @ params["Wj"] + params["bj"][0])
    f_p = f_ij @ params["G_T"]
    mod = x_j_p * f_p
    summed = jax.ops.segment_sum(mod, idx_i, num_segments=emb.shape[0])
    v = x_i_p + summed
    for r in range(params["rW1"].shape[0]):
        h = sp(v @ params["rW1"][r] + params["rb1"][r, 0])
        h = h @ params["rW2"][r] + params["rb2"][r, 0]
        v = v + h
    return sp(v) @ params["Wv"] + params["bv"][0]


def make_params(key, F, R, n_res):
    ks = jax.random.split(key, 16)
    s = 0.1
    return {
        # AttentionMask G is [F, R] in torch; store transposed [R, F]
        "G_T": s * jax.random.normal(ks[0], (R, F), jnp.float32),
        "Wi": s * jax.random.normal(ks[1], (F, F), jnp.float32),
        "bi": s * jax.random.normal(ks[2], (1, F), jnp.float32),
        "Wj": s * jax.random.normal(ks[3], (F, F), jnp.float32),
        "bj": s * jax.random.normal(ks[4], (1, F), jnp.float32),
        "rW1": s * jax.random.normal(ks[5], (n_res, F, F), jnp.float32),
        "rb1": s * jax.random.normal(ks[6], (n_res, 1, F), jnp.float32),
        "rW2": s * jax.random.normal(ks[7], (n_res, F, F), jnp.float32),
        "rb2": s * jax.random.normal(ks[8], (n_res, 1, F), jnp.float32),
        "Wv": s * jax.random.normal(ks[9], (F, F), jnp.float32),
        "bv": s * jax.random.normal(ks[10], (1, F), jnp.float32),
    }
    # NOTE: GatingModule's parameter is unused in the PyTorch forward, so it
    # is intentionally omitted.


if __name__ == "__main__":
    F = 64          # number_of_atom_features
    R = 16          # number_of_radial_basis_functions
    N_RES = 3       # number_of_interaction_residual
    B = 32          # molecules
    A = 8           # atoms per molecule
    P = 16          # pairs per molecule
    BT = 16         # molecules per grid step -> M = 128 MXU rows, grid = (2,)

    key = jax.random.PRNGKey(0)
    k_emb, k_fij, k_i, k_j, k_par = jax.random.split(key, 5)

    emb = jax.random.normal(k_emb, (B, A, F), jnp.float32)
    f_ij = jax.random.normal(k_fij, (B, P, R), jnp.float32)
    idx_i = jax.random.randint(k_i, (B, P), 0, A, jnp.int32)
    idx_j = jax.random.randint(k_j, (B, P), 0, A, jnp.int32)
    params = make_params(k_par, F, R, N_RES)
    prepared = prepare_params(params, F)   # once at init: padding + bias fold

    out = physnet_interaction(emb, f_ij, idx_i, idx_j, prepared,
                              molecules_per_block=BT)
    out = jax.block_until_ready(out)

    ref = jax.vmap(
        lambda e, f, ii, ij: reference_forward_single(e, f, ii, ij, params)
    )(emb, f_ij, idx_i, idx_j)

    np.testing.assert_allclose(np.asarray(out), np.asarray(ref),
                               rtol=2e-5, atol=2e-5)
    print("KERNEL_OK")
</pallas_src>

<mosaic_0001>
module attributes {stable_mosaic.version = 11 : i64} {
  func.func @physnet_interaction_kernel(%arg0: i32, %arg1: memref<128x128xf32, #tpu.memory_space<vmem>>, %arg2: memref<256x16xf32, #tpu.memory_space<vmem>>, %arg3: memref<1x1x256xi32, #tpu.memory_space<vmem>>, %arg4: memref<1x256x1xi32, #tpu.memory_space<vmem>>, %arg5: memref<16x128xf32, #tpu.memory_space<vmem>>, %arg6: memref<128x128xf32, #tpu.memory_space<vmem>>, %arg7: memref<1x128xf32, #tpu.memory_space<vmem>>, %arg8: memref<128x128xf32, #tpu.memory_space<vmem>>, %arg9: memref<1x128xf32, #tpu.memory_space<vmem>>, %arg10: memref<3x128x128xf32, #tpu.memory_space<vmem>>, %arg11: memref<3x1x128xf32, #tpu.memory_space<vmem>>, %arg12: memref<3x128x128xf32, #tpu.memory_space<vmem>>, %arg13: memref<3x1x128xf32, #tpu.memory_space<vmem>>, %arg14: memref<128x128xf32, #tpu.memory_space<vmem>>, %arg15: memref<1x128xf32, #tpu.memory_space<vmem>>, %arg16: memref<128x128xf32, #tpu.memory_space<vmem>>) attributes {dimension_semantics = [#tpu.dimension_semantics<parallel>], iteration_bounds = array<i64: 2>, scalar_prefetch = 0 : i64, scratch_operands = 0 : i64, tpu.core_type = #tpu.core_type<tc>, window_params = [{transform_indices = @transform_0, window_bounds = array<i64: 128, 128>}, {transform_indices = @transform_1, window_bounds = array<i64: 256, 16>}, {transform_indices = @transform_2, window_bounds = array<i64: 1, 1, 256>}, {transform_indices = @transform_3, window_bounds = array<i64: 1, 256, 1>}, {pipeline_mode = #tpu.pipeline_mode<synchronous>, transform_indices = @transform_4, window_bounds = array<i64: 16, 128>}, {pipeline_mode = #tpu.pipeline_mode<synchronous>, transform_indices = @transform_5, window_bounds = array<i64: 128, 128>}, {pipeline_mode = #tpu.pipeline_mode<synchronous>, transform_indices = @transform_6, window_bounds = array<i64: 1, 128>}, {pipeline_mode = #tpu.pipeline_mode<synchronous>, transform_indices = @transform_7, window_bounds = array<i64: 128, 128>}, {pipeline_mode = #tpu.pipeline_mode<synchronous>, transform_indices = @transform_8, window_bounds = array<i64: 1, 128>}, {pipeline_mode = #tpu.pipeline_mode<synchronous>, transform_indices = @transform_9, window_bounds = array<i64: 3, 128, 128>}, {pipeline_mode = #tpu.pipeline_mode<synchronous>, transform_indices = @transform_10, window_bounds = array<i64: 3, 1, 128>}, {pipeline_mode = #tpu.pipeline_mode<synchronous>, transform_indices = @transform_11, window_bounds = array<i64: 3, 128, 128>}, {pipeline_mode = #tpu.pipeline_mode<synchronous>, transform_indices = @transform_12, window_bounds = array<i64: 3, 1, 128>}, {pipeline_mode = #tpu.pipeline_mode<synchronous>, transform_indices = @transform_13, window_bounds = array<i64: 128, 128>}, {pipeline_mode = #tpu.pipeline_mode<synchronous>, transform_indices = @transform_14, window_bounds = array<i64: 1, 128>}, {transform_indices = @transform_15, window_bounds = array<i64: 128, 128>}]} {
    %c0 = arith.constant 0 : index
    %c0_0 = arith.constant 0 : index
    %0 = vector.load %arg1[%c0, %c0_0] : memref<128x128xf32, #tpu.memory_space<vmem>>, vector<128x128xf32>
    %cst = arith.constant 0.000000e+00 : f32
    %1 = vector.broadcast %cst : f32 to vector<128x128xf32>
    %2 = arith.maximumf %0, %1 : vector<128x128xf32>
    %3 = vector.broadcast %cst : f32 to vector<128x128xf32>
    %4 = arith.subf %0, %3 : vector<128x128xf32>
    %5 = arith.cmpf one, %4, %4 : vector<128x128xf32>
    %6 = vector.broadcast %cst : f32 to vector<128x128xf32>
    %7 = arith.addf %0, %6 : vector<128x128xf32>
    %8 = math.absf %4 : vector<128x128xf32>
    %cst_1 = arith.constant 0.000000e+00 : f32
    %9 = vector.broadcast %cst_1 : f32 to vector<128x128xf32>
    %10 = arith.subf %9, %8 : vector<128x128xf32>
    %11 = math.exp %10 : vector<128x128xf32>
    %12 = math.log1p %11 : vector<128x128xf32>
    %13 = arith.addf %2, %12 : vector<128x128xf32>
    %14 = arith.select %5, %7, %13 : vector<128x128xi1>, vector<128x128xf32>
    %c0_2 = arith.constant 0 : index
    %c0_3 = arith.constant 0 : index
    %15 = vector.load %arg6[%c0_2, %c0_3] : memref<128x128xf32, #tpu.memory_space<vmem>>, vector<128x128xf32>
    %cst_4 = arith.constant dense<0.000000e+00> : vector<128x128xf32>
    %16 = tpu.matmul %14, %15, %cst_4 {dimension_numbers = #tpu.dot_dimension_numbers<[1], [0], [0], [1], [0, 0, 1, 1], [], []>} : vector<128x128xf32>, vector<128x128xf32>, vector<128x128xf32> -> vector<128x128xf32>
    %c0_5 = arith.constant 0 : index
    %c0_6 = arith.constant 0 : index
    %17 = vector.load %arg7[%c0_5, %c0_6] : memref<1x128xf32, #tpu.memory_space<vmem>>, vector<1x128xf32>
    %18 = vector.broadcast %17 : vector<1x128xf32> to vector<128x128xf32>
    %19 = arith.addf %16, %18 : vector<128x128xf32>
    %cst_7 = arith.constant 0.000000e+00 : f32
    %20 = vector.broadcast %cst_7 : f32 to vector<128x128xf32>
    %21 = arith.maximumf %19, %20 : vector<128x128xf32>
    %22 = vector.broadcast %cst_7 : f32 to vector<128x128xf32>
    %23 = arith.subf %19, %22 : vector<128x128xf32>
    %24 = arith.cmpf one, %23, %23 : vector<128x128xf32>
    %25 = vector.broadcast %cst_7 : f32 to vector<128x128xf32>
    %26 = arith.addf %19, %25 : vector<128x128xf32>
    %27 = math.absf %23 : vector<128x128xf32>
    %cst_8 = arith.constant 0.000000e+00 : f32
    %28 = vector.broadcast %cst_8 : f32 to vector<128x128xf32>
    %29 = arith.subf %28, %27 : vector<128x128xf32>
    %30 = math.exp %29 : vector<128x128xf32>
    %31 = math.log1p %30 : vector<128x128xf32>
    %32 = arith.addf %21, %31 : vector<128x128xf32>
    %33 = arith.select %24, %26, %32 : vector<128x128xi1>, vector<128x128xf32>
    %c0_9 = arith.constant 0 : index
    %c0_10 = arith.constant 0 : index
    %34 = vector.load %arg8[%c0_9, %c0_10] : memref<128x128xf32, #tpu.memory_space<vmem>>, vector<128x128xf32>
    %cst_11 = arith.constant dense<0.000000e+00> : vector<128x128xf32>
    %35 = tpu.matmul %14, %34, %cst_11 {dimension_numbers = #tpu.dot_dimension_numbers<[1], [0], [0], [1], [0, 0, 1, 1], [], []>} : vector<128x128xf32>, vector<128x128xf32>, vector<128x128xf32> -> vector<128x128xf32>
    %c0_12 = arith.constant 0 : index
    %c0_13 = arith.constant 0 : index
    %36 = vector.load %arg9[%c0_12, %c0_13] : memref<1x128xf32, #tpu.memory_space<vmem>>, vector<1x128xf32>
    %37 = vector.broadcast %36 : vector<1x128xf32> to vector<128x128xf32>
    %38 = arith.addf %35, %37 : vector<128x128xf32>
    %cst_14 = arith.constant 0.000000e+00 : f32
    %39 = vector.broadcast %cst_14 : f32 to vector<128x128xf32>
    %40 = arith.maximumf %38, %39 : vector<128x128xf32>
    %41 = vector.broadcast %cst_14 : f32 to vector<128x128xf32>
    %42 = arith.subf %38, %41 : vector<128x128xf32>
    %43 = arith.cmpf one, %42, %42 : vector<128x128xf32>
    %44 = vector.broadcast %cst_14 : f32 to vector<128x128xf32>
    %45 = arith.addf %38, %44 : vector<128x128xf32>
    %46 = math.absf %42 : vector<128x128xf32>
    %cst_15 = arith.constant 0.000000e+00 : f32
    %47 = vector.broadcast %cst_15 : f32 to vector<128x128xf32>
    %48 = arith.subf %47, %46 : vector<128x128xf32>
    %49 = math.exp %48 : vector<128x128xf32>
    %50 = math.log1p %49 : vector<128x128xf32>
    %51 = arith.addf %40, %50 : vector<128x128xf32>
    %52 = arith.select %43, %45, %51 : vector<128x128xi1>, vector<128x128xf32>
    %53 = tpu.iota {dimensions = array<i32: 1>} : vector<256x128xi32>
    %c0_16 = arith.constant 0 : index
    %c0_17 = arith.constant 0 : index
    %c0_18 = arith.constant 0 : index
    %54 = vector.load %arg4[%c0_16, %c0_17, %c0_18] : memref<1x256x1xi32, #tpu.memory_space<vmem>>, vector<1x256x1xi32>
    %55 = vector.shape_cast %54 : vector<1x256x1xi32> to vector<256x1xi32>
    %56 = vector.broadcast %55 : vector<256x1xi32> to vector<256x128xi32>
    %57 = arith.cmpi eq, %56, %53 : vector<256x128xi32>
    %58 = arith.extui %57 : vector<256x128xi1> to vector<256x128xi32>
    %59 = arith.sitofp %58 : vector<256x128xi32> to vector<256x128xf32>
    %cst_19 = arith.constant dense<0.000000e+00> : vector<256x128xf32>
    %60 = tpu.matmul %59, %52, %cst_19 {dimension_numbers = #tpu.dot_dimension_numbers<[1], [0], [0], [1], [0, 0, 1, 1], [], []>} : vector<256x128xf32>, vector<128x128xf32>, vector<256x128xf32> -> vector<256x128xf32>
    %c0_20 = arith.constant 0 : index
    %c0_21 = arith.constant 0 : index
    %61 = vector.load %arg2[%c0_20, %c0_21] : memref<256x16xf32, #tpu.memory_space<vmem>>, vector<256x16xf32>
    %c0_22 = arith.constant 0 : index
    %c0_23 = arith.constant 0 : index
    %62 = vector.load %arg5[%c0_22, %c0_23] : memref<16x128xf32, #tpu.memory_space<vmem>>, vector<16x128xf32>
    %cst_24 = arith.constant dense<0.000000e+00> : vector<256x128xf32>
    %63 = tpu.matmul %61, %62, %cst_24 {dimension_numbers = #tpu.dot_dimension_numbers<[1], [0], [0], [1], [0, 0, 1, 1], [], []>} : vector<256x16xf32>, vector<16x128xf32>, vector<256x128xf32> -> vector<256x128xf32>
    %64 = arith.mulf %60, %63 : vector<256x128xf32>
    %65 = tpu.iota {dimensions = array<i32: 0>} : vector<128x256xi32>
    %c0_25 = arith.constant 0 : index
    %c0_26 = arith.constant 0 : index
    %c0_27 = arith.constant 0 : index
    %66 = vector.load %arg3[%c0_25, %c0_26, %c0_27] : memref<1x1x256xi32, #tpu.memory_space<vmem>>, vector<1x1x256xi32>
    %67 = vector.shape_cast %66 : vector<1x1x256xi32> to vector<1x256xi32>
    %68 = vector.broadcast %67 : vector<1x256xi32> to vector<128x256xi32>
    %69 = arith.cmpi eq, %68, %65 : vector<128x256xi32>
    %70 = arith.extui %69 : vector<128x256xi1> to vector<128x256xi32>
    %71 = arith.sitofp %70 : vector<128x256xi32> to vector<128x256xf32>
    %cst_28 = arith.constant dense<0.000000e+00> : vector<128x128xf32>
    %72 = tpu.matmul %71, %64, %cst_28 {dimension_numbers = #tpu.dot_dimension_numbers<[1], [0], [0], [1], [0, 0, 1, 1], [], []>} : vector<128x256xf32>, vector<256x128xf32>, vector<128x128xf32> -> vector<128x128xf32>
    %73 = arith.addf %33, %72 : vector<128x128xf32>
    %c0_29 = arith.constant 0 : index
    %c0_30 = arith.constant 0 : index
    %c0_31 = arith.constant 0 : index
    %74 = vector.load %arg10[%c0_29, %c0_30, %c0_31] : memref<3x128x128xf32, #tpu.memory_space<vmem>>, vector<1x128x128xf32>
    %75 = vector.shape_cast %74 : vector<1x128x128xf32> to vector<128x128xf32>
    %cst_32 = arith.constant dense<0.000000e+00> : vector<128x128xf32>
    %76 = tpu.matmul %73, %75, %cst_32 {dimension_numbers = #tpu.dot_dimension_numbers<[1], [0], [0], [1], [0, 0, 1, 1], [], []>} : vector<128x128xf32>, vector<128x128xf32>, vector<128x128xf32> -> vector<128x128xf32>
    %c0_33 = arith.constant 0 : index
    %c0_34 = arith.constant 0 : index
    %c0_35 = arith.constant 0 : index
    %77 = vector.load %arg11[%c0_33, %c0_34, %c0_35] : memref<3x1x128xf32, #tpu.memory_space<vmem>>, vector<1x1x128xf32>
    %78 = vector.shape_cast %77 : vector<1x1x128xf32> to vector<1x128xf32>
    %79 = vector.broadcast %78 : vector<1x128xf32> to vector<128x128xf32>
    %80 = arith.addf %76, %79 : vector<128x128xf32>
    %cst_36 = arith.constant 0.000000e+00 : f32
    %81 = vector.broadcast %cst_36 : f32 to vector<128x128xf32>
    %82 = arith.maximumf %80, %81 : vector<128x128xf32>
    %83 = vector.broadcast %cst_36 : f32 to vector<128x128xf32>
    %84 = arith.subf %80, %83 : vector<128x128xf32>
    %85 = arith.cmpf one, %84, %84 : vector<128x128xf32>
    %86 = vector.broadcast %cst_36 : f32 to vector<128x128xf32>
    %87 = arith.addf %80, %86 : vector<128x128xf32>
    %88 = math.absf %84 : vector<128x128xf32>
    %cst_37 = arith.constant 0.000000e+00 : f32
    %89 = vector.broadcast %cst_37 : f32 to vector<128x128xf32>
    %90 = arith.subf %89, %88 : vector<128x128xf32>
    %91 = math.exp %90 : vector<128x128xf32>
    %92 = math.log1p %91 : vector<128x128xf32>
    %93 = arith.addf %82, %92 : vector<128x128xf32>
    %94 = arith.select %85, %87, %93 : vector<128x128xi1>, vector<128x128xf32>
    %c0_38 = arith.constant 0 : index
    %c0_39 = arith.constant 0 : index
    %c0_40 = arith.constant 0 : index
    %95 = vector.load %arg12[%c0_38, %c0_39, %c0_40] : memref<3x128x128xf32, #tpu.memory_space<vmem>>, vector<1x128x128xf32>
    %96 = vector.shape_cast %95 : vector<1x128x128xf32> to vector<128x128xf32>
    %cst_41 = arith.constant dense<0.000000e+00> : vector<128x128xf32>
    %97 = tpu.matmul %94, %96, %cst_41 {dimension_numbers = #tpu.dot_dimension_numbers<[1], [0], [0], [1], [0, 0, 1, 1], [], []>} : vector<128x128xf32>, vector<128x128xf32>, vector<128x128xf32> -> vector<128x128xf32>
    %98 = arith.addf %73, %97 : vector<128x128xf32>
    %c0_42 = arith.constant 0 : index
    %c0_43 = arith.constant 0 : index
    %c0_44 = arith.constant 0 : index
    %99 = vector.load %arg13[%c0_42, %c0_43, %c0_44] : memref<3x1x128xf32, #tpu.memory_space<vmem>>, vector<1x1x128xf32>
    %100 = vector.shape_cast %99 : vector<1x1x128xf32> to vector<1x128xf32>
    %101 = vector.broadcast %100 : vector<1x128xf32> to vector<128x128xf32>
    %102 = arith.addf %98, %101 : vector<128x128xf32>
    %c1 = arith.constant 1 : index
    %c0_45 = arith.constant 0 : index
    %c0_46 = arith.constant 0 : index
    %103 = vector.load %arg10[%c1, %c0_45, %c0_46] : memref<3x128x128xf32, #tpu.memory_space<vmem>>, vector<1x128x128xf32>
    %104 = vector.shape_cast %103 : vector<1x128x128xf32> to vector<128x128xf32>
    %cst_47 = arith.constant dense<0.000000e+00> : vector<128x128xf32>
    %105 = tpu.matmul %102, %104, %cst_47 {dimension_numbers = #tpu.dot_dimension_numbers<[1], [0], [0], [1], [0, 0, 1, 1], [], []>} : vector<128x128xf32>, vector<128x128xf32>, vector<128x128xf32> -> vector<128x128xf32>
    %c1_48 = arith.constant 1 : index
    %c0_49 = arith.constant 0 : index
    %c0_50 = arith.constant 0 : index
    %106 = vector.load %arg11[%c1_48, %c0_49, %c0_50] : memref<3x1x128xf32, #tpu.memory_space<vmem>>, vector<1x1x128xf32>
    %107 = vector.shape_cast %106 : vector<1x1x128xf32> to vector<1x128xf32>
    %108 = vector.broadcast %107 : vector<1x128xf32> to vector<128x128xf32>
    %109 = arith.addf %105, %108 : vector<128x128xf32>
    %cst_51 = arith.constant 0.000000e+00 : f32
    %110 = vector.broadcast %cst_51 : f32 to vector<128x128xf32>
    %111 = arith.maximumf %109, %110 : vector<128x128xf32>
    %112 = vector.broadcast %cst_51 : f32 to vector<128x128xf32>
    %113 = arith.subf %109, %112 : vector<128x128xf32>
    %114 = arith.cmpf one, %113, %113 : vector<128x128xf32>
    %115 = vector.broadcast %cst_51 : f32 to vector<128x128xf32>
    %116 = arith.addf %109, %115 : vector<128x128xf32>
    %117 = math.absf %113 : vector<128x128xf32>
    %cst_52 = arith.constant 0.000000e+00 : f32
    %118 = vector.broadcast %cst_52 : f32 to vector<128x128xf32>
    %119 = arith.subf %118, %117 : vector<128x128xf32>
    %120 = math.exp %119 : vector<128x128xf32>
    %121 = math.log1p %120 : vector<128x128xf32>
    %122 = arith.addf %111, %121 : vector<128x128xf32>
    %123 = arith.select %114, %116, %122 : vector<128x128xi1>, vector<128x128xf32>
    %c1_53 = arith.constant 1 : index
    %c0_54 = arith.constant 0 : index
    %c0_55 = arith.constant 0 : index
    %124 = vector.load %arg12[%c1_53, %c0_54, %c0_55] : memref<3x128x128xf32, #tpu.memory_space<vmem>>, vector<1x128x128xf32>
    %125 = vector.shape_cast %124 : vector<1x128x128xf32> to vector<128x128xf32>
    %cst_56 = arith.constant dense<0.000000e+00> : vector<128x128xf32>
    %126 = tpu.matmul %123, %125, %cst_56 {dimension_numbers = #tpu.dot_dimension_numbers<[1], [0], [0], [1], [0, 0, 1, 1], [], []>} : vector<128x128xf32>, vector<128x128xf32>, vector<128x128xf32> -> vector<128x128xf32>
    %127 = arith.addf %102, %126 : vector<128x128xf32>
    %c1_57 = arith.constant 1 : index
    %c0_58 = arith.constant 0 : index
    %c0_59 = arith.constant 0 : index
    %128 = vector.load %arg13[%c1_57, %c0_58, %c0_59] : memref<3x1x128xf32, #tpu.memory_space<vmem>>, vector<1x1x128xf32>
    %129 = vector.shape_cast %128 : vector<1x1x128xf32> to vector<1x128xf32>
    %130 = vector.broadcast %129 : vector<1x128xf32> to vector<128x128xf32>
    %131 = arith.addf %127, %130 : vector<128x128xf32>
    %c2 = arith.constant 2 : index
    %c0_60 = arith.constant 0 : index
    %c0_61 = arith.constant 0 : index
    %132 = vector.load %arg10[%c2, %c0_60, %c0_61] : memref<3x128x128xf32, #tpu.memory_space<vmem>>, vector<1x128x128xf32>
    %133 = vector.shape_cast %132 : vector<1x128x128xf32> to vector<128x128xf32>
    %cst_62 = arith.constant dense<0.000000e+00> : vector<128x128xf32>
    %134 = tpu.matmul %131, %133, %cst_62 {dimension_numbers = #tpu.dot_dimension_numbers<[1], [0], [0], [1], [0, 0, 1, 1], [], []>} : vector<128x128xf32>, vector<128x128xf32>, vector<128x128xf32> -> vector<128x128xf32>
    %c2_63 = arith.constant 2 : index
    %c0_64 = arith.constant 0 : index
    %c0_65 = arith.constant 0 : index
    %135 = vector.load %arg11[%c2_63, %c0_64, %c0_65] : memref<3x1x128xf32, #tpu.memory_space<vmem>>, vector<1x1x128xf32>
    %136 = vector.shape_cast %135 : vector<1x1x128xf32> to vector<1x128xf32>
    %137 = vector.broadcast %136 : vector<1x128xf32> to vector<128x128xf32>
    %138 = arith.addf %134, %137 : vector<128x128xf32>
    %cst_66 = arith.constant 0.000000e+00 : f32
    %139 = vector.broadcast %cst_66 : f32 to vector<128x128xf32>
    %140 = arith.maximumf %138, %139 : vector<128x128xf32>
    %141 = vector.broadcast %cst_66 : f32 to vector<128x128xf32>
    %142 = arith.subf %138, %141 : vector<128x128xf32>
    %143 = arith.cmpf one, %142, %142 : vector<128x128xf32>
    %144 = vector.broadcast %cst_66 : f32 to vector<128x128xf32>
    %145 = arith.addf %138, %144 : vector<128x128xf32>
    %146 = math.absf %142 : vector<128x128xf32>
    %cst_67 = arith.constant 0.000000e+00 : f32
    %147 = vector.broadcast %cst_67 : f32 to vector<128x128xf32>
    %148 = arith.subf %147, %146 : vector<128x128xf32>
    %149 = math.exp %148 : vector<128x128xf32>
    %150 = math.log1p %149 : vector<128x128xf32>
    %151 = arith.addf %140, %150 : vector<128x128xf32>
    %152 = arith.select %143, %145, %151 : vector<128x128xi1>, vector<128x128xf32>
    %c2_68 = arith.constant 2 : index
    %c0_69 = arith.constant 0 : index
    %c0_70 = arith.constant 0 : index
    %153 = vector.load %arg12[%c2_68, %c0_69, %c0_70] : memref<3x128x128xf32, #tpu.memory_space<vmem>>, vector<1x128x128xf32>
    %154 = vector.shape_cast %153 : vector<1x128x128xf32> to vector<128x128xf32>
    %cst_71 = arith.constant dense<0.000000e+00> : vector<128x128xf32>
    %155 = tpu.matmul %152, %154, %cst_71 {dimension_numbers = #tpu.dot_dimension_numbers<[1], [0], [0], [1], [0, 0, 1, 1], [], []>} : vector<128x128xf32>, vector<128x128xf32>, vector<128x128xf32> -> vector<128x128xf32>
    %156 = arith.addf %131, %155 : vector<128x128xf32>
    %c2_72 = arith.constant 2 : index
    %c0_73 = arith.constant 0 : index
    %c0_74 = arith.constant 0 : index
    %157 = vector.load %arg13[%c2_72, %c0_73, %c0_74] : memref<3x1x128xf32, #tpu.memory_space<vmem>>, vector<1x1x128xf32>
    %158 = vector.shape_cast %157 : vector<1x1x128xf32> to vector<1x128xf32>
    %159 = vector.broadcast %158 : vector<1x128xf32> to vector<128x128xf32>
    %160 = arith.addf %156, %159 : vector<128x128xf32>
    %cst_75 = arith.constant 0.000000e+00 : f32
    %161 = vector.broadcast %cst_75 : f32 to vector<128x128xf32>
    %162 = arith.maximumf %160, %161 : vector<128x128xf32>
    %163 = vector.broadcast %cst_75 : f32 to vector<128x128xf32>
    %164 = arith.subf %160, %163 : vector<128x128xf32>
    %165 = arith.cmpf one, %164, %164 : vector<128x128xf32>
    %166 = vector.broadcast %cst_75 : f32 to vector<128x128xf32>
    %167 = arith.addf %160, %166 : vector<128x128xf32>
    %168 = math.absf %164 : vector<128x128xf32>
    %cst_76 = arith.constant 0.000000e+00 : f32
    %169 = vector.broadcast %cst_76 : f32 to vector<128x128xf32>
    %170 = arith.subf %169, %168 : vector<128x128xf32>
    %171 = math.exp %170 : vector<128x128xf32>
    %172 = math.log1p %171 : vector<128x128xf32>
    %173 = arith.addf %162, %172 : vector<128x128xf32>
    %174 = arith.select %165, %167, %173 : vector<128x128xi1>, vector<128x128xf32>
    %c0_77 = arith.constant 0 : index
    %c0_78 = arith.constant 0 : index
    %175 = vector.load %arg14[%c0_77, %c0_78] : memref<128x128xf32, #tpu.memory_space<vmem>>, vector<128x128xf32>
    %cst_79 = arith.constant dense<0.000000e+00> : vector<128x128xf32>
    %176 = tpu.matmul %174, %175, %cst_79 {dimension_numbers = #tpu.dot_dimension_numbers<[1], [0], [0], [1], [0, 0, 1, 1], [], []>} : vector<128x128xf32>, vector<128x128xf32>, vector<128x128xf32> -> vector<128x128xf32>
    %c0_80 = arith.constant 0 : index
    %c0_81 = arith.constant 0 : index
    %177 = vector.load %arg15[%c0_80, %c0_81] : memref<1x128xf32, #tpu.memory_space<vmem>>, vector<1x128xf32>
    %178 = vector.broadcast %177 : vector<1x128xf32> to vector<128x128xf32>
    %179 = arith.addf %176, %178 : vector<128x128xf32>
    %c0_82 = arith.constant 0 : index
    %c0_83 = arith.constant 0 : index
    %180 = vector.load %arg16[%c0_82, %c0_83] : memref<128x128xf32, #tpu.memory_space<vmem>>, vector<128x128xf32>
    tpu.vector_store %arg16[%c0_82, %c0_83], %179 {strides = array<i32>} : memref<128x128xf32, #tpu.memory_space<vmem>>, vector<128x128xf32>,
    return
  }
  func.func @transform_0(%arg0: i32) -> (i32, i32) {
    %c0_i32 = arith.constant 0 : i32
    %c0_i32_0 = arith.constant 0 : i32
    return %arg0, %c0_i32 : i32, i32
  }
  func.func @transform_1(%arg0: i32) -> (i32, i32) {
    %c0_i32 = arith.constant 0 : i32
    %c0_i32_0 = arith.constant 0 : i32
    return %arg0, %c0_i32 : i32, i32
  }
  func.func @transform_2(%arg0: i32) -> (i32, i32, i32) {
    %c0_i32 = arith.constant 0 : i32
    %c0_i32_0 = arith.constant 0 : i32
    %c0_i32_1 = arith.constant 0 : i32
    return %arg0, %c0_i32, %c0_i32_0 : i32, i32, i32
  }
  func.func @transform_3(%arg0: i32) -> (i32, i32, i32) {
    %c0_i32 = arith.constant 0 : i32
    %c0_i32_0 = arith.constant 0 : i32
    %c0_i32_1 = arith.constant 0 : i32
    return %arg0, %c0_i32, %c0_i32_0 : i32, i32, i32
  }
  func.func @transform_4(%arg0: i32) -> (i32, i32) {
    %c0_i32 = arith.constant 0 : i32
    %c0_i32_0 = arith.constant 0 : i32
    %c0_i32_1 = arith.constant 0 : i32
    return %c0_i32, %c0_i32_0 : i32, i32
  }
  func.func @transform_5(%arg0: i32) -> (i32, i32) {
    %c0_i32 = arith.constant 0 : i32
    %c0_i32_0 = arith.constant 0 : i32
    %c0_i32_1 = arith.constant 0 : i32
    return %c0_i32, %c0_i32_0 : i32, i32
  }
  func.func @transform_6(%arg0: i32) -> (i32, i32) {
    %c0_i32 = arith.constant 0 : i32
    %c0_i32_0 = arith.constant 0 : i32
    %c0_i32_1 = arith.constant 0 : i32
    return %c0_i32, %c0_i32_0 : i32, i32
  }
  func.func @transform_7(%arg0: i32) -> (i32, i32) {
    %c0_i32 = arith.constant 0 : i32
    %c0_i32_0 = arith.constant 0 : i32
    %c0_i32_1 = arith.constant 0 : i32
    return %c0_i32, %c0_i32_0 : i32, i32
  }
  func.func @transform_8(%arg0: i32) -> (i32, i32) {
    %c0_i32 = arith.constant 0 : i32
    %c0_i32_0 = arith.constant 0 : i32
    %c0_i32_1 = arith.constant 0 : i32
    return %c0_i32, %c0_i32_0 : i32, i32
  }
  func.func @transform_9(%arg0: i32) -> (i32, i32, i32) {
    %c0_i32 = arith.constant 0 : i32
    %c0_i32_0 = arith.constant 0 : i32
    %c0_i32_1 = arith.constant 0 : i32
    %c0_i32_2 = arith.constant 0 : i32
    return %c0_i32, %c0_i32_0, %c0_i32_1 : i32, i32, i32
  }
  func.func @transform_10(%arg0: i32) -> (i32, i32, i32) {
    %c0_i32 = arith.constant 0 : i32
    %c0_i32_0 = arith.constant 0 : i32
    %c0_i32_1 = arith.constant 0 : i32
    %c0_i32_2 = arith.constant 0 : i32
    return %c0_i32, %c0_i32_0, %c0_i32_1 : i32, i32, i32
  }
  func.func @transform_11(%arg0: i32) -> (i32, i32, i32) {
    %c0_i32 = arith.constant 0 : i32
    %c0_i32_0 = arith.constant 0 : i32
    %c0_i32_1 = arith.constant 0 : i32
    %c0_i32_2 = arith.constant 0 : i32
    return %c0_i32, %c0_i32_0, %c0_i32_1 : i32, i32, i32
  }
  func.func @transform_12(%arg0: i32) -> (i32, i32, i32) {
    %c0_i32 = arith.constant 0 : i32
    %c0_i32_0 = arith.constant 0 : i32
    %c0_i32_1 = arith.constant 0 : i32
    %c0_i32_2 = arith.constant 0 : i32
    return %c0_i32, %c0_i32_0, %c0_i32_1 : i32, i32, i32
  }
  func.func @transform_13(%arg0: i32) -> (i32, i32) {
    %c0_i32 = arith.constant 0 : i32
    %c0_i32_0 = arith.constant 0 : i32
    %c0_i32_1 = arith.constant 0 : i32
    return %c0_i32, %c0_i32_0 : i32, i32
  }
  func.func @transform_14(%arg0: i32) -> (i32, i32) {
    %c0_i32 = arith.constant 0 : i32
    %c0_i32_0 = arith.constant 0 : i32
    %c0_i32_1 = arith.constant 0 : i32
    return %c0_i32, %c0_i32_0 : i32, i32
  }
  func.func @transform_15(%arg0: i32) -> (i32, i32) {
    %c0_i32 = arith.constant 0 : i32
    %c0_i32_0 = arith.constant 0 : i32
    return %arg0, %c0_i32 : i32, i32
  }
}

</mosaic_0001>

<bundles_post_ra>
// kernel: tpu_custom_call.1
= control target key start
LH: loop header
LB: loop body
LE: loop exit
PB: predicated region body
PF: predicated region fallthrough
CT: control target
= control target key end

     0   :  { %s11356_s0 = inlined_call_operand.vmem [shape: f32[256,128], index: 0, kind: input, shape index: {}]   ;;  %s11357_s1 = inlined_call_operand.vmem [shape: f32[512,16], index: 1, kind: input, shape index: {}]   ;;  %s11358_s2 = inlined_call_operand.vmem [shape: s32[2,1,256], index: 2, kind: input, shape index: {}]   ;;  %s11359_s3 = inlined_call_operand.vmem [shape: s32[2,256,1], index: 3, kind: input, shape index: {}]   ;;  %s11360_s4 = inlined_call_operand.vmem [shape: f32[16,128], index: 4, kind: input, shape index: {}]   ;;  %s11361_s5 = inlined_call_operand.hbm [shape: f32[128,128], index: 5, kind: input, shape index: {}]   ;;  %s11362_s6 = inlined_call_operand.vmem [shape: f32[1,128], index: 6, kind: input, shape index: {}]   ;;  %s11363_s7 = inlined_call_operand.hbm [shape: f32[128,128], index: 7, kind: input, shape index: {}]   ;;  %s11364_s8 = inlined_call_operand.vmem [shape: f32[1,128], index: 8, kind: input, shape index: {}]   ;;  %s11365_s9 = inlined_call_operand.vmem [shape: f32[3,128,128], index: 9, kind: input, shape index: {}]   ;;  %s11366_s10 = inlined_call_operand.vmem [shape: f32[3,1,128], index: 10, kind: input, shape index: {}]   ;;  %s11367_s11 = inlined_call_operand.vmem [shape: f32[3,128,128], index: 11, kind: input, shape index: {}]   ;;  %s11368_s12 = inlined_call_operand.vmem [shape: f32[3,1,128], index: 12, kind: input, shape index: {}]   ;;  %s11369_s13 = inlined_call_operand.hbm [shape: f32[128,128], index: 13, kind: input, shape index: {}]   ;;  %s11370_s14 = inlined_call_operand.vmem [shape: f32[1,128], index: 14, kind: input, shape index: {}]   ;;  %s11371_s15 = inlined_call_operand.hbm [shape: f32[256,128], index: 15, kind: output, shape index: {}]  }
   0x1   :  { %11393 = sst [smem:[#allocation38_spill]] %s11368_s12 }
   0x2   :  { %11394 = sst [smem:[#allocation39_spill]] %s11370_s14 }
   0x3   :  { %11395 = sst [smem:[#allocation40_spill]] %s11371_s15 }
   0x4   :  { %20 = vsyncpa [#allocation3], 0 }
   0x5   :  { %21 = vsyncpa [#allocation6], 0 }
   0x6   :  { %22 = vsyncpa [#allocation4], 0 }
   0x7   :  { %24 = vsyncpa [#allocation4 + $0x1], 0  ;;  %s8020_s18 = smov 0   ;;  %s8022_s19 = smov 0  }
   0x8   :  { %s8024_s20 = smov 0   ;;  %s8026_s21 = smov 0  }
   0x9 LB: > { %11396 = sst [smem:[#allocation12_spill]] %s7916_s18  ;;  %s8041_s22 = sadd.s32 4294967295, %s7928_s21   ;;  %s7928_s21 = sphi %s8026_s21, %s11579_s21   ;;  %s7924_s20 = sphi %s8024_s20, %s11582_s20   ;;  %s7920_s19 = sphi %s8022_s19, %s11581_s19   ;;  %s7916_s18 = sphi %s8020_s18, %s11580_s18  }
   0xa   : > { %11397 = sst [smem:[#allocation13_spill]] %s7920_s19  ;;  %s5528_s23 = sadd.s32 4294967294, %s7928_s21  }
   0xb   : > { %11398 = sst [smem:[#allocation14_spill]] %s7924_s20  ;;  %s8045_s24 = sadd.s32 1, %s7928_s21  }
   0xc   : > { %11399 = sst [smem:[#allocation15_spill]] %s7928_s21  ;;  %s372_s25 = sadd.s32 1, %s7924_s20 }
   0xd   : > { %11400 = sst [smem:[#allocation16_spill]] %s8045_s24  ;;  %s369_s26 = ssub.s32 %s7928_s21, %s8045_s24 }
   0xe   : > { %p382_p0 = scmp.ne.s32.totalorder %s7924_s20, %s7920_s19  ;;  %p370_p1 = scmp.eq.s32.totalorder %s369_s26, 0 }
   0xf   : > { %p383_p2 = scmp.eq.s32.totalorder %s8041_s22, 1  ;;  %p388_p3 = scmp.ne.s32.totalorder %s7920_s19, %s7916_s18 }
  0x10   : > { %p389_p4 = scmp.eq.s32.totalorder %s5528_s23, 1  ;;  %p5529_p7 = scmp.ge.s32.totalorder %s7928_s21, 1 }
  0x11   : > { %s8056_s27 = scalar_select %p370_p1, %s7924_s20, %s372_s25  }
  0x12   : > { %p8058_p5 = por %p383_p2, %p382_p0  ;;  %p8062_p6 = por %p389_p4, %p388_p3 }
  0x13   : > { %11401 = sst [smem:[#allocation17_spill]] %s8056_s27  ;;  %p396_p8 = scmp.lt.s32.totalorder %s7928_s21, 3 }
  0x14   : > { %s11402_s28 = scalar_select %p8058_p5, 1, 0 }
  0x15   : > { %s11404_s29 = scalar_select %p8062_p6, 1, 0 }
  0x16   : > { %11403 = sst [smem:[#allocation18_spill]] %s11402_s28  ;;  %p11379_p9 = scmp.eq.s32.totalorder %s8041_s22, 0 }
  0x17   : > { %11405 = sst [smem:[#allocation19_spill]] %s11404_s29  ;;  %p8069_p10 = pnand %p5529_p7, %p396_p8 }
  0x18   : > { %s7930_s16 = smov [#allocation5]   ;;  %s7931_s25 = smov [#allocation2]  }
  0x19   : > { %s11406_s30 = scalar_select %p8069_p10, 1, 0 }
  0x1a   : > { %p7262_p11 = pneg %p8069_p10  ;;  %s427_s17 = sshll.u32 %s7930_s16, 4  ;;  %s8075_s17 = int_to_ptr.vmem [resolvable:$true] %s427_s17 }
  0x1b   : > { %s411_s26 = sshll.u32 %s7931_s25, 4  ;;  %s7932_s27 = smov [#allocation7]   ;;  %s8083_s26 = int_to_ptr.vmem [resolvable:$true] %s411_s26 }
  0x1c   : > { %p8079_p12 = pnand %p11379_p9, %p7262_p11  ;;  %s8085_s20 = sshll.u32 %s7932_s27, 4  ;;  %s456_s20 = int_to_ptr.vmem [resolvable:$true] %s8085_s20 }
  0x1d   : > { %s7774_s18 = scalar_lea.hbm %s11363_s7, 2048 }
  0x1e   : > { %p7775_p13 = scmp.ne.s32.totalorder %s11363_s7, %s7774_s18  ;;  %p8095_p0 = pneg %p8079_p12 }
  0x1f   : > { %p7781_p3 = scmp.lt.u32.totalorder %s7774_s18, %s11363_s7 }
  0x20   : > { %p7777_p1 = pnand %p8095_p0, %p7775_p13 }
  0x22   : > { %p7778_p2 = pneg %p7777_p1 }
  0x24   : > { %p7783_p4 = pnand %p7781_p3, %p7778_p2 }
  0x26   : > { %7786 = shalt.err (!%p7783_p4)
}
  0x27   : > { %s7787_s21 = scalar_lea.vmem %s8075_s17, 2048  ;;  %p7795_p9 = scmp.lt.s32.totalorder %s8075_s17, %s8075_s17 }
  0x28   : > { %p7788_p7 = scmp.ne.s32.totalorder %s8075_s17, %s7787_s21  ;;  %p7796_p6 = scmp.lt.s32.totalorder %s7787_s21, %s7787_s21 }
  0x2a   : > { %p7790_p8 = pnand %p7788_p7, %p8095_p0  ;;  %p7797_p13 = por %p7796_p6, %p7795_p9 }
  0x2c   : > { %p7791_p11 = pneg %p7790_p8 }
  0x2e   : > { %p7798_p1 = pnand %p7797_p13, %p7791_p11 }
  0x30   : > { %7801 = shalt.err (!%p7798_p1)
}
  0x31   : > { %s7933_s24 = smov 128   ;;  %s7934_s18 = smov 8  }
  0x32   : > { %7268 = dma.hbm_to_vmem [thread:$0]  (!%p8079_p12), %s11363_s7, 2048, %s8075_s17, [#allocation6], %s7933_s24, %s7933_s24, %s7934_s18  }
  0x33   : > { %s7802_s21 = scalar_lea.hbm %s11361_s5, 2048 }
  0x34   : > { %p7803_p6 = scmp.ne.s32.totalorder %s11361_s5, %s7802_s21  ;;  %p7809_p3 = scmp.lt.u32.totalorder %s7802_s21, %s11361_s5 }
  0x36   : > { %p7805_p9 = pnand %p7803_p6, %p8095_p0 }
  0x38   : > { %p7806_p2 = pneg %p7805_p9 }
  0x3a   : > { %p7811_p4 = pnand %p7809_p3, %p7806_p2 }
  0x3c   : > { %7814 = shalt.err (!%p7811_p4)
}
  0x3d   : > { %s7815_s17 = scalar_lea.vmem %s8083_s26, 2048  ;;  %p7823_p13 = scmp.lt.s32.totalorder %s8083_s26, %s8083_s26 }
  0x3e   : > { %p7816_p7 = scmp.ne.s32.totalorder %s8083_s26, %s7815_s17  ;;  %p7824_p1 = scmp.lt.s32.totalorder %s7815_s17, %s7815_s17 }
  0x40   : > { %p7818_p8 = pnand %p7816_p7, %p8095_p0  ;;  %p7825_p6 = por %p7824_p1, %p7823_p13 }
  0x42   : > { %p7819_p11 = pneg %p7818_p8 }
  0x44   : > { %p7826_p9 = pnand %p7825_p6, %p7819_p11 }
  0x46   : > { %7829 = shalt.err (!%p7826_p9)
}
  0x47   : > { %7265 = dma.hbm_to_vmem [thread:$0]  (!%p8079_p12), %s11361_s5, 2048, %s8083_s26, [#allocation3], %s7933_s24, %s7933_s24, %s7934_s18  }
  0x48   : > { %s7830_s29 = scalar_lea.hbm %s11369_s13, 2048 }
  0x49   : > { %p7831_p2 = scmp.ne.s32.totalorder %s11369_s13, %s7830_s29  ;;  %p7837_p7 = scmp.lt.u32.totalorder %s7830_s29, %s11369_s13 }
  0x4b   : > { %p7833_p3 = pnand %p7831_p2, %p8095_p0 }
  0x4d   : > { %p7834_p4 = pneg %p7833_p3 }
  0x4f   : > { %p7839_p8 = pnand %p7837_p7, %p7834_p4 }
  0x51   : > { %7842 = shalt.err (!%p7839_p8)
}
  0x52   : > { %s7843_s17 = scalar_lea.vmem %s456_s20, 2048  ;;  %p7851_p6 = scmp.lt.s32.totalorder %s456_s20, %s456_s20 }
  0x53   : > { %p7844_p11 = scmp.ne.s32.totalorder %s456_s20, %s7843_s17  ;;  %p7852_p9 = scmp.lt.s32.totalorder %s7843_s17, %s7843_s17 }
  0x55   : > { %p7846_p13 = pnand %p7844_p11, %p8095_p0  ;;  %p7853_p5 = por %p7852_p9, %p7851_p6 }
  0x57   : > { %p7847_p1 = pneg %p7846_p13 }
  0x59   : > { %p7854_p10 = pnand %p7853_p5, %p7847_p1 }
  0x5b   : > { %7857 = shalt.err (!%p7854_p10)
}
  0x5c   : > { %7271 = dma.hbm_to_vmem [thread:$0]  (!%p8079_p12), %s11369_s13, 2048, %s456_s20, [#allocation6], %s7933_s24, %s7933_s24, %s7934_s18  }
  0x5d   : > { %p11409_p2 = scmp.ne.s32.totalorder %s11406_s30, 0 }
  0x5f   : > { %507 = sbr.rel (%p11409_p2) target bundleno = 2713 (0xa99), region = 80 }
  0x66   : > { %p11410_p0 = scmp.eq.s32.totalorder %s8041_s22, 0 }
  0x68   : > { %7903 = dma.done.wait (%p11410_p0), [#allocation3], 2048   ;;  %p11411_p3 = pmov %p11410_p0 }
  0x69   : > { %p11412_p5 = pmov %p11410_p0 }
  0x6a   : > { %7905 = vsyncadd (%p11411_p3), [#allocation3], 4294965248 }
  0x6b   : > { %7907 = dma.done.wait (%p11412_p5), [#allocation6], 4096   ;;  %p11413_p10 = pmov %p11410_p0 }
  0x6c   : > { %s5539_s15 = sshll.u32 %s8041_s22, 4  ;;  %v7935_v0 = vmov 0   ;;  %p589_p12 = scmp.lt.s32.totalorder %s8041_s22, 1  ;;  %v1359_v1 = vld [vmem:[#allocation5] sm:$0xff]  ;;  %v1360_v2 = vld [vmem:[#allocation5 + $0x8] sm:$0xff]  ;;  %v1361_v3 = vld [vmem:[#allocation5 + $0x10] sm:$0xff] }
  0x6d   : > { %7909 = vsyncadd (%p11413_p10), [#allocation6], 4294963200  ;;  %p578_p4 = scmp.lt.s32.totalorder %s5539_s15, 31  ;;  %7324 = vset.pattern.permute.xlu0 %v7935_v0  ;;  %7325 = vset.pattern.permute.xlu1 %v7935_v0  ;;  %v6908_v4 = vpack.c.bf16 %v1360_v2, %v1359_v1  ;;  %v1362_v5 = vld [vmem:[#allocation5 + $0x18] sm:$0xff]  ;;  %v1363_v7 = vld [vmem:[#allocation5 + $0x20] sm:$0xff]  ;;  %s5541_s12 = sshll.u32 %s8041_s22, 5 }
  0x6e   : > { %v6912_v6 = vpack.c.bf16 %v1362_v5, %v1361_v3  ;;  %v1364_v8 = vld [vmem:[#allocation5 + $0x28] sm:$0xff]  ;;  %s8185_s18 = scalar_select %p589_p12, %s8041_s22, 1  ;;  %v1365_v10 = vld [vmem:[#allocation5 + $0x30] sm:$0xff]  ;;  %v1366_v13 = vld [vmem:[#allocation5 + $0x38] sm:$0xff] }
  0x6f   : > { %s11584_s15 = smov (!%p578_p4, %s5539_s15), 31  ;;  %6909 = vmatprep.subr.bf16.mxu1 %v6908_v4  ;;  %v6916_v9 = vpack.c.bf16 %v1364_v8, %v1363_v7  ;;  %v6920_v21 = vpack.c.bf16 %v1366_v13, %v1365_v10  ;;  %v1367_v22 = vld [vmem:[#allocation5 + $0x40] sm:$0xff]  ;;  %v1368_v26 = vld [vmem:[#allocation5 + $0x48] sm:$0xff]  ;;  %v1369_v33 = vld [vmem:[#allocation5 + $0x50] sm:$0xff]  ;;  %p584_p7 = scmp.lt.s32.totalorder %s5541_s12, 63 }
  0x70   : > { %s5540_s20 = sshll.u32 %s11584_s15, 3  ;;  %6911 = vmatpush3.bf16.msra.mxu1 %v6908_v4  ;;  %s5788_s14 = sshll.u32 %s8185_s18, 8  ;;  %v6924_v38 = vpack.c.bf16 %v1368_v26, %v1367_v22  ;;  %v1370_v39 = vld [vmem:[#allocation5 + $0x58] sm:$0xff]  ;;  %v1371_v43 = vld [vmem:[#allocation5 + $0x60] sm:$0xff]  ;;  %v1372_v52 = vld [vmem:[#allocation5 + $0x68] sm:$0xff] }
  0x71   : > { %s8182_s24 = scalar_lea.vmem %s11356_s0, %s5540_s20  ;;  %6913 = vmatprep.subr.bf16.mxu1 %v6912_v6  ;;  %s8214_s29 = scalar_lea.vmem %s11359_s3, %s5788_s14  ;;  %v1373_v53 = vld [vmem:[#allocation5 + $0x70] sm:$0xff]  ;;  %v1374_v54 = vld [vmem:[#allocation5 + $0x78] sm:$0xff]  ;;  %v6928_v57 = vpack.c.bf16 %v1370_v39, %v1369_v33  ;;  %v6932_v0 = vpack.c.bf16 %v1372_v52, %v1371_v43 }
  0x72   : > { %v8188_v11 = vld [vmem:[%s8182_s24] sm:$0xff]  ;;  %v8191_v12 = vld [vmem:[%s8182_s24 + $0x8] sm:$0xff]  ;;  %v8195_v15 = vld [vmem:[%s8182_s24 + $0x10] sm:$0xff]  ;;  %v8239_v1 = vpack.c.bf16 %v1374_v54, %v1373_v53  ;;  %s11586_s12 = smov (!%p584_p7, %s5541_s12), 63  ;;  %s11570_s20 = sld [smem:[#allocation13_spill]] }
  0x73   : > { %v663_v14 = vand.u32 2147483647, %v8188_v11  ;;  %v8198_v16 = vld [vmem:[%s8182_s24 + $0x18] sm:$0xff]  ;;  %v664_v17 = vand.u32 2147483647, %v8191_v12  ;;  %v8202_v18 = vld [vmem:[%s8182_s24 + $0x20] sm:$0xff]  ;;  %vm631_vm2 = vcmp.ne.f32.partialorder %v8188_v11, %v8188_v11  ;;  %vm632_vm3 = vcmp.ne.f32.partialorder %v8191_v12, %v8191_v12 }
  0x74   : > { %6915 = vmatpush3.bf16.msra.mxu1 %v6912_v6  ;;  %v665_v20 = vand.u32 2147483647, %v8195_v15  ;;  %v666_v24 = vand.u32 2147483647, %v8198_v16  ;;  %v8208_v25 = vld [vmem:[%s8182_s24 + $0x28] sm:$0xff]  ;;  %v8217_v32 = vld [vmem:[%s8182_s24 + $0x30] sm:$0xff]  ;;  %vm633_vm4 = vcmp.ne.f32.partialorder %v8195_v15, %v8195_v15  ;;  %vm634_vm7 = vcmp.ne.f32.partialorder %v8198_v16, %v8198_v16 }
  0x75   : > { %v679_v19 = vsub.f32 0.0, %v663_v14  ;;  %6917 = vmatprep.subr.bf16.mxu1 %v6916_v9  ;;  %v680_v23 = vsub.f32 0.0, %v664_v17  ;;  %v667_v29 = vand.u32 2147483647, %v8202_v18  ;;  %v668_v36 = vand.u32 2147483647, %v8208_v25 }
  0x76   : > { %v681_v28 = vsub.f32 0.0, %v665_v20  ;;  %v682_v31 = vsub.f32 0.0, %v666_v24  ;;  %v8221_v37 = vld [vmem:[%s8182_s24 + $0x38] sm:$0xff]  ;;  %v1841_v41 = vld [vmem:[%s8214_s29 + $0xc0] sm:$0xff]  ;;  %v1843_v42 = vld [vmem:[%s8214_s29 + $0xd0] sm:$0xff]  ;;  %v615_v58 = vmax.f32 %v8188_v11, 0.0  ;;  %vm635_vm9 = vcmp.ne.f32.partialorder %v8202_v18, %v8202_v18 }
  0x77   : > { %v695_v27 = vmul.f32 1.442695, %v679_v19  ;;  %v697_v30 = vmul.f32 1.442695, %v680_v23  ;;  %v683_v35 = vsub.f32 0.0, %v667_v29  ;;  %v684_v45 = vsub.f32 0.0, %v668_v36  ;;  %1922 = vperm.xlu0 %7324, %v1841_v41   ;;  %1928 = vperm.xlu1 %7325, %v1843_v42  }
  0x78   : > { %6919 = vmatpush3.bf16.msra.mxu1 %v6916_v9  ;;  %v699_v34 = vmul.f32 1.442695, %v681_v28  ;;  %v701_v40 = vmul.f32 1.442695, %v682_v31  ;;  %v669_v46 = vand.u32 2147483647, %v8217_v32  ;;  %vm636_vm12 = vcmp.ne.f32.partialorder %v8208_v25, %v8208_v25 }
  0x79   : > { %7326 = vpow2.f32 %v695_v27  ;;  %6921 = vmatprep.subr.bf16.mxu1 %v6920_v21  ;;  %v703_v44 = vmul.f32 1.442695, %v683_v35  ;;  %v8227_v47 = vld [vmem:[%s8182_s24 + $0x40] sm:$0xff]  ;;  %v670_v48 = vand.u32 2147483647, %v8221_v37  ;;  %v8231_v49 = vld [vmem:[%s8182_s24 + $0x48] sm:$0xff]  ;;  %vm637_vm13 = vcmp.ne.f32.partialorder %v8217_v32, %v8217_v32 }
  0x7a   : > { %7328 = vpow2.f32 %v697_v30  ;;  %v1842_v50 = vld [vmem:[%s8214_s29 + $0xc8] sm:$0xff]  ;;  %v1844_v51 = vld [vmem:[%s8214_s29 + $0xd8] sm:$0xff]  ;;  %v705_v55 = vmul.f32 1.442695, %v684_v45  ;;  %v685_v56 = vsub.f32 0.0, %v669_v46  ;;  %v616_v61 = vmax.f32 %v8191_v12, 0.0 }
  0x7b   : > { %7330 = vpow2.f32 %v699_v34  ;;  %v686_v59 = vsub.f32 0.0, %v670_v48  ;;  %v671_v60 = vand.u32 2147483647, %v8227_v47  ;;  %v672_v63 = vand.u32 2147483647, %v8231_v49  ;;  %1925 = vperm.xlu0 %7324, %v1842_v50   ;;  %1931 = vperm.xlu1 %7325, %v1844_v51   ;;  %v8242_v4 = vld [vmem:[%s8182_s24 + $0x50] sm:$0xff] }
  0x7c   : > { %7332 = vpow2.f32 %v701_v40  ;;  %6923 = vmatpush3.bf16.msra.mxu1 %v6920_v21  ;;  %v707_v62 = vmul.f32 1.442695, %v685_v56  ;;  %v1845_v5 = vld [vmem:[%s8214_s29 + $0xe0] sm:$0xff]  ;;  %v1846_v6 = vld [vmem:[%s8214_s29 + $0xe8] sm:$0xff]  ;;  %v617_v7 = vmax.f32 %v8195_v15, 0.0  ;;  %v618_v8 = vmax.f32 %v8198_v16, 0.0 }
  0x7d   : > { %7334 = vpow2.f32 %v703_v44  ;;  %6925 = vmatprep.subr.bf16.mxu1 %v6924_v38  ;;  %v709_v2 = vmul.f32 1.442695, %v686_v59  ;;  %v687_v3 = vsub.f32 0.0, %v671_v60  ;;  %v688_v9 = vsub.f32 0.0, %v672_v63  ;;  %v8251_v17 = vld [vmem:[%s8182_s24 + $0x58] sm:$0xff]  ;;  %v1847_v29 = vld [vmem:[%s8214_s29 + $0xf0] sm:$0xff] }
  0x7e   : > { %7336 = vpow2.f32 %v705_v55  ;;  %v619_v10 = vmax.f32 %v8202_v18, 0.0  ;;  %v620_v13 = vmax.f32 %v8208_v25, 0.0  ;;  %v621_v20 = vmax.f32 %v8217_v32, 0.0  ;;  %v1848_v30 = vld [vmem:[%s8214_s29 + $0xf8] sm:$0xff]  ;;  %v1817_v50 = vld [vmem:[%s8214_s29] sm:$0xff]  ;;  %v1818_v51 = vld [vmem:[%s8214_s29 + $0x8] sm:$0xff] }
  0x7f   : > { %7338 = vpow2.f32 %v707_v62  ;;  %v711_v14 = vmul.f32 1.442695, %v687_v3  ;;  %v622_v21 = vmax.f32 %v8221_v37, 0.0  ;;  %v713_v22 = vmul.f32 1.442695, %v688_v9  ;;  %1934 = vperm.xlu0 %7324, %v1845_v5   ;;  %1937 = vperm.xlu1 %7325, %v1846_v6   ;;  %s5542_s15 = sshll.u32 %s11586_s12, 3 }
  0x80   : > { %6927 = vmatpush3.bf16.msra.mxu1 %v6924_v38  ;;  %7340 = vpow2.f32 %v709_v2  ;;  %v673_v23 = vand.u32 2147483647, %v8242_v4  ;;  %v623_v35 = vmax.f32 %v8227_v47, 0.0  ;;  %v674_v40 = vand.u32 2147483647, %v8251_v17  ;;  %s8935_s23 = scalar_lea.vmem %s11357_s1, %s5542_s15  ;;  %s574_s30 = sand.u32 1, %s11570_s20  }
  0x81   : > { %6929 = vmatprep.subr.bf16.mxu1 %v6928_v57  ;;  %7342 = vpow2.f32 %v711_v14  ;;  %vm638_vm15 = vcmp.ne.f32.partialorder %v8221_v37, %v8221_v37  ;;  %s11571_s19 = sld [smem:[#allocation39_spill]]  ;;  %s5789_s16 = sshll.u32 %s8041_s22, 11 }
  0x82   : > { %7344 = vpow2.f32 %v713_v22  ;;  %v8264_v48 = vsub.f32 0.0, %v673_v23  ;;  %v1819_v22 = vld [vmem:[%s8214_s29 + $0x10] sm:$0xff]  ;;  %v1820_v23 = vld [vmem:[%s8214_s29 + $0x18] sm:$0xff]  ;;  %s11573_s17 = sld [smem:[#allocation40_spill]]  ;;  %s11315_s12 = scalar_lea.sflag [#allocation4], %s574_s30 }
  0x83   : > { %v7327_v19 = vpop.eup %7326  ;;  %1940 = vperm.xlu0 %7324, %v1847_v29   ;;  %1943 = vperm.xlu1 %7325, %v1848_v30   ;;  %s7937_s15 = smov [#allocation8]  }
  0x84   : > { %v7329_v24 = vpop.eup %7328  ;;  %v727_v26 = vadd.f32 1.0, %v7327_v19  ;;  %v730_v27 = vmul.f32 -0.5, %v7327_v19  ;;  %v733_v28 = vand.u32 2147483647, %v7327_v19  ;;  %6931 = vmatpush3.bf16.msra.mxu1 %v6928_v57  ;;  %v1824_v57 = vld [vmem:[%s8214_s29 + $0x38] sm:$0xff] }
  0x85   : > { %v7331_v31 = vpop.eup %7330  ;;  %v736_v33 = vadd.f32 1.0, %v7329_v24  ;;  %v739_v34 = vmul.f32 -0.5, %v7329_v24  ;;  %6933 = vmatprep.subr.bf16.mxu1 %v6932_v0  ;;  %v742_v38 = vand.u32 2147483647, %v7329_v24 }
  0x86   : > { %v7333_v36 = vpop.eup %7332  ;;  %7346 = vlog2.f32 %v727_v26  ;;  %v745_v39 = vadd.f32 1.0, %v7331_v31  ;;  %v731_v42 = vadd.f32 1.0, %v730_v27  ;;  %v748_v44 = vmul.f32 -0.5, %v7331_v31  ;;  %v1825_v26 = vld [vmem:[%s8214_s29 + $0x40] sm:$0xff] }
  0x87   : > { %v7335_v41 = vpop.eup %7334  ;;  %7348 = vlog2.f32 %v736_v33  ;;  %v740_v43 = vadd.f32 1.0, %v739_v34  ;;  %vm8260_vm0 = vcmp.lt.f32.partialorder %v733_v28, 0.0004427343  ;;  %v754_v46 = vadd.f32 1.0, %v7333_v36  ;;  %1850 = vperm.xlu0 %7324, %v1817_v50   ;;  %1853 = vperm.xlu1 %7325, %v1818_v51   ;;  %v1821_v50 = vld [vmem:[%s8214_s29 + $0x20] sm:$0xff]  ;;  %v1822_v51 = vld [vmem:[%s8214_s29 + $0x28] sm:$0xff] }
  0x88   : > { %7350 = vlog2.f32 %v745_v39  ;;  %v7337_v52 = vpop.eup %7336  ;;  %6935 = vmatpush3.bf16.msra.mxu1 %v6932_v0  ;;  %v749_v53 = vadd.f32 1.0, %v748_v44  ;;  %v751_v54 = vand.u32 2147483647, %v7331_v31  ;;  %v757_v55 = vmul.f32 -0.5, %v7333_v36  ;;  %s11307_s26 = scalar_lea.hbm %s11573_s17, %s5789_s16 }
  0x89   : > { %v760_v56 = vand.u32 2147483647, %v7333_v36  ;;  %6937 = vmatprep.subr.bf16.mxu1 %v8239_v1  ;;  %vm8269_vm1 = vcmp.lt.f32.partialorder %v742_v38, 0.0004427343  ;;  %7352 = vlog2.f32 %v754_v46  ;;  %v763_v59 = vadd.f32 1.0, %v7335_v41  ;;  %v8273_v62 = vpop.eup %7338 }
  0x8a   : > { %v766_v60 = vmul.f32 -0.5, %v7335_v41  ;;  %v732_v63 = vmul.f32 %v7327_v19, %v731_v42  ;;  %v8277_v0 = vmul.f32 %v7329_v24, %v740_v43  ;;  %v758_v2 = vadd.f32 1.0, %v757_v55  ;;  %v8279_v5 = vpop.eup %7340  ;;  %v8401_v43 = vld [vmem:[%s8182_s24 + $0x60] sm:$0xff] }
  0x8b   : > { %v769_v3 = vand.u32 2147483647, %v7335_v41  ;;  %7354 = vlog2.f32 %v763_v59  ;;  %v772_v9 = vadd.f32 1.0, %v7337_v52  ;;  %v775_v14 = vmul.f32 -0.5, %v7337_v52  ;;  %v8297_v28 = vpop.eup %7342  ;;  %1856 = vperm.xlu0 %7324, %v1819_v22   ;;  %1859 = vperm.xlu1 %7325, %v1820_v23   ;;  %v1823_v23 = vld [vmem:[%s8214_s29 + $0x30] sm:$0xff] }
  0x8c   : > { %v767_v6 = vadd.f32 1.0, %v766_v60  ;;  %6939 = vmatpush3.bf16.msra.mxu1 %v8239_v1  ;;  %v750_v19 = vmul.f32 %v7331_v31, %v749_v53  ;;  %vm8288_vm5 = vcmp.lt.f32.partialorder %v751_v54, 0.0004427343  ;;  %vm8292_vm6 = vcmp.lt.f32.partialorder %v760_v56, 0.0004427343  ;;  %v8300_v31 = vpop.eup %7344 }
  0x8d   : > { %v781_v27 = vadd.f32 1.0, %v8273_v62  ;;  %7356 = vlog2.f32 %v772_v9  ;;  %v776_v29 = vadd.f32 1.0, %v775_v14  ;;  %v778_v1 = vand.u32 2147483647, %v7337_v52 }
  0x8e   : > { %v784_v30 = vmul.f32 -0.5, %v8273_v62  ;;  %v759_v33 = vmul.f32 %v7333_v36, %v758_v2  ;;  %v787_v34 = vand.u32 2147483647, %v8273_v62  ;;  %v790_v38 = vadd.f32 1.0, %v8279_v5 }
  0x8f   : > { %7358 = vlog2.f32 %v781_v27  ;;  %v8306_v42 = vmul.f32 %v7335_v41, %v767_v6  ;;  %vm8308_vm8 = vcmp.lt.f32.partialorder %v769_v3, 0.0004427343  ;;  %v793_v46 = vmul.f32 -0.5, %v8279_v5  ;;  %1862 = vperm.xlu0 %7324, %v1821_v50   ;;  %1865 = vperm.xlu1 %7325, %v1822_v51  }
  0x90   : > { %v7347_v39 = vpop.eup %7346  ;;  %v785_v44 = vadd.f32 1.0, %v784_v30  ;;  %7360 = vlog2.f32 %v790_v38  ;;  %v796_v54 = vand.u32 2147483647, %v8279_v5  ;;  %v799_v41 = vadd.f32 1.0, %v8297_v28 }
  0x91   : > { %v7349_v36 = vpop.eup %7348  ;;  %v729_v53 = vmul.f32 0.6931472, %v7347_v39  ;;  %v8319_v59 = vmul.f32 %v7337_v52, %v776_v29  ;;  %vm8321_vm10 = vcmp.lt.f32.partialorder %v778_v1, 0.0004427343  ;;  %vm8325_vm11 = vcmp.lt.f32.partialorder %v787_v34, 0.0004427343 }
  0x92   : > { %v7351_v55 = vpop.eup %7350  ;;  %v738_v56 = vmul.f32 0.6931472, %v7349_v36  ;;  %7362 = vlog2.f32 %v799_v41  ;;  %v802_v52 = vmul.f32 -0.5, %v8297_v28  ;;  %v786_v45 = vmul.f32 %v8273_v62, %v785_v44  ;;  %v1826_v36 = vld [vmem:[%s8214_s29 + $0x48] sm:$0xff] }
  0x93   : > { %v735_v3 = vsel %vm8260_vm0, %v732_v63, %v729_v53  ;;  %v747_v6 = vmul.f32 0.6931472, %v7351_v55  ;;  %v7353_v9 = vpop.eup %7352  ;;  %v794_v63 = vadd.f32 1.0, %v793_v46  ;;  %vm8347_vm14 = vcmp.lt.f32.partialorder %v796_v54, 0.0004427343  ;;  %1868 = vperm.xlu0 %7324, %v1823_v23   ;;  %1871 = vperm.xlu1 %7325, %v1824_v57   ;;  %v8450_v23 = vld [vmem:[%s8182_s24 + $0x78] sm:$0xff] }
  0x94   : > { %v871_v14 = vadd.f32 %v735_v3, %v615_v58  ;;  %v744_v22 = vsel %vm8269_vm1, %v8277_v0, %v738_v56  ;;  %v756_v1 = vmul.f32 0.6931472, %v7353_v9  ;;  %v715_v51 = vmul.f32 1.442695, %v8264_v48 }
  0x95   : > { %v872_v27 = vadd.f32 %v744_v22, %v616_v61  ;;  %v753_v29 = vsel %vm8288_vm5, %v750_v19, %v747_v6  ;;  %v7355_v0 = vpop.eup %7354  ;;  %v805_v61 = vand.u32 2147483647, %v8297_v28  ;;  %v808_v19 = vadd.f32 1.0, %v8300_v31 }
  0x96   : > { %v887_v62 = vsel %vm631_vm2, %v8188_v11, %v871_v14  ;;  %v873_v30 = vadd.f32 %v753_v29, %v617_v7  ;;  %v762_v11 = vsel %vm8292_vm6, %v759_v33, %v756_v1  ;;  %v765_v34 = vmul.f32 0.6931472, %v7355_v0  ;;  %v1829_v29 = vld [vmem:[%s8214_s29 + $0x60] sm:$0xff] }
  0x97   : > { %6328 = vmatprep.mubr.f32.mxu1 %v887_v62  ;;  %v8366_v24 = vsel %vm632_vm3, %v8191_v12, %v872_v27  ;;  %v803_v7 = vadd.f32 1.0, %v802_v52  ;;  %v7357_v38 = vpop.eup %7356  ;;  %v874_v12 = vadd.f32 %v762_v11, %v618_v8  ;;  %v795_v44 = vmul.f32 %v8279_v5, %v794_v63  ;;  %6272 = vmatprep.mubr.f32.mxu0 %v887_v62  ;;  %v1828_v52 = vld [vmem:[%s8214_s29 + $0x58] sm:$0xff]  ;;  %v8447_v63 = vld [vmem:[%s8182_s24 + $0x70] sm:$0xff]  ;;  %v903_v1 = vld [vmem:[#allocation2] sm:$0xff] }
  0x98   : > { %6329 = vmatmul.mubr.f32.vlgmr.msra.gmra.mrb[0].mxu1 %v8366_v24  ;;  %v8375_v39 = vsel %vm633_vm4, %v8195_v15, %v873_v30  ;;  %7364 = vlog2.f32 %v808_v19  ;;  %v771_v46 = vsel %vm8308_vm8, %v8306_v42, %v765_v34  ;;  %v774_v50 = vmul.f32 0.6931472, %v7357_v38  ;;  %1874 = vperm.xlu0 %7324, %v1825_v26   ;;  %v904_v30 = vld [vmem:[#allocation2 + $0x8] sm:$0xff]  ;;  %v906_v19 = vld [vmem:[#allocation2 + $0x18] sm:$0xff] }
  0x99   : > { %v7359_v33 = vpop.eup %7358  ;;  %6331 = vmatprep.mubr.f32.mxu1 %v8375_v39  ;;  %v811_v15 = vmul.f32 -0.5, %v8300_v31  ;;  %v8392_v8 = vsel %vm634_vm7, %v8198_v16, %v874_v12  ;;  %v875_v5 = vadd.f32 %v771_v46, %v619_v10  ;;  %vm8396_vm0 = vcmp.lt.f32.partialorder %v805_v61, 0.0004427343  ;;  %1877 = vperm.xlu1 %7325, %v1826_v36   ;;  %v905_v61 = vld [vmem:[#allocation2 + $0x10] sm:$0xff]  ;;  %v1832_v36 = vld [vmem:[%s8214_s29 + $0x78] sm:$0xff] }
  0x9a   : > { %v783_v53 = vmul.f32 0.6931472, %v7359_v33  ;;  %v7361_v48 = vpop.eup %7360  ;;  %v780_v54 = vsel %vm8321_vm10, %v8319_v59, %v774_v50  ;;  %v804_v16 = vmul.f32 %v8297_v28, %v803_v7  ;;  %7366 = vpow2.f32 %v715_v51  ;;  %v8421_v59 = vld [vmem:[%s8182_s24 + $0x68] sm:$0xff]  ;;  %v1831_v33 = vld [vmem:[%s8214_s29 + $0x70] sm:$0xff]  ;;  %s5543_s24 = sshll.u32 %s8185_s18, 1  ;;  %s11548_s18 = sld [smem:[#allocation38_spill]] }
  0x9b   : > { %v690_v41 = vsub.f32 0.0, %v674_v40  ;;  %v8414_v10 = vsel %vm635_vm9, %v8202_v18, %v875_v5  ;;  %v876_v55 = vadd.f32 %v780_v54, %v620_v13  ;;  %v792_v56 = vmul.f32 0.6931472, %v7361_v48  ;;  %v1827_v40 = vld [vmem:[%s8214_s29 + $0x50] sm:$0xff]  ;;  %v907_v5 = vld [vmem:[#allocation2 + $0x20] sm:$0xff]  ;;  %s592_s28 = scalar_lea.vmem %s11358_s2, %s5543_s24 }
  0x9c   : > { %6332 = vmatmul.mubr.f32.gmra.mrb[2].mxu1 %v8392_v8  ;;  %v789_v28 = vsel %vm8325_vm11, %v786_v45, %v783_v53  ;;  %v7363_v60 = vpop.eup %7362  ;;  %v812_v3 = vadd.f32 1.0, %v811_v15  ;;  %v675_v13 = vand.u32 2147483647, %v8401_v43  ;;  %v814_v22 = vand.u32 2147483647, %v8300_v31  ;;  %1880 = vperm.xlu0 %7324, %v1827_v40   ;;  %v908_v53 = vld [vmem:[#allocation2 + $0x28] sm:$0xff] }
  0x9d   : > { %6334 = vmatprep.mubr.f32.mxu1 %v8414_v10  ;;  %v877_v18 = vadd.f32 %v789_v28, %v621_v20  ;;  %v717_v6 = vmul.f32 1.442695, %v690_v41  ;;  %v8433_v2 = vsel %vm636_vm12, %v8208_v25, %v876_v55  ;;  %v798_v9 = vsel %vm8347_vm14, %v795_v44, %v792_v56  ;;  %1883 = vperm.xlu1 %7325, %v1828_v52   ;;  %v1833_v55 = vld [vmem:[%s8214_s29 + $0x80] sm:$0xff]  ;;  %v1836_v52 = vld [vmem:[%s8214_s29 + $0x98] sm:$0xff]  ;;  %v1839_v7 = vld [vmem:[%s8214_s29 + $0xb0] sm:$0xff] }
  0x9e   : > { %v801_v14 = vmul.f32 0.6931472, %v7363_v60  ;;  %v878_v45 = vadd.f32 %v798_v9, %v622_v21  ;;  %v691_v25 = vsub.f32 0.0, %v675_v13  ;;  %vm639_vm1 = vcmp.ne.f32.partialorder %v8227_v47, %v8227_v47  ;;  %v1830_v21 = vld [vmem:[%s8214_s29 + $0x68] sm:$0xff] }
  0x9f   : > { %v8442_v20 = vsel %vm637_vm13, %v8217_v32, %v877_v18  ;;  %7368 = vpow2.f32 %v717_v6  ;;  %v676_v32 = vand.u32 2147483647, %v8421_v59  ;;  %v813_v0 = vmul.f32 %v8300_v31, %v812_v3  ;;  %v1834_v60 = vld [vmem:[%s8214_s29 + $0x88] sm:$0xff] }
  0xa0   : > { %6335 = vmatmul.mubr.f32.gmra.mrb[4].mxu1 %v8433_v2  ;;  %v807_v27 = vsel %vm8396_vm0, %v804_v16, %v801_v14  ;;  %v8465_v58 = vsel %vm638_vm15, %v8221_v37, %v878_v45  ;;  %v719_v62 = vmul.f32 1.442695, %v691_v25  ;;  %v624_v34 = vmax.f32 %v8231_v49, 0.0  ;;  %1886 = vperm.xlu0 %7324, %v1829_v29   ;;  %v1837_v45 = vld [vmem:[%s8214_s29 + $0xa0] sm:$0xff] }
  0xa1   : > { %6337 = vmatprep.mubr.f32.mxu1 %v8442_v20  ;;  %v879_v57 = vadd.f32 %v807_v27, %v623_v35  ;;  %vm8471_vm2 = vcmp.lt.f32.partialorder %v814_v22, 0.0004427343  ;;  %v692_v38 = vsub.f32 0.0, %v676_v32  ;;  %v677_v37 = vand.u32 2147483647, %v8447_v63  ;;  %1889 = vperm.xlu1 %7325, %v1830_v21   ;;  %v1838_v21 = vld [vmem:[%s8214_s29 + $0xa8] sm:$0xff] }
  0xa2   : > { %v7365_v11 = vpop.eup %7364  ;;  %7370 = vpow2.f32 %v719_v62  ;;  %v678_v12 = vand.u32 2147483647, %v8450_v23  ;;  %v6876_v46 = vpack.c.bf16 %v904_v30, %v903_v1  ;;  %v6880_v50 = vpack.c.bf16 %v906_v19, %v905_v61 }
  0xa3   : > { %v8480_v35 = vsel %vm639_vm1, %v8227_v47, %v879_v57  ;;  %v810_v31 = vmul.f32 0.6931472, %v7365_v11  ;;  %v721_v44 = vmul.f32 1.442695, %v692_v38  ;;  %v693_v26 = vsub.f32 0.0, %v677_v37 }
  0xa4   : > { %6338 = vmatmul.mubr.f32.gmra.mrb[6].mxu1 %v8465_v58  ;;  %v7367_v15 = vpop.eup %7366  ;;  %vm640_vm3 = vcmp.ne.f32.partialorder %v8231_v49, %v8231_v49  ;;  %v694_v51 = vsub.f32 0.0, %v678_v12  ;;  %6877 = vmatprep.subr.bf16.mxu0 %v6876_v46  ;;  %v6884_v28 = vpack.c.bf16 %v908_v53, %v907_v5  ;;  %v625_v57 = vmax.f32 %v8242_v4, 0.0 }
  0xa5   : > { %6340 = vmatprep.mubr.f32.mxu1 %v8480_v35  ;;  %v816_v47 = vsel %vm8471_vm2, %v813_v0, %v810_v31  ;;  %v817_v48 = vadd.f32 1.0, %v7367_v15  ;;  %7372 = vpow2.f32 %v721_v44  ;;  %v723_v54 = vmul.f32 1.442695, %v693_v26  ;;  %1892 = vperm.xlu0 %7324, %v1831_v33   ;;  %v1840_v26 = vld [vmem:[%s8214_s29 + $0xb8] sm:$0xff] }
  0xa6   : > { %v880_v42 = vadd.f32 %v816_v47, %v624_v34  ;;  %v725_v16 = vmul.f32 1.442695, %v694_v51  ;;  %6879 = vmatpush3.bf16.msra.mxu0 %v6876_v46  ;;  %1895 = vperm.xlu1 %7325, %v1832_v36   ;;  %v820_v40 = vmul.f32 -0.5, %v7367_v15  ;;  %v823_v9 = vand.u32 2147483647, %v7367_v15 }
  0xa7   : > { %7374 = vlog2.f32 %v817_v48  ;;  %6881 = vmatprep.subr.bf16.mxu0 %v6880_v50  ;;  %vm641_vm5 = vcmp.ne.f32.partialorder %v8242_v4, %v8242_v4  ;;  %v626_v19 = vmax.f32 %v8251_v17, 0.0  ;;  %vm642_vm7 = vcmp.ne.f32.partialorder %v8251_v17, %v8251_v17 }
  0xa8   : > { %v8492_v41 = vsel %vm640_vm3, %v8231_v49, %v880_v42  ;;  %7376 = vpow2.f32 %v723_v54  ;;  %v1835_v49 = vld [vmem:[%s8214_s29 + $0x90] sm:$0xff]  ;;  %v821_v6 = vadd.f32 1.0, %v820_v40  ;;  %vm8502_vm4 = vcmp.lt.f32.partialorder %v823_v9, 0.0004427343  ;;  %s11549_s29 = smov %s11548_s18 }
  0xa9   : > { %v7369_v56 = vpop.eup %7368  ;;  %6341 = vmatmul.mubr.f32.gmra.mrb[8].mxu1 %v8492_v41  ;;  %7378 = vpow2.f32 %v725_v16  ;;  %1898 = vperm.xlu0 %7324, %v1833_v55   ;;  %v627_v55 = vmax.f32 %v8401_v43, 0.0  ;;  %vm643_vm9 = vcmp.ne.f32.partialorder %v8401_v43, %v8401_v43  ;;  %vm644_vm12 = vcmp.ne.f32.partialorder %v8421_v59, %v8421_v59 }
  0xaa   : > { %v826_v18 = vadd.f32 1.0, %v7369_v56  ;;  %6883 = vmatpush3.bf16.msra.mxu0 %v6880_v50  ;;  %1901 = vperm.xlu1 %7325, %v1834_v60   ;;  %v829_v13 = vmul.f32 -0.5, %v7369_v56  ;;  %v832_v22 = vand.u32 2147483647, %v7369_v56  ;;  %v822_v27 = vmul.f32 %v7367_v15, %v821_v6 }
  0xab   : > { %6885 = vmatprep.subr.bf16.mxu0 %v6884_v28  ;;  %vm645_vm14 = vcmp.ne.f32.partialorder %v8447_v63, %v8447_v63  ;;  %vm646_vm15 = vcmp.ne.f32.partialorder %v8450_v23, %v8450_v23 }
  0xac   : > { %7380 = vlog2.f32 %v826_v18  ;;  %v7371_v3 = vpop.eup %7370  ;;  %v830_v32 = vadd.f32 1.0, %v829_v13  ;;  %vm8509_vm6 = vcmp.lt.f32.partialorder %v832_v22, 0.0004427343 }
  0xad   : > { %v835_v14 = vadd.f32 1.0, %v7371_v3  ;;  %1904 = vperm.xlu0 %7324, %v1835_v49   ;;  %v838_v29 = vmul.f32 -0.5, %v7371_v3  ;;  %v841_v50 = vand.u32 2147483647, %v7371_v3 }
  0xae   : > { %6887 = vmatpush3.bf16.msra.mxu0 %v6884_v28  ;;  %1907 = vperm.xlu1 %7325, %v1836_v52   ;;  %v831_v31 = vmul.f32 %v7369_v56, %v830_v32  ;;  %v628_v52 = vmax.f32 %v8421_v59, 0.0 }
  0xaf   : > { %7382 = vlog2.f32 %v835_v14  ;;  %v7373_v25 = vpop.eup %7372  ;;  %v839_v12 = vadd.f32 1.0, %v838_v29  ;;  %vm842_vm8 = vcmp.lt.f32.partialorder %v841_v50, 0.0004427343 }
  0xb0   : > { %v844_v62 = vadd.f32 1.0, %v7373_v25  ;;  %v847_v44 = vmul.f32 -0.5, %v7373_v25 }
  0xb1   : > { %v7375_v1 = vpop.eup %7374  ;;  %1910 = vperm.xlu0 %7324, %v1837_v45   ;;  %v840_v53 = vmul.f32 %v7371_v3, %v839_v12 }
  0xb2   : > { %v7377_v30 = vpop.eup %7376  ;;  %v819_v61 = vmul.f32 0.6931472, %v7375_v1  ;;  %7384 = vlog2.f32 %v844_v62  ;;  %1913 = vperm.xlu1 %7325, %v1838_v21   ;;  %v848_v42 = vadd.f32 1.0, %v847_v44  ;;  %v913_v44 = vld [vmem:[#allocation2 + $0x50] sm:$0xff] }
  0xb3   : > { %v853_v34 = vadd.f32 1.0, %v7377_v30  ;;  %v7379_v38 = vpop.eup %7378  ;;  %v856_v51 = vmul.f32 -0.5, %v7377_v30  ;;  %v859_v60 = vand.u32 2147483647, %v7377_v30 }
  0xb4   : > { %v825_v37 = vsel %vm8502_vm4, %v822_v27, %v819_v61  ;;  %v862_v15 = vadd.f32 1.0, %v7379_v38  ;;  %v865_v48 = vmul.f32 -0.5, %v7379_v38  ;;  %v849_v49 = vmul.f32 %v7373_v25, %v848_v42 }
  0xb5   : > { %v881_v46 = vadd.f32 %v825_v37, %v625_v57  ;;  %7386 = vlog2.f32 %v853_v34  ;;  %1916 = vperm.xlu0 %7324, %v1839_v7   ;;  %v857_v56 = vadd.f32 1.0, %v856_v51  ;;  %v868_v9 = vand.u32 2147483647, %v7379_v38  ;;  %v909_v7 = vld [vmem:[#allocation2 + $0x30] sm:$0xff] }
  0xb6   : > { %v7381_v33 = vpop.eup %7380  ;;  %7388 = vlog2.f32 %v862_v15  ;;  %1919 = vperm.xlu1 %7325, %v1840_v26   ;;  %v866_v3 = vadd.f32 1.0, %v865_v48  ;;  %v629_v27 = vmax.f32 %v8447_v63, 0.0  ;;  %vm860_vm11 = vcmp.lt.f32.partialorder %v859_v60, 0.0004427343  ;;  %v914_v26 = vld [vmem:[#allocation2 + $0x58] sm:$0xff] }
  0xb7   : > { %v828_v47 = vmul.f32 0.6931472, %v7381_v33  ;;  %v8521_v36 = vsel %vm641_vm5, %v8242_v4, %v881_v46  ;;  %v850_v4 = vand.u32 2147483647, %v7373_v25  ;;  %v858_v22 = vmul.f32 %v7377_v30, %v857_v56  ;;  %v916_v46 = vld [vmem:[#allocation2 + $0x68] sm:$0xff]  ;;  %v918_v15 = vld [vmem:[#allocation2 + $0x78] sm:$0xff] }
  0xb8   : > { %6343 = vmatprep.mubr.f32.mxu1 %v8521_v36  ;;  %v867_v29 = vmul.f32 %v7379_v38, %v866_v3  ;;  %v630_v57 = vmax.f32 %v8450_v23, 0.0  ;;  %vm869_vm13 = vcmp.lt.f32.partialorder %v868_v9, 0.0004427343  ;;  %v910_v38 = vld [vmem:[#allocation2 + $0x38] sm:$0xff]  ;;  %v6896_v33 = vpack.c.bf16 %v914_v26, %v913_v44 }
  0xb9   : > { %v834_v5 = vsel %vm8509_vm6, %v831_v31, %v828_v47  ;;  %v7383_v54 = vpop.eup %7382  ;;  %vm851_vm10 = vcmp.lt.f32.partialorder %v850_v4, 0.0004427343  ;;  %v6888_v37 = vpack.c.bf16 %v910_v38, %v909_v7  ;;  %v911_v31 = vld [vmem:[#allocation2 + $0x40] sm:$0xff] }
  0xba   : > { %v882_v16 = vadd.f32 %v834_v5, %v626_v19  ;;  %v837_v28 = vmul.f32 0.6931472, %v7383_v54  ;;  %v1815_v5 = vlaneseq }
  0xbb   : > { %6889 = vmatprep.subr.bf16.mxu0 %v6888_v37 }
  0xbc   : > { %v8530_v40 = vsel %vm642_vm7, %v8251_v17, %v882_v16  ;;  %v843_v18 = vsel %vm842_vm8, %v840_v53, %v837_v28  ;;  %v7385_v6 = vpop.eup %7384  ;;  %6891 = vmatpush3.bf16.msra.mxu0 %v6888_v37  ;;  %v8552_v53 = vand.u32 127, %v1815_v5 }
  0xbd   : > { %6344 = vmatmul.mubr.f32.gmra.mrb[10].mxu1 %v8530_v40  ;;  %v883_v13 = vadd.f32 %v843_v18, %v627_v55  ;;  %v846_v14 = vmul.f32 0.6931472, %v7385_v6 }
  0xbf   : > { %v7387_v45 = vpop.eup %7386  ;;  %v8537_v17 = vsel %vm643_vm9, %v8401_v43, %v883_v13  ;;  %v852_v25 = vsel %vm851_vm10, %v849_v49, %v846_v14 }
  0xc0   : > { %6346 = vmatprep.mubr.f32.mxu1 %v8537_v17  ;;  %v855_v32 = vmul.f32 0.6931472, %v7387_v45  ;;  %v7389_v21 = vpop.eup %7388  ;;  %v884_v1 = vadd.f32 %v852_v25, %v628_v52 }
  0xc1   : > { %v864_v0 = vmul.f32 0.6931472, %v7389_v21 }
  0xc2   : > { %v861_v43 = vsel %vm860_vm11, %v858_v22, %v855_v32  ;;  %v900_v62 = vsel %vm644_vm12, %v8421_v59, %v884_v1  ;;  %v912_v59 = vld [vmem:[#allocation2 + $0x48] sm:$0xff] }
  0xc3   : > { %v885_v30 = vadd.f32 %v861_v43, %v629_v27  ;;  %6347 = vmatmul.mubr.f32.gmra.mrb[12].mxu1 %v900_v62  ;;  %v870_v61 = vsel %vm869_vm13, %v867_v29, %v864_v0  ;;  %v6892_v12 = vpack.c.bf16 %v912_v59, %v911_v31 }
  0xc4   : > { %v886_v11 = vadd.f32 %v870_v61, %v630_v57 }
  0xc5   : > { %v901_v19 = vsel %vm645_vm14, %v8447_v63, %v885_v30  ;;  %6893 = vmatprep.subr.bf16.mxu0 %v6892_v12  ;;  %v915_v63 = vld [vmem:[#allocation2 + $0x60] sm:$0xff] }
  0xc6   : > { %6349 = vmatprep.mubr.f32.mxu1 %v901_v19  ;;  %v902_v34 = vsel %vm646_vm15, %v8450_v23, %v886_v11  ;;  %6895 = vmatpush3.bf16.msra.mxu0 %v6892_v12  ;;  %v6900_v50 = vpack.c.bf16 %v916_v46, %v915_v63  ;;  %v917_v23 = vld [vmem:[#allocation2 + $0x70] sm:$0xff] }
  0xc7   : > { %6350 = vmatmul.mubr.f32.gmra.mrb[14].mxu1 %v902_v34  ;;  %6897 = vmatprep.subr.bf16.mxu0 %v6896_v33  ;;  %v6904_v47 = vpack.c.bf16 %v918_v15, %v917_v23 }
  0xca   : > { %6899 = vmatpush3.bf16.msra.mxu0 %v6896_v33 }
  0xcb   : > { %6901 = vmatprep.subr.bf16.mxu0 %v6900_v50 }
  0xce   : > { %6903 = vmatpush3.bf16.msra.mxu0 %v6900_v50 }
  0xcf   : > { %6905 = vmatprep.subr.bf16.mxu0 %v6904_v47 }
  0xd2   : > { %6907 = vmatpush3.bf16.msra.mxu0 %v6904_v47 }
  0xd5   : > { %6273 = vmatmul.mubr.f32.vlgmr.msra.gmra.mrb[0].mxu0 %v8366_v24 }
  0xd6   : > { %6275 = vmatprep.mubr.f32.mxu0 %v8375_v39 }
  0xd9   : > { %6276 = vmatmul.mubr.f32.gmra.mrb[2].mxu0 %v8392_v8 }
  0xda   : > { %6278 = vmatprep.mubr.f32.mxu0 %v8414_v10  ;;  %v11387_v10 = vmov 1.0  }
  0xdd   : > { %6279 = vmatmul.mubr.f32.gmra.mrb[4].mxu0 %v8433_v2  ;;  %v8585_v2 = vld [vmem:[%s11364_s8] ss:$0 sm:$0xff] }
  0xde   : > { %6281 = vmatprep.mubr.f32.mxu0 %v8442_v20 }
  0xe1   : > { %6282 = vmatmul.mubr.f32.gmra.mrb[6].mxu0 %v8465_v58 }
  0xe2   : > { %6284 = vmatprep.mubr.f32.mxu0 %v8480_v35 }
  0xe5   : > { %6285 = vmatmul.mubr.f32.gmra.mrb[8].mxu0 %v8492_v41 }
  0xe6   : > { %6287 = vmatprep.mubr.f32.mxu0 %v8521_v36 }
  0xe9   : > { %6288 = vmatmul.mubr.f32.gmra.mrb[10].mxu0 %v8530_v40 }
  0xea   : > { %6290 = vmatprep.mubr.f32.mxu0 %v8537_v17 }
  0xed   : > { %6291 = vmatmul.mubr.f32.gmra.mrb[12].mxu0 %v900_v62 }
  0xee   : > { %6293 = vmatprep.mubr.f32.mxu0 %v901_v19 }
  0xf1   : > { %6294 = vmatmul.mubr.f32.gmra.mrb[14].mxu0 %v902_v34 }
  0xf6   : > { %v1923_v51 = vpop.permute.xlu0 %1922 }
  0xf7   : > { %vm1969_vm3 = vcmp.eq.s32.totalorder %v1923_v51, %v8552_v53 }
  0xf8   : > { %6420 = vmatprep.mubr.msk.f32.mxu1 %vm1969_vm3, %v11387_v10 }
  0xfa   : > { %v8555_v42 = vpop.permute.xlu0 %1925 }
  0xfb   : > { %vm1970_vm0 = vcmp.eq.s32.totalorder %v8555_v42, %v8552_v53 }
  0xfe   : > { %v8566_v24 = vpop.permute.xlu0 %1934 }
  0xff   : > { %vm1973_vm1 = vcmp.eq.s32.totalorder %v8566_v24, %v8552_v53 }
 0x102   : > { %v8574_v39 = vpop.permute.xlu0 %1940 }
 0x103   : > { %vm1975_vm2 = vcmp.eq.s32.totalorder %v8574_v39, %v8552_v53  ;;  %v2267_v39 = vld [vmem:[%s8935_s23 + $0x8] sm:$0xff] }
 0x106   : > { %v1851_v8 = vpop.permute.xlu0 %1850 }
 0x107   : > { %vm1945_vm4 = vcmp.eq.s32.totalorder %v1851_v8, %v8552_v53 }
 0x108   : > { %6384 = vmatprep.mubr.msk.f32.mxu0 %vm1945_vm4, %v11387_v10 }
 0x16b   : > { %v6330_v20 = vpop.f32.mrb[0].mxu1 }
 0x16c   : > { %v8588_v58 = vadd.f32 %v6330_v20, %v8585_v2  ;;  %v1448_v35 = vpop.f32.mrb[1].mxu1 }
 0x16d   : > { %v8591_v41 = vadd.f32 %v8585_v2, %v1448_v35 }
 0x16e   : > { %v1576_v36 = vand.u32 2147483647, %v8588_v58  ;;  %v1528_v47 = vmax.f32 %v8588_v58, 0.0  ;;  %vm1544_vm5 = vcmp.ne.f32.partialorder %v8588_v58, %v8588_v58 }
 0x16f   : > { %v1575_v48 = vand.u32 2147483647, %v8591_v41  ;;  %v6333_v54 = vpop.f32.mrb[2].mxu1  ;;  %v1527_v35 = vmax.f32 %v8591_v41, 0.0  ;;  %vm1543_vm7 = vcmp.ne.f32.partialorder %v8591_v41, %v8591_v41 }
 0x170   : > { %v1592_v16 = vsub.f32 0.0, %v1576_v36  ;;  %v8596_v55 = vadd.f32 %v6333_v54, %v8585_v2  ;;  %v1458_v4 = vpop.f32.mrb[3].mxu1 }
 0x171   : > { %v1591_v28 = vsub.f32 0.0, %v1575_v48  ;;  %v8599_v56 = vadd.f32 %v8585_v2, %v1458_v4 }
 0x172   : > { %v1609_v40 = vmul.f32 1.442695, %v1592_v16  ;;  %v1578_v60 = vand.u32 2147483647, %v8596_v55  ;;  %v1530_v48 = vmax.f32 %v8596_v55, 0.0  ;;  %vm1546_vm12 = vcmp.ne.f32.partialorder %v8596_v55, %v8596_v55 }
 0x173   : > { %v1607_v18 = vmul.f32 1.442695, %v1591_v28  ;;  %v1577_v49 = vand.u32 2147483647, %v8599_v56  ;;  %v6336_v3 = vpop.f32.mrb[4].mxu1  ;;  %v1529_v54 = vmax.f32 %v8599_v56, 0.0  ;;  %vm1545_vm11 = vcmp.ne.f32.partialorder %v8599_v56, %v8599_v56 }
 0x174   : > { %7390 = vpow2.f32 %v1609_v40  ;;  %v1594_v6 = vsub.f32 0.0, %v1578_v60  ;;  %v8604_v13 = vadd.f32 %v6336_v3, %v8585_v2  ;;  %v1468_v52 = vpop.f32.mrb[5].mxu1 }
 0x175   : > { %7392 = vpow2.f32 %v1607_v18  ;;  %v1593_v9 = vsub.f32 0.0, %v1577_v49  ;;  %v8607_v14 = vadd.f32 %v8585_v2, %v1468_v52 }
 0x176   : > { %v1613_v22 = vmul.f32 1.442695, %v1594_v6  ;;  %v1580_v45 = vand.u32 2147483647, %v8604_v13  ;;  %v1532_v40 = vmax.f32 %v8604_v13, 0.0  ;;  %vm1548_vm3 = vcmp.ne.f32.partialorder %v8604_v13, %v8604_v13 }
 0x177   : > { %v1611_v17 = vmul.f32 1.442695, %v1593_v9  ;;  %v1579_v27 = vand.u32 2147483647, %v8607_v14  ;;  %v6339_v25 = vpop.f32.mrb[6].mxu1  ;;  %v1531_v60 = vmax.f32 %v8607_v14, 0.0  ;;  %vm1547_vm15 = vcmp.ne.f32.partialorder %v8607_v14, %v8607_v14 }
 0x178   : > { %7394 = vpow2.f32 %v1613_v22  ;;  %v1596_v32 = vsub.f32 0.0, %v1580_v45  ;;  %v8612_v29 = vadd.f32 %v6339_v25, %v8585_v2  ;;  %v1478_v21 = vpop.f32.mrb[7].mxu1 }
 0x179   : > { %7396 = vpow2.f32 %v1611_v17  ;;  %v1595_v1 = vsub.f32 0.0, %v1579_v27  ;;  %v8616_v30 = vadd.f32 %v8585_v2, %v1478_v21 }
 0x17a   : > { %v1617_v57 = vmul.f32 1.442695, %v1596_v32  ;;  %v1582_v43 = vand.u32 2147483647, %v8612_v29 }
 0x17b   : > { %v1615_v0 = vmul.f32 1.442695, %v1595_v1  ;;  %v1581_v31 = vand.u32 2147483647, %v8616_v30 }
 0x17c   : > { %7398 = vpow2.f32 %v1617_v57  ;;  %v1598_v62 = vsub.f32 0.0, %v1582_v43  ;;  %v6342_v61 = vpop.f32.mrb[8].mxu1 }
 0x17d   : > { %7400 = vpow2.f32 %v1615_v0  ;;  %v1488_v19 = vpop.f32.mrb[9].mxu1  ;;  %v8620_v59 = vadd.f32 %v6342_v61, %v8585_v2  ;;  %v1597_v46 = vsub.f32 0.0, %v1581_v31 }
 0x17e   : > { %v7391_v11 = vpop.eup %7390  ;;  %v1621_v34 = vmul.f32 1.442695, %v1598_v62  ;;  %v8652_v52 = vadd.f32 %v8585_v2, %v1488_v19 }
 0x17f   : > { %v7393_v7 = vpop.eup %7392  ;;  %v1648_v38 = vadd.f32 1.0, %v7391_v11  ;;  %v1651_v26 = vmul.f32 -0.5, %v7391_v11  ;;  %v1584_v23 = vand.u32 2147483647, %v8620_v59  ;;  %v1654_v51 = vand.u32 2147483647, %v7391_v11 }
 0x180   : > { %v1639_v37 = vadd.f32 1.0, %v7393_v7  ;;  %7402 = vpow2.f32 %v1621_v34  ;;  %v1642_v50 = vmul.f32 -0.5, %v7393_v7  ;;  %v1619_v4 = vmul.f32 1.442695, %v1597_v46 }
 0x181   : > { %7404 = vlog2.f32 %v1648_v38  ;;  %v1652_v20 = vadd.f32 1.0, %v1651_v26  ;;  %v1600_v18 = vsub.f32 0.0, %v1584_v23  ;;  %vm8645_vm6 = vcmp.lt.f32.partialorder %v1654_v51, 0.0004427343 }
 0x182   : > { %v8622_v12 = vpop.eup %7394  ;;  %7406 = vlog2.f32 %v1639_v37  ;;  %v1643_v28 = vadd.f32 1.0, %v1642_v50  ;;  %v1645_v6 = vand.u32 2147483647, %v7393_v7  ;;  %v1583_v61 = vand.u32 2147483647, %v8652_v52 }
 0x183   : > { %v8624_v44 = vpop.eup %7396  ;;  %v1666_v33 = vadd.f32 1.0, %v8622_v12  ;;  %v1653_v22 = vmul.f32 %v7391_v11, %v1652_v20  ;;  %v1669_v45 = vmul.f32 -0.5, %v8622_v12  ;;  %v1672_v32 = vand.u32 2147483647, %v8622_v12 }
 0x184   : > { %v1657_v63 = vadd.f32 1.0, %v8624_v44  ;;  %v1660_v17 = vmul.f32 -0.5, %v8624_v44  ;;  %v1625_v21 = vmul.f32 1.442695, %v1600_v18  ;;  %v1644_v57 = vmul.f32 %v7393_v7, %v1643_v28 }
 0x185   : > { %v1663_v43 = vand.u32 2147483647, %v8624_v44  ;;  %vm1646_vm8 = vcmp.lt.f32.partialorder %v1645_v6, 0.0004427343  ;;  %v1670_v26 = vadd.f32 1.0, %v1669_v45  ;;  %v1534_v7 = vmax.f32 %v8612_v29, 0.0 }
 0x186   : > { %v8629_v15 = vpop.eup %7398  ;;  %7408 = vlog2.f32 %v1657_v63  ;;  %v1661_v34 = vadd.f32 1.0, %v1660_v17  ;;  %vm8664_vm9 = vcmp.lt.f32.partialorder %v1672_v32, 0.0004427343 }
 0x187   : > { %v8632_v8 = vpop.eup %7400  ;;  %7410 = vlog2.f32 %v1666_v33  ;;  %v1684_v36 = vadd.f32 1.0, %v8629_v15  ;;  %v1687_v38 = vmul.f32 -0.5, %v8629_v15  ;;  %v1599_v33 = vsub.f32 0.0, %v1583_v61 }
 0x188   : > { %v1675_v16 = vadd.f32 1.0, %v8632_v8  ;;  %vm8668_vm10 = vcmp.lt.f32.partialorder %v1663_v43, 0.0004427343  ;;  %v1671_v17 = vmul.f32 %v8622_v12, %v1670_v26 }
 0x189   : > { %7412 = vlog2.f32 %v1684_v36  ;;  %v1533_v36 = vmax.f32 %v8616_v30, 0.0  ;;  %v1688_v28 = vadd.f32 1.0, %v1687_v38 }
 0x18a   : > { %v8641_v49 = vpop.eup %7402  ;;  %7414 = vlog2.f32 %v1675_v16  ;;  %v1623_v16 = vmul.f32 1.442695, %v1599_v33 }
 0x18b   : > { %v7405_v9 = vpop.eup %7404  ;;  %7416 = vpow2.f32 %v1619_v4  ;;  %v1702_v0 = vadd.f32 1.0, %v8641_v49  ;;  %v1662_v4 = vmul.f32 %v8624_v44, %v1661_v34  ;;  %v1689_v12 = vmul.f32 %v8629_v15, %v1688_v28 }
 0x18c   : > { %v7407_v27 = vpop.eup %7406  ;;  %v1650_v25 = vmul.f32 0.6931472, %v7405_v9  ;;  %7418 = vpow2.f32 %v1625_v21 }
 0x18d   : > { %v1641_v1 = vmul.f32 0.6931472, %v7407_v27  ;;  %7420 = vlog2.f32 %v1702_v0  ;;  %v1681_v27 = vand.u32 2147483647, %v8632_v8  ;;  %v1708_v0 = vand.u32 2147483647, %v8641_v49 }
 0x18e   : > { %v1656_v62 = vsel %vm8645_vm6, %v1653_v22, %v1650_v25  ;;  %7422 = vpow2.f32 %v1623_v16  ;;  %vm1550_vm6 = vcmp.ne.f32.partialorder %v8612_v29, %v8612_v29 }
 0x18f   : > { %v1784_v19 = vadd.f32 %v1656_v62, %v1528_v47  ;;  %v1647_v11 = vsel %vm1646_vm8, %v1644_v57, %v1641_v1  ;;  %vm8718_vm14 = vcmp.lt.f32.partialorder %v1681_v27, 0.0004427343  ;;  %vm8740_vm4 = vcmp.lt.f32.partialorder %v1708_v0, 0.0004427343 }
 0x190   : > { %v7409_v37 = vpop.eup %7408  ;;  %v1783_v31 = vadd.f32 %v1647_v11, %v1527_v35  ;;  %v6345_v63 = vpop.f32.mrb[10].mxu1  ;;  %v1678_v35 = vmul.f32 -0.5, %v8632_v8 }
 0x191   : > { %v7411_v46 = vpop.eup %7410  ;;  %v8673_v47 = vadd.f32 %v6345_v63, %v8585_v2  ;;  %v1498_v51 = vpop.f32.mrb[11].mxu1  ;;  %v1659_v20 = vmul.f32 0.6931472, %v7409_v37  ;;  %v1800_v3 = vsel %vm1544_vm5, %v8588_v58, %v1784_v19  ;;  %v1705_v58 = vmul.f32 -0.5, %v8641_v49 }
 0x192   : > { %v1799_v18 = vsel %vm1543_vm7, %v8591_v41, %v1783_v31  ;;  %v1668_v9 = vmul.f32 0.6931472, %v7411_v46  ;;  %v8690_v44 = vadd.f32 %v8585_v2, %v1498_v51  ;;  %v1690_v41 = vand.u32 2147483647, %v8629_v15 }
 0x193   : > { %v7413_v6 = vpop.eup %7412  ;;  %v1586_v22 = vand.u32 2147483647, %v8673_v47  ;;  %v1665_v32 = vsel %vm8668_vm10, %v1662_v4, %v1659_v20  ;;  %v1679_v21 = vadd.f32 1.0, %v1678_v35  ;;  %v6940_v57 = vpack.c.bf16 %v1800_v3, %v1799_v18 }
 0x194   : > { %v7415_v45 = vpop.eup %7414  ;;  %v1686_v43 = vmul.f32 0.6931472, %v7413_v6  ;;  %v1674_v19 = vsel %vm8664_vm9, %v1671_v17, %v1668_v9  ;;  %v1585_v38 = vand.u32 2147483647, %v8690_v44  ;;  %v1785_v37 = vadd.f32 %v1665_v32, %v1529_v54 }
 0x195   : > { %v8696_v25 = vpop.eup %7416  ;;  %v1602_v1 = vsub.f32 0.0, %v1586_v22  ;;  %v1677_v11 = vmul.f32 0.6931472, %v7415_v45  ;;  %6941 = vmatprep.subr.bf16.mxu0 %v6940_v57  ;;  %7232 = vmatprep.subr.bf16.mxu1 %v6940_v57  ;;  %v1706_v31 = vadd.f32 1.0, %v1705_v58  ;;  %vm8713_vm13 = vcmp.lt.f32.partialorder %v1690_v41, 0.0004427343 }
 0x196   : > { %v1693_v62 = vadd.f32 1.0, %v8696_v25  ;;  %v8705_v61 = vpop.eup %7418  ;;  %v6348_v26 = vpop.f32.mrb[12].mxu1  ;;  %6943 = vmatpush3.bf16.msra.mxu0 %v6940_v57  ;;  %7240 = vmatpush3.bf16.msra.mxu1 %v6940_v57  ;;  %v1680_v63 = vmul.f32 %v8632_v8, %v1679_v21  ;;  %v1786_v23 = vadd.f32 %v1674_v19, %v1530_v48  ;;  %v1692_v51 = vsel %vm8713_vm13, %v1689_v12, %v1686_v43 }
 0x197   : > { %v1629_v34 = vmul.f32 1.442695, %v1602_v1  ;;  %v1720_v15 = vadd.f32 1.0, %v8705_v61  ;;  %v1508_v50 = vpop.f32.mrb[13].mxu1  ;;  %v7421_v54 = vpop.eup %7420  ;;  %v1696_v20 = vmul.f32 -0.5, %v8696_v25  ;;  %v1601_v35 = vsub.f32 0.0, %v1585_v38 }
 0x198   : > { %7424 = vlog2.f32 %v1693_v62  ;;  %v1683_v8 = vsel %vm8718_vm14, %v1680_v63, %v1677_v11  ;;  %v8732_v16 = vadd.f32 %v6348_v26, %v8585_v2  ;;  %v8735_v4 = vadd.f32 %v8585_v2, %v1508_v50  ;;  %v8749_v22 = vpop.eup %7422  ;;  %v8760_v1 = vpop.permute.xlu1 %1928 }
 0x199   : > { %7426 = vpow2.f32 %v1629_v34  ;;  %v1707_v28 = vmul.f32 %v8641_v49, %v1706_v31  ;;  %v1699_v3 = vand.u32 2147483647, %v8696_v25  ;;  %v1801_v9 = vsel %vm1545_vm11, %v8599_v56, %v1785_v37 }
 0x19a   : > { %7428 = vlog2.f32 %v1720_v15  ;;  %v6351_v48 = vpop.f32.mrb[14].mxu1  ;;  %v1704_v45 = vmul.f32 0.6931472, %v7421_v54  ;;  %v1627_v17 = vmul.f32 1.442695, %v1601_v35  ;;  %v1788_v27 = vadd.f32 %v1692_v51, %v1532_v40 }
 0x19b   : > { %v1518_v6 = vpop.f32.mrb[15].mxu1  ;;  %v1588_v41 = vand.u32 2147483647, %v8732_v16  ;;  %v8753_v49 = vadd.f32 %v6351_v48, %v8585_v2  ;;  %v1787_v58 = vadd.f32 %v1683_v8, %v1531_v60  ;;  %v1697_v32 = vadd.f32 1.0, %v1696_v20 }
 0x19c   : > { %v1711_v21 = vadd.f32 1.0, %v8749_v22  ;;  %7430 = vpow2.f32 %v1627_v17  ;;  %v1587_v57 = vand.u32 2147483647, %v8735_v4  ;;  %v1802_v43 = vsel %vm1546_vm12, %v8596_v55, %v1786_v23  ;;  %v8792_v51 = vpop.permute.xlu1 %1931 }
 0x19d   : > { %v1604_v56 = vsub.f32 0.0, %v1588_v41  ;;  %vm8767_vm5 = vcmp.lt.f32.partialorder %v1699_v3, 0.0004427343  ;;  %v1723_v40 = vmul.f32 -0.5, %v8705_v61  ;;  %v1726_v60 = vand.u32 2147483647, %v8705_v61 }
 0x19e   : > { %7432 = vlog2.f32 %v1711_v21  ;;  %v1710_v0 = vsel %vm8740_vm4, %v1707_v28, %v1704_v45  ;;  %v1603_v19 = vsub.f32 0.0, %v1587_v57  ;;  %v1590_v11 = vand.u32 2147483647, %v8753_v49 }
 0x19f   : > { %v1633_v62 = vmul.f32 1.442695, %v1604_v56  ;;  %v1698_v38 = vmul.f32 %v8696_v25, %v1697_v32  ;;  %v1714_v55 = vmul.f32 -0.5, %v8749_v22  ;;  %v8779_v37 = vadd.f32 %v8585_v2, %v1518_v6 }
 0x1a0   : > { %v6944_v31 = vpack.c.bf16 %v1802_v43, %v1801_v9  ;;  %v1631_v33 = vmul.f32 1.442695, %v1603_v19  ;;  %v1606_v63 = vsub.f32 0.0, %v1590_v11  ;;  %v1790_v50 = vadd.f32 %v1710_v0, %v1534_v7  ;;  %v8824_v56 = vpop.permute.xlu1 %1937 }
 0x1a1   : > { %7434 = vpow2.f32 %v1633_v62  ;;  %v1724_v54 = vadd.f32 1.0, %v1723_v40  ;;  %v1803_v2 = vsel %vm1547_vm15, %v8607_v14, %v1787_v58  ;;  %v1804_v7 = vsel %vm1548_vm3, %v8604_v13, %v1788_v27 }
 0x1a2   : > { %v7425_v34 = vpop.eup %7424  ;;  %6945 = vmatprep.subr.bf16.mxu0 %v6944_v31  ;;  %7233 = vmatprep.subr.bf16.mxu1 %v6944_v31  ;;  %7436 = vpow2.f32 %v1631_v33  ;;  %v1637_v20 = vmul.f32 1.442695, %v1606_v63  ;;  %vm1549_vm7 = vcmp.ne.f32.partialorder %v8616_v30, %v8616_v30  ;;  %v1715_v35 = vadd.f32 1.0, %v1714_v55 }
 0x1a3   : > { %v8781_v15 = vpop.eup %7426  ;;  %v1695_v26 = vmul.f32 0.6931472, %v7425_v34  ;;  %6947 = vmatpush3.bf16.msra.mxu0 %v6944_v31  ;;  %7241 = vmatpush3.bf16.msra.mxu1 %v6944_v31  ;;  %v1589_v48 = vand.u32 2147483647, %v8779_v37  ;;  %v1725_v28 = vmul.f32 %v8705_v61, %v1724_v54  ;;  %v1717_v18 = vand.u32 2147483647, %v8749_v22 }
 0x1a4   : > { %v7429_v46 = vpop.eup %7428  ;;  %v1738_v23 = vadd.f32 1.0, %v8781_v15  ;;  %v6948_v13 = vpack.c.bf16 %v1804_v7, %v1803_v2  ;;  %vm8810_vm8 = vcmp.lt.f32.partialorder %v1726_v60, 0.0004427343  ;;  %v1741_v9 = vmul.f32 -0.5, %v8781_v15  ;;  %v8842_v33 = vpop.permute.xlu1 %1943 }
 0x1a5   : > { %v1701_v25 = vsel %vm8767_vm5, %v1698_v38, %v1695_v26  ;;  %v1722_v8 = vmul.f32 0.6931472, %v7429_v46  ;;  %v1605_v45 = vsub.f32 0.0, %v1589_v48  ;;  %v1806_v17 = vsel %vm1550_vm6, %v8612_v29, %v1790_v50 }
 0x1a6   : > { %v1789_v14 = vadd.f32 %v1701_v25, %v1533_v36  ;;  %7438 = vlog2.f32 %v1738_v23  ;;  %v8808_v6 = vpop.eup %7430  ;;  %6949 = vmatprep.subr.bf16.mxu0 %v6948_v13  ;;  %7234 = vmatprep.subr.bf16.mxu1 %v6948_v13  ;;  %v1536_v58 = vmax.f32 %v8620_v59, 0.0  ;;  %v1716_v21 = vmul.f32 %v8749_v22, %v1715_v35 }
 0x1a7   : > { %7440 = vpow2.f32 %v1637_v20  ;;  %v1728_v41 = vsel %vm8810_vm8, %v1725_v28, %v1722_v8  ;;  %v1635_v57 = vmul.f32 1.442695, %v1605_v45  ;;  %6951 = vmatpush3.bf16.msra.mxu0 %v6948_v13  ;;  %7242 = vmatpush3.bf16.msra.mxu1 %v6948_v13  ;;  %v1535_v29 = vmax.f32 %v8652_v52, 0.0 }
 0x1a8   : > { %v1805_v3 = vsel %vm1549_vm7, %v8616_v30, %v1789_v14  ;;  %v7433_v61 = vpop.eup %7432  ;;  %v1729_v30 = vadd.f32 1.0, %v8808_v6  ;;  %vm1718_vm9 = vcmp.lt.f32.partialorder %v1717_v18, 0.0004427343  ;;  %v1792_v12 = vadd.f32 %v1728_v41, %v1536_v58  ;;  %v8855_v18 = vpop.permute.xlu1 %1853 }
 0x1a9   : > { %v6952_v27 = vpack.c.bf16 %v1806_v17, %v1805_v3  ;;  %v1713_v32 = vmul.f32 0.6931472, %v7433_v61  ;;  %v1742_v60 = vadd.f32 1.0, %v1741_v9  ;;  %v1744_v22 = vand.u32 2147483647, %v8781_v15  ;;  %v8865_v41 = vpop.permute.xlu0 %1856 }
 0x1aa   : > { %7442 = vlog2.f32 %v1729_v30  ;;  %v1732_v11 = vmul.f32 -0.5, %v8808_v6  ;;  %vm1552_vm10 = vcmp.ne.f32.partialorder %v8620_v59, %v8620_v59  ;;  %vm1551_vm11 = vcmp.ne.f32.partialorder %v8652_v52, %v8652_v52 }
 0x1ab   : > { %6953 = vmatprep.subr.bf16.mxu0 %v6952_v27  ;;  %7235 = vmatprep.subr.bf16.mxu1 %v6952_v27  ;;  %v8827_v43 = vpop.eup %7434  ;;  %v1719_v40 = vsel %vm1718_vm9, %v1716_v21, %v1713_v32  ;;  %7444 = vpow2.f32 %v1635_v57  ;;  %v1743_v26 = vmul.f32 %v8781_v15, %v1742_v60  ;;  %v1808_v46 = vsel %vm1552_vm10, %v8620_v59, %v1792_v12 }
 0x1ac   : > { %v1791_v0 = vadd.f32 %v1719_v40, %v1535_v29  ;;  %v1756_v62 = vadd.f32 1.0, %v8827_v43  ;;  %v8831_v19 = vpop.eup %7436  ;;  %6955 = vmatpush3.bf16.msra.mxu0 %v6952_v27  ;;  %7243 = vmatpush3.bf16.msra.mxu1 %v6952_v27  ;;  %vm1745_vm12 = vcmp.lt.f32.partialorder %v1744_v22, 0.0004427343  ;;  %v1538_v54 = vmax.f32 %v8673_v47, 0.0  ;;  %v8877_v22 = vpop.permute.xlu1 %1859 }
 0x1ad   : > { %v1747_v38 = vadd.f32 1.0, %v8831_v19  ;;  %v1733_v2 = vadd.f32 1.0, %v1732_v11  ;;  %v1759_v25 = vmul.f32 -0.5, %v8827_v43  ;;  %v1735_v20 = vand.u32 2147483647, %v8808_v6 }
 0x1ae   : > { %7446 = vlog2.f32 %v1756_v62  ;;  %v1807_v63 = vsel %vm1551_vm11, %v8652_v52, %v1791_v0  ;;  %v1750_v15 = vmul.f32 -0.5, %v8831_v19  ;;  %v1537_v59 = vmax.f32 %v8690_v44, 0.0 }
 0x1af   : > { %7448 = vlog2.f32 %v1747_v38  ;;  %v6956_v7 = vpack.c.bf16 %v1808_v46, %v1807_v63  ;;  %v1734_v48 = vmul.f32 %v8808_v6, %v1733_v2  ;;  %v1760_v28 = vadd.f32 1.0, %v1759_v25 }
 0x1b0   : > { %v7439_v34 = vpop.eup %7438  ;;  %vm1736_vm13 = vcmp.lt.f32.partialorder %v1735_v20, 0.0004427343  ;;  %v1762_v3 = vand.u32 2147483647, %v8827_v43  ;;  %v1751_v36 = vadd.f32 1.0, %v1750_v15  ;;  %vm1554_vm14 = vcmp.ne.f32.partialorder %v8673_v47, %v8673_v47  ;;  %v1866_v2 = vpop.permute.xlu1 %1865 }
 0x1b1   : > { %v8839_v55 = vpop.eup %7440  ;;  %v1740_v31 = vmul.f32 0.6931472, %v7439_v34  ;;  %6957 = vmatprep.subr.bf16.mxu0 %v6956_v7  ;;  %7236 = vmatprep.subr.bf16.mxu1 %v6956_v7  ;;  %vm1553_vm15 = vcmp.ne.f32.partialorder %v8690_v44, %v8690_v44  ;;  %v1753_v61 = vand.u32 2147483647, %v8831_v19  ;;  %v1540_v27 = vmax.f32 %v8732_v16, 0.0 }
 0x1b2   : > { %v1774_v50 = vadd.f32 1.0, %v8839_v55  ;;  %v1777_v13 = vmul.f32 -0.5, %v8839_v55  ;;  %6959 = vmatpush3.bf16.msra.mxu0 %v6956_v7  ;;  %7244 = vmatpush3.bf16.msra.mxu1 %v6956_v7  ;;  %v1761_v32 = vmul.f32 %v8827_v43, %v1760_v28  ;;  %vm1763_vm3 = vcmp.lt.f32.partialorder %v1762_v3, 0.0004427343 }
 0x1b3   : > { %v1746_v23 = vsel %vm1745_vm12, %v1743_v26, %v1740_v31  ;;  %v1752_v29 = vmul.f32 %v8831_v19, %v1751_v36  ;;  %v1780_v12 = vand.u32 2147483647, %v8839_v55  ;;  %v1539_v34 = vmax.f32 %v8735_v4, 0.0  ;;  %v1863_v26 = vpop.permute.xlu0 %1862 }
 0x1b4   : > { %7450 = vlog2.f32 %v1774_v50  ;;  %v7443_v14 = vpop.eup %7442  ;;  %v1794_v52 = vadd.f32 %v1746_v23, %v1538_v54  ;;  %v1778_v21 = vadd.f32 1.0, %v1777_v13  ;;  %vm1754_vm4 = vcmp.lt.f32.partialorder %v1753_v61, 0.0004427343  ;;  %v1872_v28 = vpop.permute.xlu1 %1871  ;;  %v2271_v61 = vld [vmem:[%s8935_s23 + $0x28] sm:$0xff] }
 0x1b5   : > { %v8852_v8 = vpop.eup %7444  ;;  %v1731_v35 = vmul.f32 0.6931472, %v7443_v14  ;;  %vm1556_vm5 = vcmp.ne.f32.partialorder %v8732_v16, %v8732_v16  ;;  %vm1781_vm6 = vcmp.lt.f32.partialorder %v1780_v12, 0.0004427343  ;;  %vm1555_vm7 = vcmp.ne.f32.partialorder %v8735_v4, %v8735_v4 }
 0x1b6   : > { %v1765_v9 = vadd.f32 1.0, %v8852_v8  ;;  %v1810_v30 = vsel %vm1554_vm14, %v8673_v47, %v1794_v52  ;;  %v1768_v47 = vmul.f32 -0.5, %v8852_v8  ;;  %v1779_v31 = vmul.f32 %v8839_v55, %v1778_v21  ;;  %v2273_v21 = vld [vmem:[%s8935_s23 + $0x38] sm:$0xff] }
 0x1b7   : > { %v1737_v6 = vsel %vm1736_vm13, %v1734_v48, %v1731_v35  ;;  %v1542_v54 = vmax.f32 %v8753_v49, 0.0  ;;  %v1771_v23 = vand.u32 2147483647, %v8852_v8  ;;  %v1869_v52 = vpop.permute.xlu0 %1868  ;;  %vm1558_vm9 = vcmp.ne.f32.partialorder %v8753_v49, %v8753_v49  ;;  %v2299_v48 = vld [vmem:[%s11360_s4 + $0x8] sm:$0xff] }
 0x1b8   : > { %v7447_v45 = vpop.eup %7446  ;;  %v1793_v17 = vadd.f32 %v1737_v6, %v1537_v59  ;;  %7452 = vlog2.f32 %v1765_v9  ;;  %v1769_v50 = vadd.f32 1.0, %v1768_v47  ;;  %vm1557_vm10 = vcmp.ne.f32.partialorder %v8779_v37, %v8779_v37  ;;  %v2269_v6 = vld [vmem:[%s8935_s23 + $0x18] sm:$0xff] }
 0x1b9   : > { %v1758_v58 = vmul.f32 0.6931472, %v7447_v45  ;;  %v7449_v57 = vpop.eup %7448  ;;  %vm1772_vm8 = vcmp.lt.f32.partialorder %v1771_v23, 0.0004427343  ;;  %vm1946_vm11 = vcmp.eq.s32.totalorder %v8855_v18, %v8552_v53  ;;  %vm1971_vm12 = vcmp.eq.s32.totalorder %v8760_v1, %v8552_v53  ;;  %v2268_v18 = vld [vmem:[%s8935_s23 + $0x10] sm:$0xff]  ;;  %v2270_v45 = vld [vmem:[%s8935_s23 + $0x20] sm:$0xff] }
 0x1ba   : > { %v1809_v40 = vsel %vm1553_vm15, %v8690_v44, %v1793_v17  ;;  %v1749_v0 = vmul.f32 0.6931472, %v7449_v57  ;;  %v1770_v14 = vmul.f32 %v8852_v8, %v1769_v50  ;;  %v2298_v8 = vld [vmem:[%s11360_s4] sm:$0xff]  ;;  %vm1947_vm13 = vcmp.eq.s32.totalorder %v8865_v41, %v8552_v53 }
 0x1bb   : > { %v1764_v60 = vsel %vm1763_vm3, %v1761_v32, %v1758_v58  ;;  %v6960_v62 = vpack.c.bf16 %v1810_v30, %v1809_v40  ;;  %v6972_v36 = vpack.c.bf16 %v2299_v48, %v2298_v8  ;;  %v1875_v9 = vpop.permute.xlu0 %1874  ;;  %vm1972_vm14 = vcmp.eq.s32.totalorder %v8792_v51, %v8552_v53  ;;  %v2266_v51 = vld [vmem:[%s8935_s23] sm:$0xff]  ;;  %v2272_v30 = vld [vmem:[%s8935_s23 + $0x30] sm:$0xff]  ;;  %v2291_v48 = vld [vmem:[%s8935_s23 + $0xc8] sm:$0xff] }
 0x1bc   : > { %v1796_v11 = vadd.f32 %v1764_v60, %v1540_v27  ;;  %v1755_v19 = vsel %vm1754_vm4, %v1752_v29, %v1749_v0  ;;  %vm1948_vm15 = vcmp.eq.s32.totalorder %v8877_v22, %v8552_v53  ;;  %vm1949_vm3 = vcmp.eq.s32.totalorder %v1863_v26, %v8552_v53  ;;  %v8973_v27 = vpop.f32.mrb[0].mxu0  ;;  %v2274_v57 = vld [vmem:[%s8935_s23 + $0x40] sm:$0xff]  ;;  %v2275_v60 = vld [vmem:[%s8935_s23 + $0x48] sm:$0xff]  ;;  %v2276_v0 = vld [vmem:[%s8935_s23 + $0x50] sm:$0xff] }
 0x1bd   : > { %6961 = vmatprep.subr.bf16.mxu0 %v6960_v62  ;;  %7237 = vmatprep.subr.bf16.mxu1 %v6960_v62  ;;  %v1795_v44 = vadd.f32 %v1755_v19, %v1539_v34  ;;  %vm1950_vm4 = vcmp.eq.s32.totalorder %v1866_v2, %v8552_v53  ;;  %11454 = vst [vmem:[#allocation20_spill] sm:$0xff] %v8973_v27  ;;  %v8978_v58 = vpop.f32.mrb[1].mxu0  ;;  %v2278_v34 = vld [vmem:[%s8935_s23 + $0x60] sm:$0xff]  ;;  %v2280_v26 = vld [vmem:[%s8935_s23 + $0x70] sm:$0xff] }
 0x1be   : > { %v7451_v43 = vpop.eup %7450  ;;  %6963 = vmatpush3.bf16.msra.mxu0 %v6960_v62  ;;  %7245 = vmatpush3.bf16.msra.mxu1 %v6960_v62  ;;  %v1812_v63 = vsel %vm1556_vm5, %v8732_v16, %v1796_v11  ;;  %v1541_v16 = vmax.f32 %v8779_v37, 0.0  ;;  %vm1951_vm5 = vcmp.eq.s32.totalorder %v1869_v52, %v8552_v53  ;;  %11455 = vst [vmem:[#allocation21_spill] sm:$0xff] %v8978_v58  ;;  %v8985_v29 = vpop.f32.mrb[2].mxu0  ;;  %v2282_v23 = vld [vmem:[%s8935_s23 + $0x80] sm:$0xff] }
 0x1bf   : > { %v1776_v38 = vmul.f32 0.6931472, %v7451_v43  ;;  %v1811_v55 = vsel %vm1555_vm7, %v8735_v4, %v1795_v44  ;;  %vm1952_vm7 = vcmp.eq.s32.totalorder %v1872_v28, %v8552_v53  ;;  %11456 = vst [vmem:[#allocation22_spill] sm:$0xff] %v8985_v29  ;;  %v8990_v40 = vpop.f32.mrb[3].mxu0  ;;  %v2277_v43 = vld [vmem:[%s8935_s23 + $0x58] sm:$0xff]  ;;  %v2279_v44 = vld [vmem:[%s8935_s23 + $0x68] sm:$0xff] }
 0x1c0   : > { %v6964_v25 = vpack.c.bf16 %v1812_v63, %v1811_v55  ;;  %11457 = vst [vmem:[#allocation23_spill] sm:$0xff] %v8990_v40  ;;  %v8997_v22 = vpop.f32.mrb[4].mxu0  ;;  %v2290_v8 = vld [vmem:[%s8935_s23 + $0xc0] sm:$0xff]  ;;  %v2292_v28 = vld [vmem:[%s8935_s23 + $0xd0] sm:$0xff] }
 0x1c1   : > { %v1782_v46 = vsel %vm1781_vm6, %v1779_v31, %v1776_v38  ;;  %vm1976_vm6 = vcmp.eq.s32.totalorder %v8842_v33, %v8552_v53  ;;  %11458 = vst [vmem:[#allocation24_spill] sm:$0xff] %v8997_v22  ;;  %v9002_v62 = vpop.f32.mrb[5].mxu0 }
 0x1c2   : > { %v7453_v20 = vpop.eup %7452  ;;  %v1798_v15 = vadd.f32 %v1782_v46, %v1542_v54  ;;  %6965 = vmatprep.subr.bf16.mxu0 %v6964_v25  ;;  %7238 = vmatprep.subr.bf16.mxu1 %v6964_v25  ;;  %11459 = vst [vmem:[#allocation25_spill] sm:$0xff] %v9002_v62  ;;  %v9009_v19 = vpop.f32.mrb[6].mxu0  ;;  %v2281_v54 = vld [vmem:[%s8935_s23 + $0x78] sm:$0xff] }
 0x1c3   : > { %v1767_v7 = vmul.f32 0.6931472, %v7453_v20  ;;  %6967 = vmatpush3.bf16.msra.mxu0 %v6964_v25  ;;  %7246 = vmatpush3.bf16.msra.mxu1 %v6964_v25  ;;  %11460 = vst [vmem:[#allocation26_spill] sm:$0xff] %v9009_v19  ;;  %v9014_v38 = vpop.f32.mrb[7].mxu0  ;;  %v2283_v25 = vld [vmem:[%s8935_s23 + $0x88] sm:$0xff]  ;;  %v2284_v20 = vld [vmem:[%s8935_s23 + $0x90] sm:$0xff] }
 0x1c4   : > { %v1814_v35 = vsel %vm1558_vm9, %v8753_v49, %v1798_v15  ;;  %v1878_v49 = vpop.permute.xlu1 %1877  ;;  %11461 = vst [vmem:[#allocation27_spill] sm:$0xff] %v9014_v38  ;;  %v9021_v63 = vpop.f32.mrb[8].mxu0 }
 0x1c5   : > { %v1773_v4 = vsel %vm1772_vm8, %v1770_v14, %v1767_v7  ;;  %vm1953_vm8 = vcmp.eq.s32.totalorder %v1875_v9, %v8552_v53  ;;  %11462 = vst [vmem:[#allocation28_spill] sm:$0xff] %v9021_v63  ;;  %v9026_v50 = vpop.f32.mrb[9].mxu0  ;;  %v2285_v7 = vld [vmem:[%s8935_s23 + $0x98] sm:$0xff]  ;;  %v2286_v14 = vld [vmem:[%s8935_s23 + $0xa0] sm:$0xff]  ;;  %v2296_v9 = vld [vmem:[%s8935_s23 + $0xf0] sm:$0xff] }
 0x1c6   : > { %v1797_v59 = vadd.f32 %v1773_v4, %v1541_v16  ;;  %11463 = vst [vmem:[#allocation29_spill] sm:$0xff] %v9026_v50  ;;  %v9033_v55 = vpop.f32.mrb[10].mxu0  ;;  %v2287_v4 = vld [vmem:[%s8935_s23 + $0xa8] sm:$0xff]  ;;  %v2947_v50 = vld [vmem:[%s11365_s9 + $0x50] sm:$0xff] }
 0x1c7   : > { %11464 = vst [vmem:[#allocation30_spill] sm:$0xff] %v9033_v55  ;;  %v9037_v2 = vpop.f32.mrb[11].mxu0 }
 0x1c8   : > { %v1813_v13 = vsel %vm1557_vm10, %v8779_v37, %v1797_v59  ;;  %v1881_v37 = vpop.permute.xlu0 %1880  ;;  %v1884_v1 = vpop.permute.xlu1 %1883  ;;  %11465 = vst [vmem:[#allocation31_spill] sm:$0xff] %v9037_v2  ;;  %v2288_v59 = vld [vmem:[%s8935_s23 + $0xb0] sm:$0xff]  ;;  %v2945_v2 = vld [vmem:[%s11365_s9 + $0x40] sm:$0xff] }
 0x1c9   : > { %v6968_v3 = vpack.c.bf16 %v1814_v35, %v1813_v13  ;;  %vm1955_vm9 = vcmp.eq.s32.totalorder %v1881_v37, %v8552_v53  ;;  %vm1956_vm10 = vcmp.eq.s32.totalorder %v1884_v1, %v8552_v53  ;;  %v9042_v15 = vpop.f32.mrb[12].mxu0  ;;  %v2289_v35 = vld [vmem:[%s8935_s23 + $0xb8] sm:$0xff]  ;;  %v9079_v37 = vshrl.u32 %v1815_v5, 7 }
 0x1ca   : > { %11466 = vst [vmem:[#allocation32_spill] sm:$0xff] %v9042_v15  ;;  %v2293_v13 = vld [vmem:[%s8935_s23 + $0xd8] sm:$0xff] }
 0x1cb   : > { %6969 = vmatprep.subr.bf16.mxu0 %v6968_v3  ;;  %7239 = vmatprep.subr.bf16.mxu1 %v6968_v3  ;;  %v2678_v1 = vsub.s32 1, %v9079_v37  ;;  %v9097_v5 = vadd.s32 8, %v9079_v37 }
 0x1cc   : > { %6971 = vmatpush3.bf16.msra.mxu0 %v6968_v3  ;;  %7247 = vmatpush3.bf16.msra.mxu1 %v6968_v3  ;;  %v1887_v42 = vpop.permute.xlu0 %1886  ;;  %v1890_v24 = vpop.permute.xlu1 %1889  ;;  %v2294_v3 = vld [vmem:[%s8935_s23 + $0xe0] sm:$0xff] }
 0x1cd   : > { %6973 = vmatprep.subr.bf16.mxu1 %v6972_v36 }
 0x1cf   : > { %6385 = vmatmul.mubr.msk.f32.vlgmr.msra.gmra.mrb[16].mxu0 %vm1946_vm11, %v11387_v10  ;;  %6421 = vmatmul.mubr.msk.f32.vlgmr.msra.gmra.mrb[16].mxu1 %vm1970_vm0, %v11387_v10  ;;  %vm1974_vm0 = vcmp.eq.s32.totalorder %v8824_v56, %v8552_v53  ;;  %vm1957_vm11 = vcmp.eq.s32.totalorder %v1887_v42, %v8552_v53  ;;  %v2671_v42 = vld [vmem:[%s592_s28] sm:$0x3] }
 0x1d0   : > { %6387 = vmatprep.mubr.msk.f32.mxu0 %vm1947_vm13, %v11387_v10  ;;  %6423 = vmatprep.mubr.msk.f32.mxu1 %vm1971_vm12, %v11387_v10  ;;  %v1893_v56 = vpop.permute.xlu0 %1892  ;;  %v1896_v33 = vpop.permute.xlu1 %1895  ;;  %vm1958_vm12 = vcmp.eq.s32.totalorder %v1890_v24, %v8552_v53  ;;  %v2674_v24 = vsub.s32 0, %v9079_v37 }
 0x1d1   : > { %6975 = vmatpush3.bf16.msra.mxu1 %v6972_v36  ;;  %vm1959_vm13 = vcmp.eq.s32.totalorder %v1893_v56, %v8552_v53  ;;  %v2295_v36 = vld [vmem:[%s8935_s23 + $0xe8] sm:$0xff] }
 0x1d2   : > { %v9089_v56 = vrot.slane %v2671_v42, %v2674_v24 }
 0x1d3   : > { %6388 = vmatmul.mubr.msk.f32.gmra.mrb[18].mxu0 %vm1948_vm15, %v11387_v10  ;;  %6424 = vmatmul.mubr.msk.f32.gmra.mrb[18].mxu1 %vm1972_vm14, %v11387_v10  ;;  %vm1960_vm14 = vcmp.eq.s32.totalorder %v1896_v33, %v8552_v53  ;;  %v9118_v33 = vadd.s32 32, %v9079_v37 }
 0x1d4   : > { %6390 = vmatprep.mubr.msk.f32.mxu0 %vm1949_vm3, %v11387_v10  ;;  %6426 = vmatprep.mubr.msk.f32.mxu1 %vm1973_vm1, %v11387_v10  ;;  %vm2300_vm1 = vcmask 130048   ;;  %v1899_v17 = vpop.permute.xlu0 %1898  ;;  %v1902_v41 = vpop.permute.xlu1 %1901 }
 0x1d5   : > { %vm1961_vm15 = vcmp.eq.s32.totalorder %v1899_v17, %v8552_v53  ;;  %vm1962_vm3 = vcmp.eq.s32.totalorder %v1902_v41, %v8552_v53  ;;  %v9139_v17 = vadd.s32 56, %v9079_v37  ;;  %v9153_v41 = vadd.s32 72, %v9079_v37 }
 0x1d7   : > { %6391 = vmatmul.mubr.msk.f32.gmra.mrb[20].mxu0 %vm1950_vm4, %v11387_v10  ;;  %6427 = vmatmul.mubr.msk.f32.gmra.mrb[20].mxu1 %vm1974_vm0, %v11387_v10 }
 0x1d8   : > { %6393 = vmatprep.mubr.msk.f32.mxu0 %vm1951_vm5, %v11387_v10  ;;  %6429 = vmatprep.mubr.msk.f32.mxu1 %vm1975_vm2, %v11387_v10  ;;  %vm1954_vm2 = vcmp.eq.s32.totalorder %v1878_v49, %v8552_v53  ;;  %v1905_v32 = vpop.permute.xlu0 %1904  ;;  %v1908_v12 = vpop.permute.xlu1 %1907  ;;  %v2297_v49 = vld [vmem:[%s8935_s23 + $0xf8] sm:$0xff]  ;;  %s5538_s23 = sshll.u32 %s574_s30, 7 }
 0x1d9   : > { %vm1963_vm0 = vcmp.eq.s32.totalorder %v1905_v32, %v8552_v53  ;;  %vm1964_vm4 = vcmp.eq.s32.totalorder %v1908_v12, %v8552_v53  ;;  %v9167_v32 = vadd.s32 88, %v9079_v37  ;;  %s11286_s28 = scalar_lea.vmem [#allocation8], %s5538_s23  ;;  %s7862_s23 = sshll.u32 %s7937_s15, 4  ;;  %s7863_s23 = int_to_ptr.vmem [resolvable:$false] %s7862_s23 }
 0x1da   : > { %s5399_s25 = sshll.u32 %s11286_s28, 4  ;;  %s7864_s24 = scalar_lea.vmem %s7863_s23, 4096  ;;  %s11309_s25 = int_to_ptr.vmem [resolvable:$true] %s5399_s25 }
 0x1db   : > { %6394 = vmatmul.mubr.msk.f32.gmra.mrb[22].mxu0 %vm1952_vm7, %v11387_v10  ;;  %6430 = vmatmul.mubr.msk.f32.gmra.mrb[22].mxu1 %vm1976_vm6, %v11387_v10  ;;  %s7858_s22 = scalar_lea.vmem %s11309_s25, 2048  ;;  %p7865_p6 = scmp.lt.s32.totalorder %s11309_s25, %s7863_s23 }
 0x1dc   : > { %6396 = vmatprep.mubr.msk.f32.mxu0 %vm1953_vm8, %v11387_v10  ;;  %6436 = vmatprep.mubr.msk.f32.mxu1 %vm2300_vm1, %v2266_v51  ;;  %v1911_v47 = vpop.permute.xlu0 %1910  ;;  %v1914_v11 = vpop.permute.xlu1 %1913  ;;  %v9087_v51 = vrot.slane %v2671_v42, %v2678_v1  ;;  %v2940_v1 = vld [vmem:[%s11365_s9 + $0x18] sm:$0xff]  ;;  %p7859_p8 = scmp.ne.s32.totalorder %s11309_s25, %s7858_s22  ;;  %p7866_p9 = scmp.lt.s32.totalorder %s7864_s24, %s7858_s22 }
 0x1dd   : > { %vm1965_vm5 = vcmp.eq.s32.totalorder %v1911_v47, %v8552_v53  ;;  %vm1966_vm6 = vcmp.eq.s32.totalorder %v1914_v11, %v8552_v53 }
 0x1de   : > { %p7867_p2 = por %p7866_p9, %p7865_p6 }
 0x1df   : > { %6397 = vmatmul.mubr.msk.f32.gmra.mrb[24].mxu0 %vm1954_vm2, %v11387_v10  ;;  %6437 = vmatmul.mubr.msk.f32.vlgmr.msra.gmra.mrb[24].mxu1 %vm2300_vm1, %v2267_v39  ;;  %vm2680_vm2 = vcmp.eq.s32.totalorder %v9089_v56, %v9079_v37  ;;  %v9104_v39 = vadd.s32 16, %v9079_v37 }
 0x1e0   : > { %6399 = vmatprep.mubr.msk.f32.mxu0 %vm1955_vm9, %v11387_v10  ;;  %6439 = vmatprep.mubr.msk.f32.mxu1 %vm2300_vm1, %v2268_v18  ;;  %v1917_v31 = vpop.permute.xlu0 %1916  ;;  %v1920_v46 = vpop.permute.xlu1 %1919  ;;  %vm2683_vm9 = vcmp.eq.s32.totalorder %v9087_v51, %v9097_v5  ;;  %v9111_v18 = vadd.s32 24, %v9079_v37 }
 0x1e1   : > { %vm1967_vm7 = vcmp.eq.s32.totalorder %v1917_v31, %v8552_v53  ;;  %vm1968_vm8 = vcmp.eq.s32.totalorder %v1920_v46, %v8552_v53  ;;  %v9045_v53 = vpop.f32.mrb[13].mxu0  ;;  %v9189_v31 = vadd.s32 104, %v9079_v37 }
 0x1e2   : > { %11467 = vst [vmem:[#allocation33_spill] sm:$0xff] %v9045_v53  ;;  %v9050_v16 = vpop.f32.mrb[14].mxu0  ;;  %v2943_v53 = vld [vmem:[%s11365_s9 + $0x30] sm:$0xff] }
 0x1e3   : > { %6400 = vmatmul.mubr.msk.f32.gmra.mrb[26].mxu0 %vm1956_vm10, %v11387_v10  ;;  %6440 = vmatmul.mubr.msk.f32.gmra.mrb[26].mxu1 %vm2300_vm1, %v2269_v6  ;;  %11468 = vst [vmem:[#allocation34_spill] sm:$0xff] %v9050_v16  ;;  %v9053_v52 = vpop.f32.mrb[15].mxu0  ;;  %vm2682_vm10 = vcmp.eq.s32.totalorder %v9089_v56, %v9097_v5  ;;  %v9125_v6 = vadd.s32 40, %v9079_v37  ;;  %v2949_v5 = vld [vmem:[%s11365_s9 + $0x60] sm:$0xff] }
 0x1e4   : > { %6402 = vmatprep.mubr.msk.f32.mxu0 %vm1957_vm11, %v11387_v10  ;;  %6442 = vmatprep.mubr.msk.f32.mxu1 %vm2300_vm1, %v2270_v45  ;;  %11469 = vst [vmem:[#allocation35_spill] sm:$0xff] %v9053_v52  ;;  %vm2685_vm11 = vcmp.eq.s32.totalorder %v9087_v51, %v9104_v39  ;;  %v9132_v45 = vadd.s32 48, %v9079_v37 }
 0x1e7   : > { %6403 = vmatmul.mubr.msk.f32.gmra.mrb[28].mxu0 %vm1958_vm12, %v11387_v10  ;;  %6443 = vmatmul.mubr.msk.f32.gmra.mrb[28].mxu1 %vm2300_vm1, %v2271_v61  ;;  %vm2684_vm12 = vcmp.eq.s32.totalorder %v9089_v56, %v9104_v39  ;;  %v9146_v61 = vadd.s32 64, %v9079_v37  ;;  %v2950_v39 = vld [vmem:[%s11365_s9 + $0x68] sm:$0xff] }
 0x1e8   : > { %6405 = vmatprep.mubr.msk.f32.mxu0 %vm1959_vm13, %v11387_v10  ;;  %6445 = vmatprep.mubr.msk.f32.mxu1 %vm2300_vm1, %v2272_v30  ;;  %vm2687_vm13 = vcmp.eq.s32.totalorder %v9087_v51, %v9111_v18  ;;  %v9160_v30 = vadd.s32 80, %v9079_v37 }
 0x1eb   : > { %6406 = vmatmul.mubr.msk.f32.gmra.mrb[30].mxu0 %vm1960_vm14, %v11387_v10  ;;  %6446 = vmatmul.mubr.msk.f32.gmra.mrb[30].mxu1 %vm2300_vm1, %v2273_v21  ;;  %vm2686_vm14 = vcmp.eq.s32.totalorder %v9089_v56, %v9111_v18  ;;  %v7032_v18 = vpack.c.bf16 %v2950_v39, %v2949_v5 }
 0x1ec   : > { %6408 = vmatprep.mubr.msk.f32.mxu0 %vm1961_vm15, %v11387_v10  ;;  %6448 = vmatprep.mubr.msk.f32.mxu1 %vm2300_vm1, %v2274_v57  ;;  %vm2689_vm15 = vcmp.eq.s32.totalorder %v9087_v51, %v9118_v33 }
 0x1ef   : > { %6409 = vmatmul.mubr.msk.f32.gmra.mrb[32].mxu0 %vm1962_vm3, %v11387_v10  ;;  %6449 = vmatmul.mubr.msk.f32.gmra.mrb[32].mxu1 %vm2300_vm1, %v2275_v60  ;;  %vm2688_vm3 = vcmp.eq.s32.totalorder %v9089_v56, %v9118_v33 }
 0x1f0   : > { %6411 = vmatprep.mubr.msk.f32.mxu0 %vm1963_vm0, %v11387_v10  ;;  %6451 = vmatprep.mubr.msk.f32.mxu1 %vm2300_vm1, %v2276_v0  ;;  %vm2691_vm0 = vcmp.eq.s32.totalorder %v9087_v51, %v9125_v6  ;;  %v9178_v0 = vadd.s32 96, %v9079_v37 }
 0x1f3   : > { %6412 = vmatmul.mubr.msk.f32.gmra.mrb[34].mxu0 %vm1964_vm4, %v11387_v10  ;;  %6452 = vmatmul.mubr.msk.f32.gmra.mrb[34].mxu1 %vm2300_vm1, %v2277_v43  ;;  %vm2690_vm4 = vcmp.eq.s32.totalorder %v9089_v56, %v9125_v6  ;;  %v9451_v6 = vld [vmem:[%s11362_s6] ss:$0 sm:$0xff] }
 0x1f4   : > { %6414 = vmatprep.mubr.msk.f32.mxu0 %vm1965_vm5, %v11387_v10  ;;  %6454 = vmatprep.mubr.msk.f32.mxu1 %vm2300_vm1, %v2278_v34  ;;  %vm2696_vm5 = vcmp.eq.s32.totalorder %v9089_v56, %v9146_v61 }
 0x1f7   : > { %6415 = vmatmul.mubr.msk.f32.gmra.mrb[36].mxu0 %vm1966_vm6, %v11387_v10  ;;  %6455 = vmatmul.mubr.msk.f32.gmra.mrb[36].mxu1 %vm2300_vm1, %v2279_v44 }
 0x1f8   : > { %6417 = vmatprep.mubr.msk.f32.mxu0 %vm1967_vm7, %v11387_v10  ;;  %6457 = vmatprep.mubr.msk.f32.mxu1 %vm2300_vm1, %v2280_v26 }
 0x1fb   : > { %6418 = vmatmul.mubr.msk.f32.gmra.mrb[38].mxu0 %vm1968_vm8, %v11387_v10  ;;  %6458 = vmatmul.mubr.msk.f32.gmra.mrb[38].mxu1 %vm2300_vm1, %v2281_v54 }
 0x1fc   : > { %6460 = vmatprep.mubr.msk.f32.mxu1 %vm2300_vm1, %v2282_v23  ;;  %v9200_v23 = vadd.s32 112, %v9079_v37 }
 0x1fe   : > { %11470 = vst [vmem:[#allocation36_spill] sm:$0xff] %v9200_v23  ;;  %vm2709_vm8 = vcmp.eq.s32.totalorder %v9087_v51, %v9200_v23 }
 0x1ff   : > { %6461 = vmatmul.mubr.msk.f32.gmra.mrb[40].mxu1 %vm2300_vm1, %v2283_v25 }
 0x200   : > { %6463 = vmatprep.mubr.msk.f32.mxu1 %vm2300_vm1, %v2284_v20 }
 0x203   : > { %6464 = vmatmul.mubr.msk.f32.gmra.mrb[42].mxu1 %vm2300_vm1, %v2285_v7 }
 0x204   : > { %6466 = vmatprep.mubr.msk.f32.mxu1 %vm2300_vm1, %v2286_v14 }
 0x207   : > { %6467 = vmatmul.mubr.msk.f32.gmra.mrb[44].mxu1 %vm2300_vm1, %v2287_v4  ;;  %v9211_v4 = vadd.s32 120, %v9079_v37 }
 0x208   : > { %6469 = vmatprep.mubr.msk.f32.mxu1 %vm2300_vm1, %v2288_v59 }
 0x209   : > { %11471 = vst [vmem:[#allocation37_spill] sm:$0xff] %v9211_v4  ;;  %vm2711_vm6 = vcmp.eq.s32.totalorder %v9087_v51, %v9211_v4  ;;  %vm2710_vm7 = vcmp.eq.s32.totalorder %v9089_v56, %v9211_v4 }
 0x20b   : > { %6470 = vmatmul.mubr.msk.f32.gmra.mrb[46].mxu1 %vm2300_vm1, %v2289_v35 }
 0x20c   : > { %6472 = vmatprep.mubr.msk.f32.mxu1 %vm2300_vm1, %v2290_v8 }
 0x20f   : > { %6473 = vmatmul.mubr.msk.f32.gmra.mrb[48].mxu1 %vm2300_vm1, %v2291_v48 }
 0x210   : > { %6475 = vmatprep.mubr.msk.f32.mxu1 %vm2300_vm1, %v2292_v28 }
 0x213   : > { %6476 = vmatmul.mubr.msk.f32.gmra.mrb[50].mxu1 %vm2300_vm1, %v2293_v13 }
 0x214   : > { %6478 = vmatprep.mubr.msk.f32.mxu1 %vm2300_vm1, %v2294_v3  ;;  %v2937_v3 = vld [vmem:[%s11365_s9] sm:$0xff] }
 0x217   : > { %6479 = vmatmul.mubr.msk.f32.gmra.mrb[52].mxu1 %vm2300_vm1, %v2295_v36  ;;  %v2938_v36 = vld [vmem:[%s11365_s9 + $0x8] sm:$0xff] }
 0x218   : > { %6481 = vmatprep.mubr.msk.f32.mxu1 %vm2300_vm1, %v2296_v9  ;;  %v2939_v9 = vld [vmem:[%s11365_s9 + $0x10] sm:$0xff] }
 0x21b   : > { %6482 = vmatmul.mubr.msk.f32.gmra.mrb[54].mxu1 %vm2300_vm1, %v2297_v49  ;;  %vm2681_vm1 = vcmp.eq.s32.totalorder %v9087_v51, %v9079_v37  ;;  %v7008_v49 = vpack.c.bf16 %v2938_v36, %v2937_v3  ;;  %v11505_v37 = vld [vmem:[#allocation31_spill] sm:$0xff] }
 0x21c   : > { %5676 = vmatprep.mubr.msk.f32.mxu0 %vm2681_vm1, %v11387_v10  ;;  %vm2708_vm1 = vcmp.eq.s32.totalorder %v9089_v56, %v9200_v23  ;;  %v9520_v5 = vadd.f32 %v9451_v6, %v11505_v37 }
 0x21d   : > { %7009 = vmatprep.subr.bf16.mxu1 %v7008_v49 }
 0x21e   : > { %7011 = vmatpush3.bf16.msra.mxu1 %v7008_v49 }
 0x2a2   : > { %v6386_v21 = vpop.f32.mrb[16].mxu0  ;;  %v9169_v57 = vpop.f32.mrb[16].mxu1 }
 0x2a3   : > { %v2107_v12 = vpop.f32.mrb[17].mxu0  ;;  %v9175_v60 = vpop.f32.mrb[17].mxu1 }
 0x2a6   : > { %v6389_v47 = vpop.f32.mrb[18].mxu0  ;;  %v9180_v43 = vpop.f32.mrb[18].mxu1 }
 0x2a7   : > { %v2117_v11 = vpop.f32.mrb[19].mxu0  ;;  %v9186_v34 = vpop.f32.mrb[19].mxu1 }
 0x2aa   : > { %v6392_v44 = vpop.f32.mrb[20].mxu0  ;;  %v9191_v26 = vpop.f32.mrb[20].mxu1 }
 0x2ab   : > { %v2127_v46 = vpop.f32.mrb[21].mxu0  ;;  %v9197_v54 = vpop.f32.mrb[21].mxu1 }
 0x2ae   : > { %v6395_v25 = vpop.f32.mrb[22].mxu0  ;;  %v9202_v20 = vpop.f32.mrb[22].mxu1 }
 0x2af   : > { %v2137_v7 = vpop.f32.mrb[23].mxu0  ;;  %v9208_v14 = vpop.f32.mrb[23].mxu1 }
 0x2b2   : > { %v6398_v59 = vpop.f32.mrb[24].mxu0  ;;  %v6438_v35 = vpop.f32.mrb[24].mxu1 }
 0x2b3   : > { %v9217_v8 = vmul.f32 %v6438_v35, %v6386_v21  ;;  %v2147_v48 = vpop.f32.mrb[25].mxu0  ;;  %v2463_v28 = vpop.f32.mrb[25].mxu1  ;;  %v2941_v35 = vld [vmem:[%s11365_s9 + $0x20] sm:$0xff] }
 0x2b4   : > { %v9219_v13 = vmul.f32 %v2463_v28, %v2107_v12  ;;  %v7012_v12 = vpack.c.bf16 %v2940_v1, %v2939_v9  ;;  %v2942_v28 = vld [vmem:[%s11365_s9 + $0x28] sm:$0xff] }
 0x2b5   : > { %v7016_v42 = vpack.c.bf16 %v2942_v28, %v2941_v35 }
 0x2b6   : > { %v6401_v24 = vpop.f32.mrb[26].mxu0  ;;  %v6441_v21 = vpop.f32.mrb[26].mxu1  ;;  %7013 = vmatprep.subr.bf16.mxu1 %v7012_v12 }
 0x2b7   : > { %v9241_v10 = vmul.f32 %v6441_v21, %v6389_v47  ;;  %v2157_v3 = vpop.f32.mrb[27].mxu0  ;;  %v2473_v36 = vpop.f32.mrb[27].mxu1  ;;  %v2944_v47 = vld [vmem:[%s11365_s9 + $0x38] sm:$0xff]  ;;  %7015 = vmatpush3.bf16.msra.mxu1 %v7012_v12 }
 0x2b8   : > { %v9243_v52 = vmul.f32 %v2473_v36, %v2117_v11  ;;  %7017 = vmatprep.subr.bf16.mxu1 %v7016_v42  ;;  %v7020_v35 = vpack.c.bf16 %v2944_v47, %v2943_v53 }
 0x2ba   : > { %v6404_v1 = vpop.f32.mrb[28].mxu0  ;;  %v6444_v16 = vpop.f32.mrb[28].mxu1 }
 0x2bb   : > { %v9253_v21 = vmul.f32 %v6444_v16, %v6392_v44  ;;  %v2167_v11 = vpop.f32.mrb[29].mxu0  ;;  %v2483_v36 = vpop.f32.mrb[29].mxu1  ;;  %v2946_v16 = vld [vmem:[%s11365_s9 + $0x48] sm:$0xff]  ;;  %7019 = vmatpush3.bf16.msra.mxu1 %v7016_v42 }
 0x2bc   : > { %v9255_v49 = vmul.f32 %v2483_v36, %v2127_v46  ;;  %7021 = vmatprep.subr.bf16.mxu1 %v7020_v35  ;;  %v7024_v53 = vpack.c.bf16 %v2946_v16, %v2945_v2 }
 0x2be   : > { %v6407_v9 = vpop.f32.mrb[30].mxu0  ;;  %v6447_v15 = vpop.f32.mrb[30].mxu1 }
 0x2bf   : > { %v9265_v44 = vmul.f32 %v6447_v15, %v6395_v25  ;;  %v2177_v46 = vpop.f32.mrb[31].mxu0  ;;  %v2493_v36 = vpop.f32.mrb[31].mxu1  ;;  %v2948_v15 = vld [vmem:[%s11365_s9 + $0x58] sm:$0xff]  ;;  %7023 = vmatpush3.bf16.msra.mxu1 %v7020_v35 }
 0x2c0   : > { %v9267_v12 = vmul.f32 %v2493_v36, %v2137_v7  ;;  %7025 = vmatprep.subr.bf16.mxu1 %v7024_v53  ;;  %v7028_v2 = vpack.c.bf16 %v2948_v15, %v2947_v50 }
 0x2c2   : > { %v6410_v28 = vpop.f32.mrb[32].mxu0  ;;  %v6450_v55 = vpop.f32.mrb[32].mxu1 }
 0x2c3   : > { %v9277_v25 = vmul.f32 %v6450_v55, %v6398_v59  ;;  %v2187_v7 = vpop.f32.mrb[33].mxu0  ;;  %v2503_v36 = vpop.f32.mrb[33].mxu1  ;;  %7027 = vmatpush3.bf16.msra.mxu1 %v7024_v53 }
 0x2c4   : > { %v9279_v42 = vmul.f32 %v2503_v36, %v2147_v48  ;;  %7029 = vmatprep.subr.bf16.mxu1 %v7028_v2 }
 0x2c6   : > { %v6994_v16 = vpack.c.bf16 %v9277_v25, %v9279_v42  ;;  %v6413_v47 = vpop.f32.mrb[34].mxu0  ;;  %v6453_v63 = vpop.f32.mrb[34].mxu1 }
 0x2c7   : > { %v9283_v19 = vmul.f32 %v6453_v63, %v6401_v24  ;;  %v2197_v38 = vpop.f32.mrb[35].mxu0  ;;  %v2513_v22 = vpop.f32.mrb[35].mxu1  ;;  %7031 = vmatpush3.bf16.msra.mxu1 %v7028_v2 }
 0x2c8   : > { %v9285_v62 = vmul.f32 %v2513_v22, %v2157_v3  ;;  %7033 = vmatprep.subr.bf16.mxu1 %v7032_v18 }
 0x2ca   : > { %v6998_v55 = vpack.c.bf16 %v9283_v19, %v9285_v62  ;;  %v6416_v59 = vpop.f32.mrb[36].mxu0  ;;  %v6456_v48 = vpop.f32.mrb[36].mxu1 }
 0x2cb   : > { %v9289_v35 = vmul.f32 %v6456_v48, %v6404_v1  ;;  %v2207_v50 = vpop.f32.mrb[37].mxu0  ;;  %v2523_v15 = vpop.f32.mrb[37].mxu1  ;;  %7035 = vmatpush3.bf16.msra.mxu1 %v7032_v18 }
 0x2cc   : > { %v2634_v25 = vmul.f32 %v2523_v15, %v2167_v11  ;;  %v11472_v11 = vpack.c.bf16 %v9217_v8, %v9219_v13 }
 0x2ce   : > { %v7002_v63 = vpack.c.bf16 %v9289_v35, %v2634_v25  ;;  %v6419_v24 = vpop.f32.mrb[38].mxu0  ;;  %v6459_v36 = vpop.f32.mrb[38].mxu1 }
 0x2cf   : > { %v2637_v42 = vmul.f32 %v6459_v36, %v6407_v9  ;;  %v2217_v22 = vpop.f32.mrb[39].mxu0  ;;  %v2533_v3 = vpop.f32.mrb[39].mxu1 }
 0x2d0   : > { %v2636_v53 = vmul.f32 %v2533_v3, %v2177_v46 }
 0x2d2   : > { %v7006_v29 = vpack.c.bf16 %v2637_v42, %v2636_v53  ;;  %v6462_v40 = vpop.f32.mrb[40].mxu1 }
 0x2d3   : > { %v2639_v27 = vmul.f32 %v6462_v40, %v6410_v28  ;;  %v2543_v62 = vpop.f32.mrb[41].mxu1  ;;  %v11473_v40 = vpack.c.bf16 %v9241_v10, %v9243_v52  ;;  %v11475_v10 = vpack.c.bf16 %v9265_v44, %v9267_v12 }
 0x2d4   : > { %v2638_v19 = vmul.f32 %v2543_v62, %v2187_v7 }
 0x2d6   : > { %v6976_v58 = vpack.c.bf16 %v2639_v27, %v2638_v19  ;;  %v6465_v1 = vpop.f32.mrb[42].mxu1  ;;  %v11498_v19 = vld [vmem:[#allocation25_spill] sm:$0xff] }
 0x2d7   : > { %v2641_v48 = vmul.f32 %v6465_v1, %v6413_v47  ;;  %v2553_v4 = vpop.f32.mrb[43].mxu1  ;;  %v9475_v1 = vadd.f32 %v9451_v6, %v11498_v19 }
 0x2d8   : > { %v2640_v23 = vmul.f32 %v2553_v4, %v2197_v38  ;;  %6977 = vmatprep.subr.bf16.mxu0 %v6976_v58  ;;  %v11474_v58 = vpack.c.bf16 %v9253_v21, %v9255_v49 }
 0x2d9   : > { %6979 = vmatpush3.bf16.msra.mxu0 %v11472_v11  ;;  %v11499_v11 = vld [vmem:[#allocation24_spill] sm:$0xff] }
 0x2da   : > { %v6980_v2 = vpack.c.bf16 %v2641_v48, %v2640_v23  ;;  %v6468_v9 = vpop.f32.mrb[44].mxu1 }
 0x2db   : > { %v2643_v35 = vmul.f32 %v6468_v9, %v6416_v59  ;;  %v2563_v15 = vpop.f32.mrb[45].mxu1 }
 0x2dc   : > { %v2642_v46 = vmul.f32 %v2563_v15, %v2207_v50  ;;  %6981 = vmatprep.subr.bf16.mxu0 %v6980_v2  ;;  %v9479_v2 = vadd.f32 %v11499_v11, %v9451_v6  ;;  %v1123_v15 = vand.u32 2147483647, %v9475_v1 }
 0x2dd   : > { %6983 = vmatpush3.bf16.msra.mxu0 %v11473_v40  ;;  %v11500_v40 = vld [vmem:[#allocation27_spill] sm:$0xff] }
 0x2de   : > { %v6984_v27 = vpack.c.bf16 %v2643_v35, %v2642_v46  ;;  %v6471_v28 = vpop.f32.mrb[46].mxu1  ;;  %v1124_v46 = vand.u32 2147483647, %v9479_v2 }
 0x2df   : > { %v2645_v47 = vmul.f32 %v6471_v28, %v6419_v24  ;;  %v2573_v7 = vpop.f32.mrb[47].mxu1 }
 0x2e0   : > { %v2644_v38 = vmul.f32 %v2573_v7, %v2217_v22  ;;  %6985 = vmatprep.subr.bf16.mxu0 %v6984_v27  ;;  %v9485_v27 = vadd.f32 %v9451_v6, %v11500_v40  ;;  %v1140_v7 = vsub.f32 0.0, %v1124_v46  ;;  %v1075_v46 = vmax.f32 %v9475_v1, 0.0 }
 0x2e1   : > { %6987 = vmatpush3.bf16.msra.mxu0 %v11474_v58  ;;  %v11501_v58 = vld [vmem:[#allocation26_spill] sm:$0xff] }
 0x2e2   : > { %v6988_v23 = vpack.c.bf16 %v2645_v47, %v2644_v38  ;;  %v6474_v4 = vpop.f32.mrb[48].mxu1  ;;  %v1139_v47 = vsub.f32 0.0, %v1123_v15  ;;  %v1125_v38 = vand.u32 2147483647, %v9485_v27 }
 0x2e3   : > { %v2647_v8 = vmul.f32 %v6474_v4, %v9169_v57  ;;  %v2583_v13 = vpop.f32.mrb[49].mxu1 }
 0x2e4   : > { %v2646_v59 = vmul.f32 %v2583_v13, %v9175_v60  ;;  %6989 = vmatprep.subr.bf16.mxu0 %v6988_v23  ;;  %v9490_v23 = vadd.f32 %v11501_v58, %v9451_v6  ;;  %v1161_v13 = vmul.f32 1.442695, %v1140_v7 }
 0x2e5   : > { %6991 = vmatpush3.bf16.msra.mxu0 %v11475_v10 }
 0x2e6   : > { %v6992_v52 = vpack.c.bf16 %v2647_v8, %v2646_v59  ;;  %v6477_v50 = vpop.f32.mrb[50].mxu1  ;;  %v1159_v8 = vmul.f32 1.442695, %v1139_v47  ;;  %v1141_v59 = vsub.f32 0.0, %v1125_v38  ;;  %v1126_v10 = vand.u32 2147483647, %v9490_v23 }
 0x2e7   : > { %v2649_v25 = vmul.f32 %v6477_v50, %v9180_v43  ;;  %v2593_v24 = vpop.f32.mrb[51].mxu1 }
 0x2e8   : > { %v2648_v21 = vmul.f32 %v2593_v24, %v9186_v34  ;;  %6993 = vmatprep.subr.bf16.mxu0 %v6992_v52  ;;  %v11502_v52 = vld [vmem:[#allocation28_spill] sm:$0xff] }
 0x2e9   : > { %6995 = vmatpush3.bf16.msra.mxu0 %v6994_v16  ;;  %v11476_v16 = vmov 1.0   ;;  %v9497_v50 = vadd.f32 %v11502_v52, %v9451_v6 }
 0x2ea   : > { %v6996_v49 = vpack.c.bf16 %v2649_v25, %v2648_v21  ;;  %v6480_v36 = vpop.f32.mrb[52].mxu1  ;;  %v11503_v21 = vld [vmem:[#allocation29_spill] sm:$0xff] }
 0x2eb   : > { %v2651_v57 = vmul.f32 %v6480_v36, %v9191_v26  ;;  %v2603_v42 = vpop.f32.mrb[53].mxu1 }
 0x2ec   : > { %v2650_v60 = vmul.f32 %v2603_v42, %v9197_v54  ;;  %6997 = vmatprep.subr.bf16.mxu0 %v6996_v49  ;;  %v11497_v54 = vld [vmem:[#allocation22_spill] sm:$0xff]  ;;  %v9504_v49 = vadd.f32 %v9451_v6, %v11503_v21  ;;  %v1142_v42 = vsub.f32 0.0, %v1126_v10 }
 0x2ed   : > { %6999 = vmatpush3.bf16.msra.mxu0 %v6998_v55 }
 0x2ee   : > { %v7000_v44 = vpack.c.bf16 %v2651_v57, %v2650_v60  ;;  %v6483_v12 = vpop.f32.mrb[54].mxu1  ;;  %v1163_v57 = vmul.f32 1.442695, %v1141_v59  ;;  %v1128_v60 = vand.u32 2147483647, %v9497_v50 }
 0x2ef   : > { %v2653_v22 = vmul.f32 %v6483_v12, %v9202_v20  ;;  %v2613_v3 = vpop.f32.mrb[55].mxu1  ;;  %v9469_v20 = vadd.f32 %v11497_v54, %v9451_v6  ;;  %v11504_v12 = vld [vmem:[#allocation30_spill] sm:$0xff]  ;;  %v1129_v54 = vand.u32 2147483647, %v9520_v5 }
 0x2f0   : > { %v2652_v43 = vmul.f32 %v2613_v3, %v9208_v14  ;;  %7001 = vmatprep.subr.bf16.mxu0 %v7000_v44 }
 0x2f1   : > { %7003 = vmatpush3.bf16.msra.mxu0 %v7002_v63  ;;  %v1122_v53 = vand.u32 2147483647, %v9469_v20  ;;  %v1145_v47 = vsub.f32 0.0, %v1129_v54 }
 0x2f2   : > { %v7004_v34 = vpack.c.bf16 %v2653_v22, %v2652_v43  ;;  %v9512_v22 = vadd.f32 %v11504_v12, %v9451_v6  ;;  %v1127_v43 = vand.u32 2147483647, %v9504_v49 }
 0x2f3   : > { %v1138_v9 = vsub.f32 0.0, %v1122_v53 }
 0x2f4   : > { %7005 = vmatprep.subr.bf16.mxu0 %v7004_v34  ;;  %v1130_v39 = vand.u32 2147483647, %v9512_v22 }
 0x2f5   : > { %7007 = vmatpush3.bf16.msra.mxu0 %v7006_v29  ;;  %v1157_v28 = vmul.f32 1.442695, %v1138_v9  ;;  %v1144_v29 = vsub.f32 0.0, %v1128_v60 }
 0x2f6   : > { %v1146_v53 = vsub.f32 0.0, %v1130_v39 }
 0x2f8   : > { %5677 = vmatmul.mubr.msk.f32.vlgmr.msra.gmra.mrb[40].mxu0 %vm2680_vm2, %v11476_v16  ;;  %vm11477_vm2 = vcmp.eq.s32.totalorder %v9087_v51, %v9132_v45 }
 0x2f9   : > { %5678 = vmatprep.mubr.msk.f32.mxu0 %vm2683_vm9, %v11476_v16  ;;  %vm11478_vm9 = vcmp.eq.s32.totalorder %v9089_v56, %v9132_v45  ;;  %v11494_v45 = vld [vmem:[#allocation21_spill] sm:$0xff] }
 0x2fc   : > { %5679 = vmatmul.mubr.msk.f32.gmra.mrb[42].mxu0 %vm2682_vm10, %v11476_v16  ;;  %vm11479_vm10 = vcmp.eq.s32.totalorder %v9087_v51, %v9139_v17 }
 0x2fd   : > { %5680 = vmatprep.mubr.msk.f32.mxu0 %vm2685_vm11, %v11476_v16  ;;  %vm11480_vm11 = vcmp.eq.s32.totalorder %v9089_v56, %v9139_v17  ;;  %v9455_v17 = vadd.f32 %v9451_v6, %v11494_v45 }
 0x300   : > { %5681 = vmatmul.mubr.msk.f32.gmra.mrb[44].mxu0 %vm2684_vm12, %v11476_v16  ;;  %vm11481_vm12 = vcmp.eq.s32.totalorder %v9087_v51, %v9146_v61  ;;  %v11495_v61 = vld [vmem:[#allocation20_spill] sm:$0xff] }
 0x301   : > { %5682 = vmatprep.mubr.msk.f32.mxu0 %vm2687_vm13, %v11476_v16  ;;  %vm11482_vm13 = vcmp.eq.s32.totalorder %v9087_v51, %v9153_v41 }
 0x304   : > { %5683 = vmatmul.mubr.msk.f32.gmra.mrb[46].mxu0 %vm2686_vm14, %v11476_v16  ;;  %vm11483_vm14 = vcmp.eq.s32.totalorder %v9089_v56, %v9153_v41  ;;  %v9459_v41 = vadd.f32 %v11495_v61, %v9451_v6 }
 0x305   : > { %5684 = vmatprep.mubr.msk.f32.mxu0 %vm2689_vm15, %v11476_v16  ;;  %vm11484_vm15 = vcmp.eq.s32.totalorder %v9087_v51, %v9160_v30 }
 0x306   : > { %v1072_v61 = vmax.f32 %v9459_v41, 0.0 }
 0x308   : > { %5685 = vmatmul.mubr.msk.f32.gmra.mrb[48].mxu0 %vm2688_vm3, %v11476_v16  ;;  %vm11485_vm3 = vcmp.eq.s32.totalorder %v9089_v56, %v9160_v30  ;;  %v1119_v30 = vand.u32 2147483647, %v9455_v17 }
 0x309   : > { %5686 = vmatprep.mubr.msk.f32.mxu0 %vm2691_vm0, %v11476_v16  ;;  %vm11486_vm0 = vcmp.eq.s32.totalorder %v9087_v51, %v9167_v32 }
 0x30a   : > { %v1135_v26 = vsub.f32 0.0, %v1119_v30  ;;  %v1071_v30 = vmax.f32 %v9455_v17, 0.0 }
 0x30c   : > { %5687 = vmatmul.mubr.msk.f32.gmra.mrb[50].mxu0 %vm2690_vm4, %v11476_v16  ;;  %vm11487_vm4 = vcmp.eq.s32.totalorder %v9089_v56, %v9167_v32  ;;  %v11496_v32 = vld [vmem:[#allocation23_spill] sm:$0xff]  ;;  %v1151_v63 = vmul.f32 1.442695, %v1135_v26  ;;  %v1169_v26 = vmul.f32 1.442695, %v1144_v29 }
 0x30d   : > { %5688 = vmatprep.mubr.msk.f32.mxu0 %vm11477_vm2, %v11476_v16  ;;  %vm11489_vm2 = vcmp.eq.s32.totalorder %v9089_v56, %v9178_v0 }
 0x30e   : > { %7454 = vpow2.f32 %v1151_v63 }
 0x310   : > { %5689 = vmatmul.mubr.msk.f32.gmra.mrb[52].mxu0 %vm11478_vm9, %v11476_v16  ;;  %vm11490_vm9 = vcmp.eq.s32.totalorder %v9087_v51, %v9189_v31 }
 0x311   : > { %5690 = vmatprep.mubr.msk.f32.mxu0 %vm11479_vm10, %v11476_v16  ;;  %vm11491_vm10 = vcmp.eq.s32.totalorder %v9089_v56, %v9189_v31  ;;  %v2952_v56 = vld [vmem:[%s11365_s9 + $0x78] sm:$0xff]  ;;  %v1120_v31 = vand.u32 2147483647, %v9459_v41 }
 0x313   : > { %v1136_v55 = vsub.f32 0.0, %v1120_v31 }
 0x314   : > { %5691 = vmatmul.mubr.msk.f32.gmra.mrb[54].mxu0 %vm11480_vm11, %v11476_v16 }
 0x315   : > { %5692 = vmatprep.mubr.msk.f32.mxu0 %vm11481_vm12, %v11476_v16  ;;  %v1153_v48 = vmul.f32 1.442695, %v1136_v55  ;;  %vm1088_vm12 = vcmp.ne.f32.partialorder %v9459_v41, %v9459_v41 }
 0x317   : > { %7456 = vpow2.f32 %v1153_v48 }
 0x318   : > { %5693 = vmatmul.mubr.msk.f32.gmra.mrb[56].mxu0 %vm2696_vm5, %v11476_v16  ;;  %vm11488_vm5 = vcmp.eq.s32.totalorder %v9087_v51, %v9178_v0  ;;  %v2951_v51 = vld [vmem:[%s11365_s9 + $0x70] sm:$0xff]  ;;  %v9464_v0 = vadd.f32 %v9451_v6, %v11496_v32  ;;  %v9492_v4 = vpop.eup %7454  ;;  %v1074_v32 = vmax.f32 %v9469_v20, 0.0 }
 0x319   : > { %5694 = vmatprep.mubr.msk.f32.mxu0 %vm11482_vm13, %v11476_v16  ;;  %v7036_v33 = vpack.c.bf16 %v2952_v56, %v2951_v51  ;;  %v1183_v25 = vadd.f32 1.0, %v9492_v4  ;;  %v1186_v18 = vmul.f32 -0.5, %v9492_v4  ;;  %v1143_v56 = vsub.f32 0.0, %v1127_v43 }
 0x31a   : > { %v1121_v14 = vand.u32 2147483647, %v9464_v0  ;;  %v1073_v15 = vmax.f32 %v9464_v0, 0.0  ;;  %vm1089_vm13 = vcmp.ne.f32.partialorder %v9464_v0, %v9464_v0 }
 0x31b   : > { %7037 = vmatprep.subr.bf16.mxu1 %v7036_v33  ;;  %v1167_v11 = vmul.f32 1.442695, %v1143_v56 }
 0x31c   : > { %5695 = vmatmul.mubr.msk.f32.gmra.mrb[58].mxu0 %vm11483_vm14, %v11476_v16  ;;  %7039 = vmatpush3.bf16.msra.mxu1 %v7036_v33  ;;  %v1137_v62 = vsub.f32 0.0, %v1121_v14  ;;  %v11506_v33 = vld [vmem:[#allocation32_spill] sm:$0xff]  ;;  %v11507_v14 = vld [vmem:[#allocation33_spill] sm:$0xff]  ;;  %vm1090_vm14 = vcmp.ne.f32.partialorder %v9469_v20, %v9469_v20 }
 0x31d   : > { %5696 = vmatprep.mubr.msk.f32.mxu0 %vm11484_vm15, %v11476_v16  ;;  %v9527_v45 = vadd.f32 %v11506_v33, %v9451_v6  ;;  %v9537_v55 = vadd.f32 %v9451_v6, %v11507_v14  ;;  %v11511_v33 = vld [vmem:[#allocation35_spill] sm:$0xff] }
 0x31e   : > { %v1155_v35 = vmul.f32 1.442695, %v1137_v62  ;;  %v1187_v62 = vadd.f32 1.0, %v1186_v18 }
 0x31f   : > { %v1132_v9 = vand.u32 2147483647, %v9527_v45  ;;  %v1131_v7 = vand.u32 2147483647, %v9537_v55 }
 0x320   : > { %5697 = vmatmul.mubr.msk.f32.gmra.mrb[60].mxu0 %vm11485_vm3, %v11476_v16  ;;  %7458 = vpow2.f32 %v1155_v35  ;;  %v1189_v35 = vand.u32 2147483647, %v9492_v4  ;;  %v1188_v59 = vmul.f32 %v9492_v4, %v1187_v62  ;;  %v1171_v4 = vmul.f32 1.442695, %v1145_v47 }
 0x321   : > { %5698 = vmatprep.mubr.msk.f32.mxu0 %vm11486_vm0, %v11476_v16  ;;  %7460 = vpow2.f32 %v1157_v28  ;;  %v9500_v24 = vpop.eup %7456  ;;  %vm1091_vm0 = vcmp.ne.f32.partialorder %v9475_v1, %v9475_v1 }
 0x322   : > { %7462 = vpow2.f32 %v1159_v8  ;;  %v1192_v44 = vadd.f32 1.0, %v9500_v24  ;;  %v1195_v19 = vmul.f32 -0.5, %v9500_v24  ;;  %v1173_v8 = vmul.f32 1.442695, %v1146_v53 }
 0x323   : > { %7464 = vpow2.f32 %v1161_v13 }
 0x324   : > { %5699 = vmatmul.mubr.msk.f32.gmra.mrb[62].mxu0 %vm11487_vm4, %v11476_v16  ;;  %7466 = vlog2.f32 %v1183_v25  ;;  %v1196_v10 = vadd.f32 1.0, %v1195_v19  ;;  %v1148_v25 = vsub.f32 0.0, %v1132_v9 }
 0x325   : > { %5700 = vmatprep.mubr.msk.f32.mxu0 %vm11488_vm5, %v11476_v16  ;;  %7468 = vpow2.f32 %v1163_v57  ;;  %v1198_v57 = vand.u32 2147483647, %v9500_v24  ;;  %vm1092_vm5 = vcmp.ne.f32.partialorder %v9479_v2, %v9479_v2 }
 0x326   : > { %7470 = vlog2.f32 %v1192_v44  ;;  %v1197_v39 = vmul.f32 %v9500_v24, %v1196_v10  ;;  %v9570_v56 = vmul.f32 1.442695, %v1148_v25 }
 0x328   : > { %5701 = vmatmul.mubr.msk.f32.gmra.mrb[64].mxu0 %vm11489_vm2, %v11476_v16 }
 0x329   : > { %5702 = vmatprep.mubr.msk.f32.mxu0 %vm11490_vm9, %v11476_v16  ;;  %vm1093_vm9 = vcmp.ne.f32.partialorder %v9485_v27, %v9485_v27 }
 0x32a   : > { %v9506_v36 = vpop.eup %7458 }
 0x32b   : > { %v9514_v3 = vpop.eup %7460  ;;  %v1201_v34 = vadd.f32 1.0, %v9506_v36  ;;  %v1204_v40 = vmul.f32 -0.5, %v9506_v36 }
 0x32c   : > { %5703 = vmatmul.mubr.msk.f32.gmra.mrb[66].mxu0 %vm11491_vm10, %v11476_v16  ;;  %v1210_v51 = vadd.f32 1.0, %v9514_v3  ;;  %v9532_v31 = vpop.eup %7462  ;;  %v1213_v12 = vmul.f32 -0.5, %v9514_v3  ;;  %v1216_v9 = vand.u32 2147483647, %v9514_v3 }
 0x32d   : > { %5704 = vmatprep.mubr.msk.f32.mxu0 %vm2709_vm8, %v11476_v16  ;;  %7472 = vlog2.f32 %v1201_v34  ;;  %v9539_v63 = vpop.eup %7464  ;;  %v1219_v28 = vadd.f32 1.0, %v9532_v31  ;;  %v1205_v44 = vadd.f32 1.0, %v1204_v40  ;;  %v1147_v34 = vsub.f32 0.0, %v1131_v7 }
 0x32e   : > { %v7467_v48 = vpop.eup %7466  ;;  %v1228_v38 = vadd.f32 1.0, %v9539_v63  ;;  %v1214_v19 = vadd.f32 1.0, %v1213_v12  ;;  %v1231_v10 = vmul.f32 -0.5, %v9539_v63  ;;  %vm9605_vm11 = vcmp.lt.f32.partialorder %v1216_v9, 0.0004427343 }
 0x32f   : > { %v9550_v58 = vpop.eup %7468  ;;  %v1185_v13 = vmul.f32 0.6931472, %v7467_v48  ;;  %v1206_v24 = vmul.f32 %v9506_v36, %v1205_v44 }
 0x330   : > { %5705 = vmatmul.mubr.msk.f32.gmra.mrb[68].mxu0 %vm2708_vm1, %v11476_v16  ;;  %v7471_v52 = vpop.eup %7470  ;;  %v1237_v18 = vadd.f32 1.0, %v9550_v58  ;;  %vm1087_vm1 = vcmp.ne.f32.partialorder %v9455_v17, %v9455_v17 }
 0x331   : > { %5706 = vmatprep.mubr.msk.f32.mxu0 %vm2711_vm6, %v11476_v16  ;;  %vm9553_vm6 = vcmp.lt.f32.partialorder %v1189_v35, 0.0004427343  ;;  %v1194_v37 = vmul.f32 0.6931472, %v7471_v52  ;;  %v1175_v35 = vmul.f32 1.442695, %v1147_v34 }
 0x332   : > { %v1191_v29 = vsel %vm9553_vm6, %v1188_v59, %v1185_v13  ;;  %v1215_v59 = vmul.f32 %v9514_v3, %v1214_v19  ;;  %v1225_v3 = vand.u32 2147483647, %v9532_v31  ;;  %v1234_v34 = vand.u32 2147483647, %v9539_v63 }
 0x333   : > { %v1327_v48 = vadd.f32 %v1191_v29, %v1071_v30  ;;  %vm1094_vm6 = vcmp.ne.f32.partialorder %v9490_v23, %v9490_v23 }
 0x334   : > { %5707 = vmatmul.mubr.msk.f32.gmra.mrb[70].mxu0 %vm2710_vm7, %v11476_v16  ;;  %v1165_v16 = vmul.f32 1.442695, %v1142_v42  ;;  %v11510_v42 = vld [vmem:[#allocation34_spill] sm:$0xff]  ;;  %vm9576_vm7 = vcmp.lt.f32.partialorder %v1198_v57, 0.0004427343 }
 0x335   : > { %v9560_v60 = vadd.f32 %v11510_v42, %v9451_v6  ;;  %v1343_v25 = vsel %vm1087_vm1, %v9455_v17, %v1327_v48  ;;  %vm9632_vm15 = vcmp.lt.f32.partialorder %v1225_v3, 0.0004427343  ;;  %vm9642_vm3 = vcmp.lt.f32.partialorder %v1234_v34, 0.0004427343 }
 0x336   : > { %7474 = vpow2.f32 %v1165_v16  ;;  %v1207_v16 = vand.u32 2147483647, %v9506_v36 }
 0x337   : > { %7476 = vlog2.f32 %v1210_v51  ;;  %v7473_v43 = vpop.eup %7472  ;;  %v1134_v53 = vand.u32 2147483647, %v9560_v60 }
 0x338   : > { %7478 = vpow2.f32 %v1169_v26  ;;  %v9574_v26 = vadd.f32 %v9451_v6, %v11511_v33  ;;  %v1203_v62 = vmul.f32 0.6931472, %v7473_v43  ;;  %vm9582_vm8 = vcmp.lt.f32.partialorder %v1207_v16, 0.0004427343 }
 0x339   : > { %7480 = vpow2.f32 %v1167_v11  ;;  %v1222_v6 = vmul.f32 -0.5, %v9532_v31 }
 0x33a   : > { %7482 = vlog2.f32 %v1219_v28  ;;  %v1200_v28 = vsel %vm9576_vm7, %v1197_v39, %v1194_v37  ;;  %v1133_v30 = vand.u32 2147483647, %v9574_v26  ;;  %v1209_v13 = vsel %vm9582_vm8, %v1206_v24, %v1203_v62 }
 0x33b   : > { %7484 = vlog2.f32 %v1228_v38  ;;  %v1328_v21 = vadd.f32 %v1200_v28, %v1072_v61  ;;  %v1223_v42 = vadd.f32 1.0, %v1222_v6  ;;  %v1329_v61 = vadd.f32 %v1209_v13, %v1073_v15 }
 0x33c   : > { %7486 = vpow2.f32 %v1173_v8  ;;  %v1232_v37 = vadd.f32 1.0, %v1231_v10  ;;  %v1240_v39 = vmul.f32 -0.5, %v9550_v58  ;;  %v1149_v62 = vsub.f32 0.0, %v1133_v30 }
 0x33d   : > { %7488 = vlog2.f32 %v1237_v18  ;;  %v1344_v33 = vsel %vm1088_vm12, %v9459_v41, %v1328_v21  ;;  %v1345_v41 = vsel %vm1089_vm13, %v9464_v0, %v1329_v61  ;;  %v1077_v61 = vmax.f32 %v9485_v27, 0.0 }
 0x33e   : > { %7490 = vpow2.f32 %v1171_v4  ;;  %v1233_v28 = vmul.f32 %v9539_v63, %v1232_v37  ;;  %v1241_v30 = vadd.f32 1.0, %v1240_v39  ;;  %v1150_v63 = vsub.f32 0.0, %v1134_v53 }
 0x33f   : > { %7492 = vpow2.f32 %v1175_v35  ;;  %v1179_v10 = vmul.f32 1.442695, %v1149_v62  ;;  %v1078_v6 = vmax.f32 %v9490_v23, 0.0  ;;  %vm1095_vm8 = vcmp.ne.f32.partialorder %v9504_v49, %v9504_v49 }
 0x340   : > { %v9568_v51 = vpop.eup %7474  ;;  %v1181_v37 = vmul.f32 1.442695, %v1150_v63  ;;  %vm1097_vm13 = vcmp.ne.f32.partialorder %v9520_v5, %v9520_v5 }
 0x341   : > { %v7477_v14 = vpop.eup %7476  ;;  %v1246_v38 = vadd.f32 1.0, %v9568_v51 }
 0x342   : > { %v9592_v36 = vpop.eup %7478  ;;  %v1212_v7 = vmul.f32 0.6931472, %v7477_v14  ;;  %v1224_v14 = vmul.f32 %v9532_v31, %v1223_v42 }
 0x343   : > { %v9600_v52 = vpop.eup %7480  ;;  %7494 = vlog2.f32 %v1246_v38  ;;  %v1264_v38 = vadd.f32 1.0, %v9592_v36 }
 0x344   : > { %v7483_v44 = vpop.eup %7482  ;;  %v1218_v29 = vsel %vm9605_vm11, %v1215_v59, %v1212_v7  ;;  %v1255_v15 = vadd.f32 1.0, %v9600_v52  ;;  %vm1096_vm11 = vcmp.ne.f32.partialorder %v9497_v50, %v9497_v50 }
 0x345   : > { %v7485_v4 = vpop.eup %7484  ;;  %v1221_v54 = vmul.f32 0.6931472, %v7483_v44  ;;  %v1330_v31 = vadd.f32 %v1218_v29, %v1074_v32  ;;  %v1249_v32 = vmul.f32 -0.5, %v9568_v51  ;;  %v1258_v29 = vmul.f32 -0.5, %v9600_v52 }
 0x346   : > { %v9623_v18 = vpop.eup %7486  ;;  %v1230_v9 = vmul.f32 0.6931472, %v7485_v4  ;;  %7496 = vlog2.f32 %v1255_v15 }
 0x347   : > { %v7489_v35 = vpop.eup %7488  ;;  %v1227_v0 = vsel %vm9632_vm15, %v1224_v14, %v1221_v54  ;;  %7498 = vpow2.f32 %v9570_v56  ;;  %v1250_v4 = vadd.f32 1.0, %v1249_v32  ;;  %v1282_v48 = vadd.f32 1.0, %v9623_v18 }
 0x348   : > { %v9649_v7 = vpop.eup %7490  ;;  %v1239_v57 = vmul.f32 0.6931472, %v7489_v35  ;;  %v1331_v53 = vadd.f32 %v1227_v0, %v1075_v46  ;;  %v1236_v44 = vsel %vm9642_vm3, %v1233_v28, %v1230_v9  ;;  %7500 = vlog2.f32 %v1264_v38 }
 0x349   : > { %v9667_v42 = vpop.eup %7492  ;;  %v1252_v46 = vand.u32 2147483647, %v9568_v51  ;;  %7502 = vpow2.f32 %v1179_v10  ;;  %v1251_v62 = vmul.f32 %v9568_v51, %v1250_v4  ;;  %v1261_v51 = vand.u32 2147483647, %v9600_v52 }
 0x34a   : > { %v1291_v38 = vadd.f32 1.0, %v9667_v42  ;;  %v1276_v10 = vmul.f32 -0.5, %v9649_v7  ;;  %vm1098_vm15 = vcmp.ne.f32.partialorder %v9512_v22, %v9512_v22 }
 0x34b   : > { %vm9699_vm2 = vcmp.lt.f32.partialorder %v1252_v46, 0.0004427343  ;;  %vm9722_vm10 = vcmp.lt.f32.partialorder %v1261_v51, 0.0004427343  ;;  %v1081_v51 = vmax.f32 %v9520_v5, 0.0 }
 0x34d   : > { %v7495_v3 = vpop.eup %7494 }
 0x34e   : > { %v1248_v15 = vmul.f32 0.6931472, %v7495_v3 }
 0x350   : > { %v7497_v9 = vpop.eup %7496  ;;  %v1254_v0 = vsel %vm9699_vm2, %v1251_v62, %v1248_v15 }
 0x3cb   : > { %v5968_v40 = vpop.f32.mrb[40].mxu0 }
 0x3cc   : > { %v5969_v47 = vpop.f32.mrb[41].mxu0 }
 0x3cd   : > { %v5970_v8 = vadd.f32 %v5969_v47, %v5968_v40  ;;  %v1243_v47 = vand.u32 2147483647, %v9550_v58 }
 0x3cf   : > { %v9609_v12 = vadd.f32 %v5970_v8, %v1343_v25  ;;  %v5971_v43 = vpop.f32.mrb[42].mxu0  ;;  %v1076_v8 = vmax.f32 %v9479_v2, 0.0  ;;  %v1346_v25 = vsel %vm1090_vm14, %v9469_v20, %v1330_v31  ;;  %vm9675_vm4 = vcmp.lt.f32.partialorder %v1243_v47, 0.0004427343 }
 0x3d0   : > { %v5972_v17 = vpop.f32.mrb[43].mxu0 }
 0x3d1   : > { %v5973_v16 = vadd.f32 %v5972_v17, %v5971_v43  ;;  %6516 = vmatprep.mubr.f32.mxu1 %v9609_v12  ;;  %v1242_v43 = vmul.f32 %v9550_v58, %v1241_v30  ;;  %v1273_v17 = vadd.f32 1.0, %v9649_v7  ;;  %v1332_v39 = vadd.f32 %v1236_v44, %v1076_v8 }
 0x3d3   : > { %v9628_v24 = vadd.f32 %v5973_v16, %v1344_v33  ;;  %v5974_v19 = vpop.f32.mrb[44].mxu0  ;;  %v1347_v33 = vsel %vm1091_vm0, %v9475_v1, %v1331_v53  ;;  %v1245_v14 = vsel %vm9675_vm4, %v1242_v43, %v1239_v57  ;;  %7504 = vlog2.f32 %v1273_v17 }
 0x3d4   : > { %v5975_v11 = vpop.f32.mrb[45].mxu0  ;;  %v1259_v1 = vadd.f32 1.0, %v1258_v29  ;;  %7506 = vpow2.f32 %v1181_v37  ;;  %v1348_v28 = vsel %vm1092_vm5, %v9479_v2, %v1332_v39  ;;  %v1333_v47 = vadd.f32 %v1245_v14, %v1077_v61 }
 0x3d5   : > { %v5976_v40 = vadd.f32 %v5975_v11, %v5974_v19  ;;  %6517 = vmatmul.mubr.f32.vlgmr.msra.gmra.mrb[56].mxu1 %v9628_v24  ;;  %v1267_v19 = vmul.f32 -0.5, %v9592_v36  ;;  %7508 = vlog2.f32 %v1282_v48  ;;  %v1270_v53 = vand.u32 2147483647, %v9592_v36 }
 0x3d6   : > { %v1260_v2 = vmul.f32 %v9600_v52, %v1259_v1  ;;  %v1334_v43 = vadd.f32 %v1254_v0, %v1078_v6  ;;  %v1285_v52 = vmul.f32 -0.5, %v9623_v18  ;;  %v1349_v20 = vsel %vm1093_vm9, %v9485_v27, %v1333_v47 }
 0x3d7   : > { %v9659_v13 = vadd.f32 %v5976_v40, %v1345_v41  ;;  %v5977_v59 = vpop.f32.mrb[46].mxu0  ;;  %v9705_v40 = vpop.eup %7498  ;;  %v1268_v32 = vadd.f32 1.0, %v1267_v19  ;;  %7510 = vlog2.f32 %v1291_v38  ;;  %v1277_v37 = vadd.f32 1.0, %v1276_v10 }
 0x3d8   : > { %v5978_v21 = vpop.f32.mrb[47].mxu0  ;;  %v1300_v17 = vadd.f32 1.0, %v9705_v40  ;;  %v1080_v39 = vmax.f32 %v9497_v50, 0.0  ;;  %vm9744_vm7 = vcmp.lt.f32.partialorder %v1270_v53, 0.0004427343  ;;  %v1286_v15 = vadd.f32 1.0, %v1285_v52 }
 0x3d9   : > { %v5979_v56 = vadd.f32 %v5978_v21, %v5977_v59  ;;  %6519 = vmatprep.mubr.f32.mxu1 %v9659_v13  ;;  %v1257_v59 = vmul.f32 0.6931472, %v7497_v9  ;;  %v1079_v21 = vmax.f32 %v9504_v49, 0.0  ;;  %v1269_v4 = vmul.f32 %v9592_v36, %v1268_v32 }
 0x3da   : > { %v1279_v27 = vand.u32 2147483647, %v9649_v7  ;;  %v1350_v36 = vsel %vm1094_vm6, %v9490_v23, %v1334_v43  ;;  %v1294_v48 = vmul.f32 -0.5, %v9667_v42  ;;  %7512 = vlog2.f32 %v1300_v17 }
 0x3db   : > { %v9681_v34 = vadd.f32 %v5979_v56, %v1346_v25  ;;  %v5980_v16 = vpop.f32.mrb[48].mxu0  ;;  %v7501_v25 = vpop.eup %7500  ;;  %v1263_v46 = vsel %vm9722_vm10, %v1260_v2, %v1257_v59  ;;  %v1278_v6 = vmul.f32 %v9649_v7, %v1277_v37  ;;  %v1288_v47 = vand.u32 2147483647, %v9623_v18 }
 0x3dc   : > { %v5981_v58 = vpop.f32.mrb[49].mxu0  ;;  %v9731_v3 = vpop.eup %7502  ;;  %v1266_v29 = vmul.f32 0.6931472, %v7501_v25  ;;  %v1335_v19 = vadd.f32 %v1263_v46, %v1079_v21  ;;  %vm9766_vm1 = vcmp.lt.f32.partialorder %v1279_v27, 0.0004427343  ;;  %v1287_v32 = vmul.f32 %v9623_v18, %v1286_v15 }
 0x3dd   : > { %v5982_v54 = vadd.f32 %v5981_v58, %v5980_v16  ;;  %6520 = vmatmul.mubr.f32.gmra.mrb[58].mxu1 %v9681_v34  ;;  %v7505_v58 = vpop.eup %7504  ;;  %v1303_v7 = vmul.f32 -0.5, %v9705_v40  ;;  %vm9785_vm12 = vcmp.lt.f32.partialorder %v1288_v47, 0.0004427343  ;;  %v1312_v17 = vmul.f32 -0.5, %v9731_v3 }
 0x3de   : > { %v9756_v62 = vpop.eup %7506  ;;  %v1272_v23 = vsel %vm9744_vm7, %v1269_v4, %v1266_v29  ;;  %v1275_v9 = vmul.f32 0.6931472, %v7505_v58  ;;  %v1351_v38 = vsel %vm1095_vm8, %v9504_v49, %v1335_v19  ;;  %v1297_v49 = vand.u32 2147483647, %v9667_v42 }
 0x3df   : > { %v9697_v41 = vadd.f32 %v5982_v54, %v1347_v33  ;;  %v5983_v11 = vpop.f32.mrb[50].mxu0  ;;  %v1318_v59 = vadd.f32 1.0, %v9756_v62  ;;  %v1304_v52 = vadd.f32 1.0, %v1303_v7  ;;  %v1083_v27 = vmax.f32 %v9537_v55, 0.0 }
 0x3e0   : > { %v5984_v35 = vpop.f32.mrb[51].mxu0  ;;  %v1281_v25 = vsel %vm9766_vm1, %v1278_v6, %v1275_v9  ;;  %vm9804_vm14 = vcmp.lt.f32.partialorder %v1297_v49, 0.0004427343  ;;  %v1313_v19 = vadd.f32 1.0, %v1312_v17  ;;  %v1321_v9 = vmul.f32 -0.5, %v9756_v62 }
 0x3e1   : > { %v5985_v30 = vadd.f32 %v5984_v35, %v5983_v11  ;;  %6522 = vmatprep.mubr.f32.mxu1 %v9697_v41  ;;  %v1309_v11 = vadd.f32 1.0, %v9731_v3  ;;  %v7509_v35 = vpop.eup %7508  ;;  %v1337_v4 = vadd.f32 %v1281_v25, %v1081_v51  ;;  %v1305_v15 = vmul.f32 %v9705_v40, %v1304_v52  ;;  %v3400_v51 = vld [vmem:[%s11367_s11 + $0x38] sm:$0xff] }
 0x3e2   : > { %v1284_v21 = vmul.f32 0.6931472, %v7509_v35  ;;  %v7511_v18 = vpop.eup %7510  ;;  %vm1099_vm0 = vcmp.ne.f32.partialorder %v9537_v55, %v9537_v55  ;;  %vm1100_vm5 = vcmp.ne.f32.partialorder %v9527_v45, %v9527_v45  ;;  %vm1101_vm9 = vcmp.ne.f32.partialorder %v9574_v26, %v9574_v26 }
 0x3e3   : > { %v9717_v8 = vadd.f32 %v5985_v30, %v1348_v28  ;;  %v5986_v63 = vpop.f32.mrb[52].mxu0  ;;  %7514 = vlog2.f32 %v1309_v11  ;;  %v1293_v37 = vmul.f32 0.6931472, %v7511_v18  ;;  %vm1102_vm10 = vcmp.ne.f32.partialorder %v9560_v60, %v9560_v60 }
 0x3e4   : > { %v5987_v57 = vpop.f32.mrb[53].mxu0  ;;  %7516 = vlog2.f32 %v1318_v59  ;;  %v1290_v29 = vsel %vm9785_vm12, %v1287_v32, %v1284_v21  ;;  %v1322_v59 = vadd.f32 1.0, %v1321_v9  ;;  %v3398_v9 = vld [vmem:[%s11367_s11 + $0x28] sm:$0xff] }
 0x3e5   : > { %v5988_v44 = vadd.f32 %v5987_v57, %v5986_v63  ;;  %6523 = vmatmul.mubr.f32.gmra.mrb[60].mxu1 %v9717_v8  ;;  %v1336_v63 = vadd.f32 %v1272_v23, %v1080_v39  ;;  %v1295_v57 = vadd.f32 1.0, %v1294_v48  ;;  %v7513_v39 = vpop.eup %7512 }
 0x3e6   : > { %v1302_v23 = vmul.f32 0.6931472, %v7513_v39  ;;  %v1323_v52 = vmul.f32 %v9756_v62, %v1322_v59 }
 0x3e7   : > { %v9739_v61 = vadd.f32 %v5988_v44, %v1349_v20  ;;  %v5989_v16 = vpop.f32.mrb[54].mxu0  ;;  %v1082_v44 = vmax.f32 %v9512_v22, 0.0  ;;  %v1352_v20 = vsel %vm1096_vm11, %v9497_v50, %v1336_v63  ;;  %v1296_v58 = vmul.f32 %v9667_v42, %v1295_v57 }
 0x3e8   : > { %v5990_v33 = vpop.f32.mrb[55].mxu0  ;;  %v1306_v50 = vand.u32 2147483647, %v9705_v40  ;;  %v1353_v42 = vsel %vm1097_vm13, %v9520_v5, %v1337_v4  ;;  %v1315_v5 = vand.u32 2147483647, %v9731_v3  ;;  %v1084_v40 = vmax.f32 %v9527_v45, 0.0 }
 0x3e9   : > { %v5991_v14 = vadd.f32 %v5990_v33, %v5989_v16  ;;  %6525 = vmatprep.mubr.f32.mxu1 %v9739_v61 }
 0x3ea   : > { %vm9823_vm3 = vcmp.lt.f32.partialorder %v1306_v50, 0.0004427343  ;;  %vm9841_vm4 = vcmp.lt.f32.partialorder %v1315_v5, 0.0004427343 }
 0x3eb   : > { %v9760_v31 = vadd.f32 %v5991_v14, %v1350_v36  ;;  %v5992_v1 = vpop.f32.mrb[56].mxu0  ;;  %v1338_v14 = vadd.f32 %v1290_v29, %v1082_v44 }
 0x3ec   : > { %v5993_v28 = vpop.f32.mrb[57].mxu0 }
 0x3ed   : > { %v5994_v0 = vadd.f32 %v5993_v28, %v5992_v1  ;;  %6526 = vmatmul.mubr.f32.gmra.mrb[62].mxu1 %v9760_v31  ;;  %v1299_v1 = vsel %vm9804_vm14, %v1296_v58, %v1293_v37  ;;  %v7515_v6 = vpop.eup %7514  ;;  %v1354_v30 = vsel %vm1098_vm15, %v9512_v22, %v1338_v14  ;;  %v1324_v22 = vand.u32 2147483647, %v9756_v62 }
 0x3ee   : > { %v1339_v47 = vadd.f32 %v1299_v1, %v1083_v27  ;;  %v1311_v63 = vmul.f32 0.6931472, %v7515_v6 }
 0x3ef   : > { %v9781_v2 = vadd.f32 %v5994_v0, %v1351_v38  ;;  %v5995_v10 = vpop.f32.mrb[58].mxu0  ;;  %v1314_v0 = vmul.f32 %v9731_v3, %v1313_v19  ;;  %v1308_v38 = vsel %vm9823_vm3, %v1305_v15, %v1302_v23  ;;  %v1085_v3 = vmax.f32 %v9574_v26, 0.0  ;;  %v3394_v15 = vld [vmem:[%s11367_s11 + $0x8] sm:$0xff]  ;;  %v3397_v23 = vld [vmem:[%s11367_s11 + $0x20] sm:$0xff] }
 0x3f0   : > { %v5996_v56 = vpop.f32.mrb[59].mxu0  ;;  %v1355_v18 = vsel %vm1099_vm0, %v9537_v55, %v1339_v47  ;;  %vm1325_vm2 = vcmp.lt.f32.partialorder %v1324_v22, 0.0004427343  ;;  %v1086_v55 = vmax.f32 %v9560_v60, 0.0  ;;  %v7048_v6 = vpack.c.bf16 %v3398_v9, %v3397_v23  ;;  %v3403_v47 = vld [vmem:[%s11367_s11 + $0x50] sm:$0xff]  ;;  %v5710_v22 = vld [vmem:[%s11365_s9 + $0x80] sm:$0xff] }
 0x3f1   : > { %v5997_v43 = vadd.f32 %v5996_v56, %v5995_v10  ;;  %6528 = vmatprep.mubr.f32.mxu1 %v9781_v2  ;;  %v7517_v10 = vpop.eup %7516  ;;  %v1340_v56 = vadd.f32 %v1308_v38, %v1084_v40  ;;  %v1317_v44 = vsel %vm9841_vm4, %v1314_v0, %v1311_v63  ;;  %v3401_v40 = vld [vmem:[%s11367_s11 + $0x40] sm:$0xff]  ;;  %v3404_v0 = vld [vmem:[%s11367_s11 + $0x58] sm:$0xff]  ;;  %v3406_v63 = vld [vmem:[%s11367_s11 + $0x68] sm:$0xff] }
 0x3f2   : > { %v3405_v38 = vld [vmem:[%s11367_s11 + $0x60] sm:$0xff] }
 0x3f3   : > { %v9799_v16 = vadd.f32 %v5997_v43, %v1352_v20  ;;  %v5998_v46 = vpop.f32.mrb[60].mxu0  ;;  %v1320_v43 = vmul.f32 0.6931472, %v7517_v10  ;;  %v1356_v17 = vsel %vm1100_vm5, %v9527_v45, %v1340_v56  ;;  %v7064_v59 = vpack.c.bf16 %v3406_v63, %v3405_v38  ;;  %v3407_v10 = vld [vmem:[%s11367_s11 + $0x70] sm:$0xff]  ;;  %v5713_v56 = vld [vmem:[%s11365_s9 + $0x98] sm:$0xff] }
 0x3f4   : > { %v5999_v33 = vpop.f32.mrb[61].mxu0 }
 0x3f5   : > { %v6000_v36 = vadd.f32 %v5999_v33, %v5998_v46  ;;  %6529 = vmatmul.mubr.f32.gmra.mrb[64].mxu1 %v9799_v16  ;;  %v1341_v46 = vadd.f32 %v1317_v44, %v1085_v3  ;;  %v1326_v58 = vsel %vm1325_vm2, %v1323_v52, %v1320_v43  ;;  %v5712_v3 = vld [vmem:[%s11365_s9 + $0x90] sm:$0xff]  ;;  %v5714_v44 = vld [vmem:[%s11365_s9 + $0xa0] sm:$0xff]  ;;  %v5715_v43 = vld [vmem:[%s11365_s9 + $0xa8] sm:$0xff] }
 0x3f6   : > { %v1342_v54 = vadd.f32 %v1326_v58, %v1086_v55  ;;  %v7080_v52 = vpack.c.bf16 %v5715_v43, %v5714_v44  ;;  %v5720_v58 = vld [vmem:[%s11365_s9 + $0xd0] sm:$0xff] }
 0x3f7   : > { %v9818_v48 = vadd.f32 %v6000_v36, %v1353_v42  ;;  %v6001_v11 = vpop.f32.mrb[62].mxu0  ;;  %v1357_v62 = vsel %vm1101_vm9, %v9574_v26, %v1341_v46  ;;  %v3393_v26 = vld [vmem:[%s11367_s11] sm:$0xff]  ;;  %v5719_v46 = vld [vmem:[%s11365_s9 + $0xc8] sm:$0xff] }
 0x3f8   : > { %v6002_v35 = vpop.f32.mrb[63].mxu0  ;;  %v1358_v42 = vsel %vm1102_vm10, %v9560_v60, %v1342_v54  ;;  %v7040_v19 = vpack.c.bf16 %v3394_v15, %v3393_v26  ;;  %v3396_v60 = vld [vmem:[%s11367_s11 + $0x18] sm:$0xff]  ;;  %v5723_v54 = vld [vmem:[%s11365_s9 + $0xe8] sm:$0xff] }
 0x3f9   : > { %v6003_v28 = vadd.f32 %v6002_v35, %v6001_v11  ;;  %6531 = vmatprep.mubr.f32.mxu1 %v9818_v48  ;;  %v3395_v11 = vld [vmem:[%s11367_s11 + $0x10] sm:$0xff] }
 0x3fa   : > { %7041 = vmatprep.subr.bf16.mxu1 %v7040_v19  ;;  %v7044_v1 = vpack.c.bf16 %v3396_v60, %v3395_v11  ;;  %v3399_v35 = vld [vmem:[%s11367_s11 + $0x30] sm:$0xff] }
 0x3fb   : > { %v9837_v32 = vadd.f32 %v6003_v28, %v1354_v30  ;;  %v6004_v7 = vpop.f32.mrb[64].mxu0  ;;  %7043 = vmatpush3.bf16.msra.mxu1 %v7040_v19  ;;  %v7052_v5 = vpack.c.bf16 %v3400_v51, %v3399_v35  ;;  %v3402_v28 = vld [vmem:[%s11367_s11 + $0x48] sm:$0xff] }
 0x3fc   : > { %v6005_v25 = vpop.f32.mrb[65].mxu0  ;;  %7045 = vmatprep.subr.bf16.mxu1 %v7044_v1  ;;  %v7056_v30 = vpack.c.bf16 %v3402_v28, %v3401_v40 }
 0x3fd   : > { %v6006_v57 = vadd.f32 %v6005_v25, %v6004_v7  ;;  %6532 = vmatmul.mubr.f32.gmra.mrb[66].mxu1 %v9837_v32  ;;  %v7060_v7 = vpack.c.bf16 %v3404_v0, %v3403_v47  ;;  %v3408_v25 = vld [vmem:[%s11367_s11 + $0x78] sm:$0xff] }
 0x3fe   : > { %v7068_v21 = vpack.c.bf16 %v3408_v25, %v3407_v10 }
 0x3ff   : > { %v9851_v53 = vadd.f32 %v6006_v57, %v1355_v18  ;;  %v6007_v49 = vpop.f32.mrb[66].mxu0  ;;  %7047 = vmatpush3.bf16.msra.mxu1 %v7044_v1  ;;  %v5711_v57 = vld [vmem:[%s11365_s9 + $0x88] sm:$0xff] }
 0x400   : > { %v6008_v20 = vpop.f32.mrb[67].mxu0  ;;  %7049 = vmatprep.subr.bf16.mxu1 %v7048_v6  ;;  %v7072_v18 = vpack.c.bf16 %v5711_v57, %v5710_v22 }
 0x401   : > { %v6009_v4 = vadd.f32 %v6008_v20, %v6007_v49  ;;  %6534 = vmatprep.mubr.f32.mxu1 %v9851_v53  ;;  %v7076_v49 = vpack.c.bf16 %v5713_v56, %v5712_v3  ;;  %v5716_v20 = vld [vmem:[%s11365_s9 + $0xb0] sm:$0xff] }
 0x402   : > { %7073 = vmatprep.subr.bf16.mxu0 %v7072_v18 }
 0x403   : > { %v9859_v29 = vadd.f32 %v6009_v4, %v1356_v17  ;;  %v6010_v37 = vpop.f32.mrb[68].mxu0  ;;  %7051 = vmatpush3.bf16.msra.mxu1 %v7048_v6  ;;  %7075 = vmatpush3.bf16.msra.mxu0 %v7072_v18  ;;  %v5717_v4 = vld [vmem:[%s11365_s9 + $0xb8] sm:$0xff]  ;;  %v5718_v17 = vld [vmem:[%s11365_s9 + $0xc0] sm:$0xff] }
 0x404   : > { %v6011_v39 = vpop.f32.mrb[69].mxu0  ;;  %7053 = vmatprep.subr.bf16.mxu1 %v7052_v5  ;;  %7077 = vmatprep.subr.bf16.mxu0 %v7076_v49  ;;  %v7084_v55 = vpack.c.bf16 %v5717_v4, %v5716_v20 }
 0x405   : > { %v6012_v33 = vadd.f32 %v6011_v39, %v6010_v37  ;;  %6535 = vmatmul.mubr.f32.gmra.mrb[68].mxu1 %v9859_v29  ;;  %v7088_v37 = vpack.c.bf16 %v5719_v46, %v5718_v17  ;;  %v5721_v39 = vld [vmem:[%s11365_s9 + $0xd8] sm:$0xff] }
 0x407   : > { %v9865_v50 = vadd.f32 %v6012_v33, %v1357_v62  ;;  %v6013_v27 = vpop.f32.mrb[70].mxu0  ;;  %7055 = vmatpush3.bf16.msra.mxu1 %v7052_v5  ;;  %7079 = vmatpush3.bf16.msra.mxu0 %v7076_v49  ;;  %v7092_v33 = vpack.c.bf16 %v5721_v39, %v5720_v58  ;;  %v5722_v62 = vld [vmem:[%s11365_s9 + $0xe0] sm:$0xff] }
 0x408   : > { %v6014_v45 = vpop.f32.mrb[71].mxu0  ;;  %7057 = vmatprep.subr.bf16.mxu1 %v7056_v30  ;;  %7081 = vmatprep.subr.bf16.mxu0 %v7080_v52 }
 0x409   : > { %v6015_v36 = vadd.f32 %v6014_v45, %v6013_v27  ;;  %6537 = vmatprep.mubr.f32.mxu1 %v9865_v50  ;;  %v7096_v27 = vpack.c.bf16 %v5723_v54, %v5722_v62  ;;  %v9967_v45 = vld [vmem:[%s11366_s10] ss:$0 sm:$0xff] }
 0x40b   : > { %v9871_v14 = vadd.f32 %v6015_v36, %v1358_v42  ;;  %7059 = vmatpush3.bf16.msra.mxu1 %v7056_v30  ;;  %7083 = vmatpush3.bf16.msra.mxu0 %v7080_v52 }
 0x40c   : > { %7061 = vmatprep.subr.bf16.mxu1 %v7060_v7  ;;  %7085 = vmatprep.subr.bf16.mxu0 %v7084_v55 }
 0x40d   : > { %6538 = vmatmul.mubr.f32.gmra.mrb[70].mxu1 %v9871_v14 }
 0x40f   : > { %7063 = vmatpush3.bf16.msra.mxu1 %v7060_v7  ;;  %7087 = vmatpush3.bf16.msra.mxu0 %v7084_v55 }
 0x410   : > { %7065 = vmatprep.subr.bf16.mxu1 %v7064_v59  ;;  %7089 = vmatprep.subr.bf16.mxu0 %v7088_v37 }
 0x413   : > { %7067 = vmatpush3.bf16.msra.mxu1 %v7064_v59  ;;  %7091 = vmatpush3.bf16.msra.mxu0 %v7088_v37 }
 0x414   : > { %7069 = vmatprep.subr.bf16.mxu1 %v7068_v21  ;;  %7093 = vmatprep.subr.bf16.mxu0 %v7092_v33 }
 0x417   : > { %7071 = vmatpush3.bf16.msra.mxu1 %v7068_v21  ;;  %7095 = vmatpush3.bf16.msra.mxu0 %v7092_v33 }
 0x418   : > { %7097 = vmatprep.subr.bf16.mxu0 %v7096_v27 }
 0x41b   : > { %7099 = vmatpush3.bf16.msra.mxu0 %v7096_v27 }
 0x4a8   : > { %v6518_v36 = vpop.f32.mrb[56].mxu1 }
 0x4a9   : > { %v9970_v42 = vadd.f32 %v6518_v36, %v9967_v45  ;;  %v3026_v26 = vpop.f32.mrb[57].mxu1 }
 0x4aa   : > { %v9973_v15 = vadd.f32 %v9967_v45, %v3026_v26 }
 0x4ab   : > { %v3154_v19 = vand.u32 2147483647, %v9970_v42  ;;  %vm3122_vm7 = vcmp.ne.f32.partialorder %v9970_v42, %v9970_v42 }
 0x4ac   : > { %v3153_v11 = vand.u32 2147483647, %v9973_v15  ;;  %vm3121_vm6 = vcmp.ne.f32.partialorder %v9973_v15, %v9973_v15 }
 0x4ad   : > { %v3170_v60 = vsub.f32 0.0, %v3154_v19  ;;  %v3106_v19 = vmax.f32 %v9970_v42, 0.0 }
 0x4ae   : > { %v3169_v1 = vsub.f32 0.0, %v3153_v11 }
 0x4af   : > { %v3187_v23 = vmul.f32 1.442695, %v3170_v60  ;;  %v3105_v60 = vmax.f32 %v9973_v15, 0.0 }
 0x4b0   : > { %v3185_v9 = vmul.f32 1.442695, %v3169_v1  ;;  %v6521_v6 = vpop.f32.mrb[58].mxu1 }
 0x4b1   : > { %7518 = vpow2.f32 %v3187_v23  ;;  %v9978_v35 = vadd.f32 %v6521_v6, %v9967_v45  ;;  %v3036_v51 = vpop.f32.mrb[59].mxu1 }
 0x4b2   : > { %7520 = vpow2.f32 %v3185_v9  ;;  %v9981_v5 = vadd.f32 %v9967_v45, %v3036_v51 }
 0x4b3   : > { %v3156_v40 = vand.u32 2147483647, %v9978_v35  ;;  %v3108_v9 = vmax.f32 %v9978_v35, 0.0  ;;  %vm3124_vm12 = vcmp.ne.f32.partialorder %v9978_v35, %v9978_v35 }
 0x4b4   : > { %v3155_v28 = vand.u32 2147483647, %v9981_v5  ;;  %vm3123_vm11 = vcmp.ne.f32.partialorder %v9981_v5, %v9981_v5 }
 0x4b5   : > { %v3172_v30 = vsub.f32 0.0, %v3156_v40  ;;  %v3107_v40 = vmax.f32 %v9981_v5, 0.0 }
 0x4b6   : > { %v3171_v47 = vsub.f32 0.0, %v3155_v28 }
 0x4b7   : > { %v3191_v0 = vmul.f32 1.442695, %v3172_v30 }
 0x4b8   : > { %v3189_v7 = vmul.f32 1.442695, %v3171_v47  ;;  %v6524_v38 = vpop.f32.mrb[60].mxu1 }
 0x4b9   : > { %7522 = vpow2.f32 %v3191_v0  ;;  %v9986_v63 = vadd.f32 %v6524_v38, %v9967_v45  ;;  %v3046_v59 = vpop.f32.mrb[61].mxu1 }
 0x4ba   : > { %7524 = vpow2.f32 %v3189_v7  ;;  %v9989_v10 = vadd.f32 %v9967_v45, %v3046_v59 }
 0x4bb   : > { %v7519_v25 = vpop.eup %7518  ;;  %v3158_v21 = vand.u32 2147483647, %v9986_v63  ;;  %vm3126_vm4 = vcmp.ne.f32.partialorder %v9986_v63, %v9986_v63 }
 0x4bc   : > { %v7521_v22 = vpop.eup %7520  ;;  %v3157_v57 = vand.u32 2147483647, %v9989_v10  ;;  %v3226_v3 = vadd.f32 1.0, %v7519_v25  ;;  %v3229_v4 = vmul.f32 -0.5, %v7519_v25  ;;  %v3232_v33 = vand.u32 2147483647, %v7519_v25 }
 0x4bd   : > { %v3174_v18 = vsub.f32 0.0, %v3158_v21  ;;  %v3217_v56 = vadd.f32 1.0, %v7521_v22  ;;  %v3220_v20 = vmul.f32 -0.5, %v7521_v22  ;;  %v3223_v39 = vand.u32 2147483647, %v7521_v22 }
 0x4be   : > { %v3173_v49 = vsub.f32 0.0, %v3157_v57  ;;  %7526 = vlog2.f32 %v3226_v3  ;;  %v3230_v36 = vadd.f32 1.0, %v3229_v4  ;;  %vm10014_vm8 = vcmp.lt.f32.partialorder %v3232_v33, 0.0004427343 }
 0x4bf   : > { %v3195_v44 = vmul.f32 1.442695, %v3174_v18  ;;  %7528 = vlog2.f32 %v3217_v56  ;;  %v3221_v27 = vadd.f32 1.0, %v3220_v20  ;;  %vm10019_vm1 = vcmp.lt.f32.partialorder %v3223_v39, 0.0004427343 }
 0x4c0   : > { %v3193_v43 = vmul.f32 1.442695, %v3173_v49  ;;  %v6527_v52 = vpop.f32.mrb[62].mxu1  ;;  %v3231_v38 = vmul.f32 %v7519_v25, %v3230_v36  ;;  %vm3125_vm0 = vcmp.ne.f32.partialorder %v9989_v10, %v9989_v10 }
 0x4c1   : > { %7530 = vpow2.f32 %v3195_v44  ;;  %v9994_v55 = vadd.f32 %v6527_v52, %v9967_v45  ;;  %v3056_v17 = vpop.f32.mrb[63].mxu1  ;;  %v3222_v0 = vmul.f32 %v7521_v22, %v3221_v27 }
 0x4c2   : > { %7532 = vpow2.f32 %v3193_v43  ;;  %v9997_v46 = vadd.f32 %v9967_v45, %v3056_v17 }
 0x4c3   : > { %v9999_v37 = vpop.eup %7522  ;;  %v3160_v58 = vand.u32 2147483647, %v9994_v55  ;;  %vm3128_vm10 = vcmp.ne.f32.partialorder %v9994_v55, %v9994_v55 }
 0x4c4   : > { %v10002_v62 = vpop.eup %7524  ;;  %v3159_v54 = vand.u32 2147483647, %v9997_v46  ;;  %v3244_v26 = vadd.f32 1.0, %v9999_v37  ;;  %v3247_v18 = vmul.f32 -0.5, %v9999_v37  ;;  %v3250_v20 = vand.u32 2147483647, %v9999_v37 }
 0x4c5   : > { %v3176_v11 = vsub.f32 0.0, %v3160_v58  ;;  %v3235_v1 = vadd.f32 1.0, %v10002_v62  ;;  %v3238_v22 = vmul.f32 -0.5, %v10002_v62  ;;  %v3241_v52 = vand.u32 2147483647, %v10002_v62 }
 0x4c6   : > { %v3175_v23 = vsub.f32 0.0, %v3159_v54  ;;  %7534 = vlog2.f32 %v3244_v26  ;;  %v3248_v36 = vadd.f32 1.0, %v3247_v18  ;;  %vm10058_vm13 = vcmp.lt.f32.partialorder %v3250_v20, 0.0004427343 }
 0x4c7   : > { %v3199_v6 = vmul.f32 1.442695, %v3176_v11  ;;  %7536 = vlog2.f32 %v3235_v1  ;;  %v3239_v1 = vadd.f32 1.0, %v3238_v22  ;;  %vm10066_vm14 = vcmp.lt.f32.partialorder %v3241_v52, 0.0004427343 }
 0x4c8   : > { %v7527_v28 = vpop.eup %7526  ;;  %v3197_v30 = vmul.f32 1.442695, %v3175_v23  ;;  %v6530_v47 = vpop.f32.mrb[64].mxu1  ;;  %vm3127_vm2 = vcmp.ne.f32.partialorder %v9997_v46, %v9997_v46 }
 0x4c9   : > { %v7529_v59 = vpop.eup %7528  ;;  %7538 = vpow2.f32 %v3199_v6  ;;  %v10024_v21 = vadd.f32 %v6530_v47, %v9967_v45  ;;  %v3066_v57 = vpop.f32.mrb[65].mxu1  ;;  %v3228_v3 = vmul.f32 0.6931472, %v7527_v28 }
 0x4ca   : > { %7540 = vpow2.f32 %v3197_v30  ;;  %v10028_v56 = vadd.f32 %v9967_v45, %v3066_v57  ;;  %v3219_v49 = vmul.f32 0.6931472, %v7529_v59 }
 0x4cb   : > { %v10031_v44 = vpop.eup %7530  ;;  %v3162_v25 = vand.u32 2147483647, %v10024_v21  ;;  %v3234_v43 = vsel %vm10014_vm8, %v3231_v38, %v3228_v3  ;;  %v3249_v3 = vmul.f32 %v9999_v37, %v3248_v36 }
 0x4cc   : > { %v10038_v4 = vpop.eup %7532  ;;  %v3161_v17 = vand.u32 2147483647, %v10028_v56  ;;  %v3225_v58 = vsel %vm10019_vm1, %v3222_v0, %v3219_v49  ;;  %v3362_v39 = vadd.f32 %v3234_v43, %v3106_v19  ;;  %v3262_v33 = vadd.f32 1.0, %v10031_v44 }
 0x4cd   : > { %v3178_v54 = vsub.f32 0.0, %v3162_v25  ;;  %v3361_v27 = vadd.f32 %v3225_v58, %v3105_v60  ;;  %v3253_v26 = vadd.f32 1.0, %v10038_v4  ;;  %v3256_v19 = vmul.f32 -0.5, %v10038_v4 }
 0x4ce   : > { %v3177_v11 = vsub.f32 0.0, %v3161_v17  ;;  %7542 = vlog2.f32 %v3262_v33  ;;  %v3378_v30 = vsel %vm3122_vm7, %v9970_v42, %v3362_v39  ;;  %v3240_v49 = vmul.f32 %v10002_v62, %v3239_v1 }
 0x4cf   : > { %v3203_v23 = vmul.f32 1.442695, %v3178_v54  ;;  %v3377_v6 = vsel %vm3121_vm6, %v9973_v15, %v3361_v27  ;;  %7544 = vlog2.f32 %v3253_v26  ;;  %v3265_v15 = vmul.f32 -0.5, %v10031_v44 }
 0x4d0   : > { %v7535_v60 = vpop.eup %7534  ;;  %v3201_v51 = vmul.f32 1.442695, %v3177_v11  ;;  %v6533_v28 = vpop.f32.mrb[66].mxu1  ;;  %6572 = vmatprep.mubr.f32.mxu1 %v3377_v6  ;;  %v3257_v52 = vadd.f32 1.0, %v3256_v19  ;;  %v3110_v54 = vmax.f32 %v9986_v63, 0.0  ;;  %v3109_v26 = vmax.f32 %v9989_v10, 0.0 }
 0x4d1   : > { %v7537_v0 = vpop.eup %7536  ;;  %v10064_v7 = vadd.f32 %v6533_v28, %v9967_v45  ;;  %v3076_v38 = vpop.f32.mrb[67].mxu1  ;;  %6573 = vmatmul.mubr.f32.vlgmr.msra.gmra.mrb[72].mxu1 %v3378_v30  ;;  %v3246_v57 = vmul.f32 0.6931472, %v7535_v60  ;;  %v3266_v62 = vadd.f32 1.0, %v3265_v15  ;;  %v3259_v11 = vand.u32 2147483647, %v10038_v4 }
 0x4d2   : > { %7546 = vpow2.f32 %v3201_v51  ;;  %v10072_v42 = vadd.f32 %v9967_v45, %v3076_v38  ;;  %v3237_v18 = vmul.f32 0.6931472, %v7537_v0  ;;  %v3268_v1 = vand.u32 2147483647, %v10031_v44 }
 0x4d3   : > { %v10075_v22 = vpop.eup %7538  ;;  %7548 = vpow2.f32 %v3203_v23  ;;  %v3164_v25 = vand.u32 2147483647, %v10064_v7  ;;  %v3252_v43 = vsel %vm10058_vm13, %v3249_v3, %v3246_v57  ;;  %v3258_v28 = vmul.f32 %v10038_v4, %v3257_v52 }
 0x4d4   : > { %v10080_v20 = vpop.eup %7540  ;;  %v3163_v37 = vand.u32 2147483647, %v10072_v42  ;;  %v3243_v17 = vsel %vm10066_vm14, %v3240_v49, %v3237_v18  ;;  %v3364_v58 = vadd.f32 %v3252_v43, %v3108_v9  ;;  %v3267_v30 = vmul.f32 %v10031_v44, %v3266_v62 }
 0x4d5   : > { %v3180_v39 = vsub.f32 0.0, %v3164_v25  ;;  %v3363_v33 = vadd.f32 %v3243_v17, %v3107_v40  ;;  %v3271_v27 = vadd.f32 1.0, %v10080_v20  ;;  %v3280_v40 = vadd.f32 1.0, %v10075_v22 }
 0x4d6   : > { %v3179_v36 = vsub.f32 0.0, %v3163_v37  ;;  %v3380_v51 = vsel %vm3124_vm12, %v9978_v35, %v3364_v58  ;;  %v3274_v38 = vmul.f32 -0.5, %v10080_v20  ;;  %vm3269_vm15 = vcmp.lt.f32.partialorder %v3268_v1, 0.0004427343 }
 0x4d7   : > { %v3207_v23 = vmul.f32 1.442695, %v3180_v39  ;;  %v3379_v9 = vsel %vm3123_vm11, %v9981_v5, %v3363_v33  ;;  %7550 = vlog2.f32 %v3271_v27  ;;  %vm3260_vm3 = vcmp.lt.f32.partialorder %v3259_v11, 0.0004427343 }
 0x4d8   : > { %v7543_v6 = vpop.eup %7542  ;;  %v3205_v19 = vmul.f32 1.442695, %v3179_v36  ;;  %v6536_v60 = vpop.f32.mrb[68].mxu1  ;;  %6575 = vmatprep.mubr.f32.mxu1 %v3379_v9  ;;  %v3283_v25 = vmul.f32 -0.5, %v10075_v22  ;;  %v3275_v17 = vadd.f32 1.0, %v3274_v38  ;;  %v3112_v39 = vmax.f32 %v9994_v55, 0.0 }
 0x4d9   : > { %v7545_v47 = vpop.eup %7544  ;;  %7552 = vpow2.f32 %v3207_v23  ;;  %v10106_v5 = vadd.f32 %v6536_v60, %v9967_v45  ;;  %v3086_v15 = vpop.f32.mrb[69].mxu1  ;;  %6576 = vmatmul.mubr.f32.gmra.mrb[74].mxu1 %v3380_v51  ;;  %v3264_v0 = vmul.f32 0.6931472, %v7543_v6  ;;  %v3277_v27 = vand.u32 2147483647, %v10080_v20 }
 0x4da   : > { %7554 = vpow2.f32 %v3205_v19  ;;  %v10110_v59 = vadd.f32 %v9967_v45, %v3086_v15  ;;  %v3255_v57 = vmul.f32 0.6931472, %v7545_v47  ;;  %v3284_v1 = vadd.f32 1.0, %v3283_v25 }
 0x4db   : > { %v3166_v35 = vand.u32 2147483647, %v10106_v5  ;;  %v3270_v44 = vsel %vm3269_vm15, %v3267_v30, %v3264_v0  ;;  %7556 = vlog2.f32 %v3280_v40  ;;  %v3286_v19 = vand.u32 2147483647, %v10075_v22 }
 0x4dc   : > { %v10113_v4 = vpop.eup %7546  ;;  %v3165_v3 = vand.u32 2147483647, %v10110_v59  ;;  %v3261_v18 = vsel %vm3260_vm3, %v3258_v28, %v3255_v57  ;;  %v3366_v49 = vadd.f32 %v3270_v44, %v3110_v54  ;;  %v3111_v47 = vmax.f32 %v9997_v46, 0.0 }
 0x4dd   : > { %v10117_v43 = vpop.eup %7548  ;;  %v3182_v52 = vsub.f32 0.0, %v3166_v35  ;;  %v3365_v37 = vadd.f32 %v3261_v18, %v3109_v26  ;;  %v3289_v58 = vadd.f32 1.0, %v10113_v4  ;;  %vm3278_vm5 = vcmp.lt.f32.partialorder %v3277_v27, 0.0004427343 }
 0x4de   : > { %v3181_v62 = vsub.f32 0.0, %v3165_v3  ;;  %v3382_v11 = vsel %vm3126_vm4, %v9986_v63, %v3366_v49  ;;  %v3298_v23 = vadd.f32 1.0, %v10117_v43  ;;  %v3292_v63 = vmul.f32 -0.5, %v10113_v4 }
 0x4df   : > { %v3211_v33 = vmul.f32 1.442695, %v3182_v52  ;;  %v3381_v54 = vsel %vm3125_vm0, %v9989_v10, %v3365_v37  ;;  %7558 = vlog2.f32 %v3289_v58  ;;  %v3276_v10 = vmul.f32 %v10080_v20, %v3275_v17 }
 0x4e0   : > { %v3209_v36 = vmul.f32 1.442695, %v3181_v62  ;;  %v6539_v26 = vpop.f32.mrb[70].mxu1  ;;  %6578 = vmatprep.mubr.f32.mxu1 %v3381_v54  ;;  %v3285_v0 = vmul.f32 %v10075_v22, %v3284_v1  ;;  %v3301_v44 = vmul.f32 -0.5, %v10117_v43  ;;  %vm3287_vm9 = vcmp.lt.f32.partialorder %v3286_v19, 0.0004427343 }
 0x4e1   : > { %v7551_v9 = vpop.eup %7550  ;;  %7560 = vpow2.f32 %v3211_v33  ;;  %v10130_v40 = vadd.f32 %v6539_v26, %v9967_v45  ;;  %v3096_v6 = vpop.f32.mrb[71].mxu1  ;;  %6579 = vmatmul.mubr.f32.gmra.mrb[76].mxu1 %v3382_v11  ;;  %v3293_v25 = vadd.f32 1.0, %v3292_v63  ;;  %v3295_v17 = vand.u32 2147483647, %v10113_v4 }
 0x4e2   : > { %7562 = vpow2.f32 %v3209_v36  ;;  %v10135_v60 = vadd.f32 %v9967_v45, %v3096_v6  ;;  %v3273_v51 = vmul.f32 0.6931472, %v7551_v9  ;;  %v3113_v62 = vmax.f32 %v10028_v56, 0.0 }
 0x4e3   : > { %v10138_v28 = vpop.eup %7552  ;;  %v3168_v30 = vand.u32 2147483647, %v10130_v40  ;;  %7564 = vlog2.f32 %v3298_v23  ;;  %v3302_v27 = vadd.f32 1.0, %v3301_v44  ;;  %vm3296_vm6 = vcmp.lt.f32.partialorder %v3295_v17, 0.0004427343 }
 0x4e4   : > { %v10142_v15 = vpop.eup %7554  ;;  %v3167_v20 = vand.u32 2147483647, %v10135_v60  ;;  %v3279_v45 = vsel %vm3278_vm5, %v3276_v10, %v3273_v51  ;;  %v3316_v36 = vadd.f32 1.0, %v10138_v28  ;;  %v3304_v9 = vand.u32 2147483647, %v10117_v43 }
 0x4e5   : > { %v7557_v38 = vpop.eup %7556  ;;  %v3184_v57 = vsub.f32 0.0, %v3168_v30  ;;  %v3367_v35 = vadd.f32 %v3279_v45, %v3111_v47  ;;  %v3307_v3 = vadd.f32 1.0, %v10142_v15  ;;  %v3310_v11 = vmul.f32 -0.5, %v10142_v15 }
 0x4e6   : > { %v3183_v18 = vsub.f32 0.0, %v3167_v20  ;;  %v3282_v49 = vmul.f32 0.6931472, %v7557_v38  ;;  %v3114_v10 = vmax.f32 %v10024_v21, 0.0  ;;  %vm3129_vm7 = vcmp.ne.f32.partialorder %v10028_v56, %v10028_v56 }
 0x4e7   : > { %v3215_v52 = vmul.f32 1.442695, %v3184_v57  ;;  %v3383_v37 = vsel %vm3127_vm2, %v9997_v46, %v3367_v35  ;;  %7566 = vlog2.f32 %v3307_v3  ;;  %v3294_v46 = vmul.f32 %v10113_v4, %v3293_v25 }
 0x4e8   : > { %v3213_v58 = vmul.f32 1.442695, %v3183_v18  ;;  %6581 = vmatprep.mubr.f32.mxu1 %v3383_v37  ;;  %v3288_v22 = vsel %vm3287_vm9, %v3285_v0, %v3282_v49  ;;  %v3303_v51 = vmul.f32 %v10117_v43, %v3302_v27  ;;  %v3311_v30 = vadd.f32 1.0, %v3310_v11 }
 0x4e9   : > { %v7559_v33 = vpop.eup %7558  ;;  %7568 = vpow2.f32 %v3215_v52  ;;  %v3368_v54 = vadd.f32 %v3288_v22, %v3112_v39  ;;  %v3319_v47 = vmul.f32 -0.5, %v10138_v28  ;;  %vm3305_vm8 = vcmp.lt.f32.partialorder %v3304_v9, 0.0004427343 }
 0x4ea   : > { %7570 = vpow2.f32 %v3213_v58  ;;  %v3291_v26 = vmul.f32 0.6931472, %v7559_v33  ;;  %v3313_v0 = vand.u32 2147483647, %v10142_v15  ;;  %vm3130_vm1 = vcmp.ne.f32.partialorder %v10024_v21, %v10024_v21 }
 0x4eb   : > { %v10158_v1 = vpop.eup %7560  ;;  %v3384_v23 = vsel %vm3128_vm10, %v9994_v55, %v3368_v54  ;;  %7572 = vlog2.f32 %v3316_v36  ;;  %v3322_v35 = vand.u32 2147483647, %v10138_v28  ;;  %v3312_v3 = vmul.f32 %v10142_v15, %v3311_v30 }
 0x4ec   : > { %v10162_v6 = vpop.eup %7562  ;;  %6582 = vmatmul.mubr.f32.gmra.mrb[78].mxu1 %v3384_v23  ;;  %v3297_v39 = vsel %vm3296_vm6, %v3294_v46, %v3291_v26  ;;  %v3334_v20 = vadd.f32 1.0, %v10158_v1  ;;  %v3320_v18 = vadd.f32 1.0, %v3319_v47  ;;  %v3115_v52 = vmax.f32 %v10072_v42, 0.0 }
 0x4ed   : > { %v7565_v19 = vpop.eup %7564  ;;  %v3369_v4 = vadd.f32 %v3297_v39, %v3113_v62  ;;  %v3325_v63 = vadd.f32 1.0, %v10162_v6  ;;  %vm3314_vm11 = vcmp.lt.f32.partialorder %v3313_v0, 0.0004427343  ;;  %v3337_v37 = vmul.f32 -0.5, %v10158_v1 }
 0x4ee   : > { %v3300_v55 = vmul.f32 0.6931472, %v7565_v19  ;;  %vm3131_vm12 = vcmp.ne.f32.partialorder %v10072_v42, %v10072_v42  ;;  %v3116_v33 = vmax.f32 %v10064_v7, 0.0  ;;  %vm3323_vm13 = vcmp.lt.f32.partialorder %v3322_v35, 0.0004427343 }
 0x4ef   : > { %v3385_v45 = vsel %vm3129_vm7, %v10028_v56, %v3369_v4  ;;  %7574 = vlog2.f32 %v3325_v63  ;;  %v3328_v56 = vmul.f32 -0.5, %v10162_v6  ;;  %v3321_v27 = vmul.f32 %v10138_v28, %v3320_v18 }
 0x4f0   : > { %6584 = vmatprep.mubr.f32.mxu1 %v3385_v45  ;;  %v3306_v38 = vsel %vm3305_vm8, %v3303_v51, %v3300_v55  ;;  %7576 = vlog2.f32 %v3334_v20  ;;  %v3331_v46 = vand.u32 2147483647, %v10162_v6  ;;  %v3338_v11 = vadd.f32 1.0, %v3337_v37 }
 0x4f1   : > { %v7567_v57 = vpop.eup %7566  ;;  %v3370_v43 = vadd.f32 %v3306_v38, %v3114_v10  ;;  %v3329_v36 = vadd.f32 1.0, %v3328_v56  ;;  %v3340_v9 = vand.u32 2147483647, %v10158_v1  ;;  %vm3132_vm14 = vcmp.ne.f32.partialorder %v10064_v7, %v10064_v7 }
 0x4f2   : > { %v3309_v44 = vmul.f32 0.6931472, %v7567_v57  ;;  %v3117_v4 = vmax.f32 %v10110_v59, 0.0  ;;  %vm3332_vm15 = vcmp.lt.f32.partialorder %v3331_v46, 0.0004427343  ;;  %v3339_v47 = vmul.f32 %v10158_v1, %v3338_v11 }
 0x4f3   : > { %v10178_v49 = vpop.eup %7568  ;;  %v3386_v25 = vsel %vm3130_vm1, %v10024_v21, %v3370_v43  ;;  %v3118_v45 = vmax.f32 %v10106_v5, 0.0  ;;  %vm3341_vm3 = vcmp.lt.f32.partialorder %v3340_v9, 0.0004427343  ;;  %vm3133_vm0 = vcmp.ne.f32.partialorder %v10110_v59, %v10110_v59 }
 0x4f4   : > { %v7571_v17 = vpop.eup %7570  ;;  %6585 = vmatmul.mubr.f32.gmra.mrb[80].mxu1 %v3386_v25  ;;  %v3315_v58 = vsel %vm3314_vm11, %v3312_v3, %v3309_v44  ;;  %v3352_v15 = vadd.f32 1.0, %v10178_v49  ;;  %v3355_v19 = vmul.f32 -0.5, %v10178_v49  ;;  %v3358_v35 = vand.u32 2147483647, %v10178_v49 }
 0x4f5   : > { %v7573_v22 = vpop.eup %7572  ;;  %v3371_v62 = vadd.f32 %v3315_v58, %v3115_v52  ;;  %v3343_v54 = vadd.f32 1.0, %v7571_v17  ;;  %v3346_v63 = vmul.f32 -0.5, %v7571_v17  ;;  %vm3134_vm4 = vcmp.ne.f32.partialorder %v10106_v5, %v10106_v5 }
 0x4f6   : > { %v3318_v21 = vmul.f32 0.6931472, %v7573_v22  ;;  %7578 = vlog2.f32 %v3352_v15  ;;  %v3356_v57 = vadd.f32 1.0, %v3355_v19  ;;  %v3349_v1 = vand.u32 2147483647, %v7571_v17 }
 0x4f7   : > { %v3387_v26 = vsel %vm3131_vm12, %v10072_v42, %v3371_v62  ;;  %7580 = vlog2.f32 %v3343_v54  ;;  %v3330_v42 = vmul.f32 %v10162_v6, %v3329_v36  ;;  %v3347_v6 = vadd.f32 1.0, %v3346_v63  ;;  %v5725_v54 = vld [vmem:[%s11365_s9 + $0xf8] sm:$0xff]  ;;  %v5709_v36 = vld [vmem:[%s11548_s18] ss:$0 sm:$0xff]  ;;  %s11572_s18 = sld [smem:[#allocation18_spill]] }
 0x4f8   : > { %6587 = vmatprep.mubr.f32.mxu1 %v3387_v26  ;;  %v3324_v23 = vsel %vm3323_vm13, %v3321_v27, %v3318_v21  ;;  %v3357_v25 = vmul.f32 %v10178_v49, %v3356_v57  ;;  %v3120_v58 = vmax.f32 %v10130_v40, 0.0  ;;  %vm3359_vm5 = vcmp.lt.f32.partialorder %v3358_v35, 0.0004427343 }
 0x4f9   : > { %v7575_v39 = vpop.eup %7574  ;;  %v3372_v10 = vadd.f32 %v3324_v23, %v3116_v33  ;;  %v3348_v37 = vmul.f32 %v7571_v17, %v3347_v6  ;;  %vm3350_vm2 = vcmp.lt.f32.partialorder %v3349_v1, 0.0004427343  ;;  %vm3135_vm9 = vcmp.ne.f32.partialorder %v10135_v60, %v10135_v60  ;;  %v5724_v17 = vld [vmem:[%s11365_s9 + $0xf0] sm:$0xff] }
 0x4fa   : > { %v7577_v28 = vpop.eup %7576  ;;  %v3327_v51 = vmul.f32 0.6931472, %v7575_v39  ;;  %vm3136_vm10 = vcmp.ne.f32.partialorder %v10130_v40, %v10130_v40  ;;  %v7100_v21 = vpack.c.bf16 %v5725_v54, %v5724_v17  ;;  %v5736_v17 = vld [vmem:[%s11367_s11 + $0xc0] sm:$0xff]  ;;  %v5737_v54 = vld [vmem:[%s11367_s11 + $0xc8] sm:$0xff] }
 0x4fb   : > { %v3388_v55 = vsel %vm3132_vm14, %v10064_v7, %v3372_v10  ;;  %v3336_v30 = vmul.f32 0.6931472, %v7577_v28 }
 0x4fc   : > { %6588 = vmatmul.mubr.f32.gmra.mrb[82].mxu1 %v3388_v55  ;;  %v3333_v20 = vsel %vm3332_vm15, %v3330_v42, %v3327_v51  ;;  %7101 = vmatprep.subr.bf16.mxu0 %v7100_v21 }
 0x4fd   : > { %v3373_v0 = vadd.f32 %v3333_v20, %v3117_v4  ;;  %v3342_v38 = vsel %vm3341_vm3, %v3339_v47, %v3336_v30  ;;  %7103 = vmatpush3.bf16.msra.mxu0 %v7100_v21  ;;  %v5738_v21 = vld [vmem:[%s11367_s11 + $0xd0] sm:$0xff]  ;;  %p11574_p11 = scmp.ne.s32.totalorder %s11572_s18, 0 }
 0x4fe   : > { %v3374_v43 = vadd.f32 %v3342_v38, %v3118_v45 }
 0x4ff   : > { %v3389_v7 = vsel %vm3133_vm0, %v10110_v59, %v3373_v0  ;;  %v3119_v59 = vmax.f32 %v10135_v60, 0.0  ;;  %p7860_p13 = pnand %p7859_p8, %p11574_p11 }
 0x500   : > { %v7579_v44 = vpop.eup %7578  ;;  %6590 = vmatprep.mubr.f32.mxu1 %v3389_v7  ;;  %v3390_v3 = vsel %vm3134_vm4, %v10106_v5, %v3374_v43 }
 0x501   : > { %v7581_v18 = vpop.eup %7580  ;;  %6591 = vmatmul.mubr.f32.gmra.mrb[84].mxu1 %v3390_v3  ;;  %v3354_v56 = vmul.f32 0.6931472, %v7579_v44  ;;  %p7861_p1 = pneg %p7860_p13 }
 0x502   : > { %v3345_v52 = vmul.f32 0.6931472, %v7581_v18 }
 0x503   : > { %v3360_v15 = vsel %vm3359_vm5, %v3357_v25, %v3354_v56  ;;  %p7868_p0 = pnand %p7867_p2, %p7861_p1 }
 0x504   : > { %v3351_v22 = vsel %vm3350_vm2, %v3348_v37, %v3345_v52  ;;  %v3376_v62 = vadd.f32 %v3360_v15, %v3120_v58  ;;  %v5729_v37 = vld [vmem:[%s11367_s11 + $0x88] sm:$0xff]  ;;  %v5731_v58 = vld [vmem:[%s11367_s11 + $0x98] sm:$0xff]  ;;  %v5732_v15 = vld [vmem:[%s11367_s11 + $0xa0] sm:$0xff] }
 0x505   : > { %v3375_v33 = vadd.f32 %v3351_v22, %v3119_v59  ;;  %v5733_v22 = vld [vmem:[%s11367_s11 + $0xa8] sm:$0xff] }
 0x506   : > { %v3392_v49 = vsel %vm3136_vm10, %v10130_v40, %v3376_v62  ;;  %v5734_v62 = vld [vmem:[%s11367_s11 + $0xb0] sm:$0xff] }
 0x507   : > { %v3391_v5 = vsel %vm3135_vm9, %v10135_v60, %v3375_v33  ;;  %v7112_v33 = vpack.c.bf16 %v5733_v22, %v5732_v15 }
 0x508   : > { %6593 = vmatprep.mubr.f32.mxu1 %v3391_v5  ;;  %v5735_v5 = vld [vmem:[%s11367_s11 + $0xb8] sm:$0xff] }
 0x509   : > { %6594 = vmatmul.mubr.f32.gmra.mrb[86].mxu1 %v3392_v49  ;;  %v7116_v49 = vpack.c.bf16 %v5735_v5, %v5734_v62 }
 0x5a4   : > { %v6574_v27 = vpop.f32.mrb[72].mxu1 }
 0x5a5   : > { %v3555_v60 = vadd.f32 %v6574_v27, %v9628_v24  ;;  %v3475_v40 = vpop.f32.mrb[73].mxu1  ;;  %v7120_v27 = vpack.c.bf16 %v5737_v54, %v5736_v17 }
 0x5a6   : > { %v3554_v26 = vadd.f32 %v3475_v40, %v9609_v12  ;;  %v5740_v40 = vld [vmem:[%s11367_s11 + $0xe0] sm:$0xff] }
 0x5a7   : > { %v10228_v11 = vadd.f32 %v5709_v36, %v3555_v60  ;;  %v5739_v60 = vld [vmem:[%s11367_s11 + $0xd8] sm:$0xff] }
 0x5a8   : > { %v10226_v46 = vadd.f32 %v5709_v36, %v3554_v26  ;;  %v5741_v26 = vld [vmem:[%s11367_s11 + $0xe8] sm:$0xff] }
 0x5aa   : > { %6628 = vmatprep.mubr.f32.mxu0 %v10226_v46 }
 0x5ab   : > { %6629 = vmatmul.mubr.f32.vlgmr.msra.gmra.mrb[72].mxu0 %v10228_v11 }
 0x5ac   : > { %v6577_v23 = vpop.f32.mrb[74].mxu1 }
 0x5ad   : > { %v3557_v9 = vadd.f32 %v6577_v23, %v9681_v34  ;;  %v3485_v39 = vpop.f32.mrb[75].mxu1  ;;  %v5742_v23 = vld [vmem:[%s11367_s11 + $0xf0] sm:$0xff] }
 0x5ae   : > { %v3556_v24 = vadd.f32 %v3485_v39, %v9659_v13  ;;  %v5743_v39 = vld [vmem:[%s11367_s11 + $0xf8] sm:$0xff] }
 0x5af   : > { %v10236_v19 = vadd.f32 %v5709_v36, %v3557_v9  ;;  %v7128_v9 = vpack.c.bf16 %v5741_v26, %v5740_v40 }
 0x5b0   : > { %v10234_v10 = vadd.f32 %v5709_v36, %v3556_v24  ;;  %v7132_v24 = vpack.c.bf16 %v5743_v39, %v5742_v23 }
 0x5b2   : > { %6631 = vmatprep.mubr.f32.mxu0 %v10234_v10 }
 0x5b3   : > { %6632 = vmatmul.mubr.f32.gmra.mrb[74].mxu0 %v10236_v19 }
 0x5b4   : > { %v6580_v12 = vpop.f32.mrb[76].mxu1 }
 0x5b5   : > { %v3559_v28 = vadd.f32 %v6580_v12, %v9717_v8  ;;  %v3495_v4 = vpop.f32.mrb[77].mxu1  ;;  %v5746_v12 = vld [vmem:[%s11365_s9 + $0x100] sm:$0xff] }
 0x5b6   : > { %v3558_v51 = vadd.f32 %v3495_v4, %v9697_v41  ;;  %v5748_v4 = vld [vmem:[%s11365_s9 + $0x110] sm:$0xff] }
 0x5b7   : > { %v10244_v34 = vadd.f32 %v5709_v36, %v3559_v28  ;;  %v5747_v28 = vld [vmem:[%s11365_s9 + $0x108] sm:$0xff] }
 0x5b8   : > { %v10242_v42 = vadd.f32 %v5709_v36, %v3558_v51  ;;  %v7136_v51 = vpack.c.bf16 %v5747_v28, %v5746_v12 }
 0x5ba   : > { %6634 = vmatprep.mubr.f32.mxu0 %v10242_v42  ;;  %7137 = vmatprep.subr.bf16.mxu0 %v7136_v51 }
 0x5bb   : > { %6635 = vmatmul.mubr.f32.gmra.mrb[76].mxu0 %v10244_v34 }
 0x5bc   : > { %7139 = vmatpush3.bf16.msra.mxu0 %v7136_v51 }
 0x5bf   : > { %v6583_v13 = vpop.f32.mrb[78].mxu1 }
 0x5c0   : > { %v3561_v63 = vadd.f32 %v6583_v13, %v9760_v31  ;;  %v3505_v55 = vpop.f32.mrb[79].mxu1  ;;  %v5749_v13 = vld [vmem:[%s11365_s9 + $0x118] sm:$0xff] }
 0x5c1   : > { %v3560_v30 = vadd.f32 %v3505_v55, %v9739_v61  ;;  %v5750_v55 = vld [vmem:[%s11365_s9 + $0x120] sm:$0xff] }
 0x5c2   : > { %v10252_v8 = vadd.f32 %v5709_v36, %v3561_v63  ;;  %v7140_v63 = vpack.c.bf16 %v5749_v13, %v5748_v4 }
 0x5c3   : > { %v10250_v47 = vadd.f32 %v5709_v36, %v3560_v30  ;;  %v5751_v30 = vld [vmem:[%s11365_s9 + $0x128] sm:$0xff] }
 0x5c4   : > { %7141 = vmatprep.subr.bf16.mxu0 %v7140_v63 }
 0x5c5   : > { %6637 = vmatprep.mubr.f32.mxu0 %v10250_v47  ;;  %7143 = vmatpush3.bf16.msra.mxu0 %v7140_v63 }
 0x5c6   : > { %6638 = vmatmul.mubr.f32.gmra.mrb[78].mxu0 %v10252_v8 }
 0x5c7   : > { %v6586_v41 = vpop.f32.mrb[80].mxu1 }
 0x5c8   : > { %v3563_v20 = vadd.f32 %v6586_v41, %v9799_v16  ;;  %v3515_v45 = vpop.f32.mrb[81].mxu1  ;;  %v7144_v41 = vpack.c.bf16 %v5751_v30, %v5750_v55 }
 0x5c9   : > { %v3562_v0 = vadd.f32 %v3515_v45, %v9781_v2  ;;  %v5753_v45 = vld [vmem:[%s11365_s9 + $0x138] sm:$0xff] }
 0x5ca   : > { %v10260_v31 = vadd.f32 %v5709_v36, %v3563_v20  ;;  %v5752_v20 = vld [vmem:[%s11365_s9 + $0x130] sm:$0xff]  ;;  %7145 = vmatprep.subr.bf16.mxu0 %v7144_v41 }
 0x5cb   : > { %v10258_v38 = vadd.f32 %v5709_v36, %v3562_v0  ;;  %v7148_v0 = vpack.c.bf16 %v5753_v45, %v5752_v20  ;;  %7147 = vmatpush3.bf16.msra.mxu0 %v7144_v41 }
 0x5cd   : > { %6640 = vmatprep.mubr.f32.mxu0 %v10258_v38  ;;  %7149 = vmatprep.subr.bf16.mxu0 %v7148_v0 }
 0x5ce   : > { %6641 = vmatmul.mubr.f32.gmra.mrb[80].mxu0 %v10260_v31 }
 0x5cf   : > { %v6589_v61 = vpop.f32.mrb[82].mxu1  ;;  %7151 = vmatpush3.bf16.msra.mxu0 %v7148_v0 }
 0x5d0   : > { %v3565_v57 = vadd.f32 %v6589_v61, %v9837_v32  ;;  %v3525_v43 = vpop.f32.mrb[83].mxu1  ;;  %v5754_v61 = vld [vmem:[%s11365_s9 + $0x140] sm:$0xff] }
 0x5d1   : > { %v3564_v6 = vadd.f32 %v3525_v43, %v9818_v48 }
 0x5d2   : > { %v10268_v16 = vadd.f32 %v5709_v36, %v3565_v57  ;;  %v5755_v57 = vld [vmem:[%s11365_s9 + $0x148] sm:$0xff] }
 0x5d3   : > { %v10266_v35 = vadd.f32 %v5709_v36, %v3564_v6  ;;  %v7152_v43 = vpack.c.bf16 %v5755_v57, %v5754_v61  ;;  %v5756_v6 = vld [vmem:[%s11365_s9 + $0x150] sm:$0xff] }
 0x5d4   : > { %v6592_v7 = vpop.f32.mrb[84].mxu1 }
 0x5d5   : > { %6643 = vmatprep.mubr.f32.mxu0 %v10266_v35  ;;  %v3567_v2 = vadd.f32 %v6592_v7, %v9859_v29  ;;  %v3535_v1 = vpop.f32.mrb[85].mxu1  ;;  %v5757_v7 = vld [vmem:[%s11365_s9 + $0x158] sm:$0xff]  ;;  %7153 = vmatprep.subr.bf16.mxu0 %v7152_v43 }
 0x5d6   : > { %6644 = vmatmul.mubr.f32.gmra.mrb[82].mxu0 %v10268_v16  ;;  %v3566_v44 = vadd.f32 %v3535_v1, %v9851_v53  ;;  %v5728_v53 = vld [vmem:[%s11367_s11 + $0x80] sm:$0xff] }
 0x5d7   : > { %v10276_v32 = vadd.f32 %v5709_v36, %v3567_v2  ;;  %v7156_v2 = vpack.c.bf16 %v5757_v7, %v5756_v6  ;;  %v5758_v1 = vld [vmem:[%s11365_s9 + $0x160] sm:$0xff]  ;;  %7155 = vmatpush3.bf16.msra.mxu0 %v7152_v43 }
 0x5d8   : > { %v10274_v3 = vadd.f32 %v5709_v36, %v3566_v44  ;;  %v5759_v44 = vld [vmem:[%s11365_s9 + $0x168] sm:$0xff] }
 0x5d9   : > { %7157 = vmatprep.subr.bf16.mxu0 %v7156_v2 }
 0x5da   : > { %6646 = vmatprep.mubr.f32.mxu0 %v10274_v3 }
 0x5db   : > { %6647 = vmatmul.mubr.f32.gmra.mrb[84].mxu0 %v10276_v32 }
 0x5dc   : > { %v6595_v48 = vpop.f32.mrb[86].mxu1  ;;  %7159 = vmatpush3.bf16.msra.mxu0 %v7156_v2 }
 0x5dd   : > { %v3569_v18 = vadd.f32 %v6595_v48, %v9871_v14  ;;  %v3545_v56 = vpop.f32.mrb[87].mxu1  ;;  %v7104_v14 = vpack.c.bf16 %v5729_v37, %v5728_v53  ;;  %v7160_v48 = vpack.c.bf16 %v5759_v44, %v5758_v1 }
 0x5de   : > { %v3568_v25 = vadd.f32 %v3545_v56, %v9865_v50  ;;  %v5730_v50 = vld [vmem:[%s11367_s11 + $0x90] sm:$0xff] }
 0x5df   : > { %v10284_v52 = vadd.f32 %v5709_v36, %v3569_v18  ;;  %v7108_v59 = vpack.c.bf16 %v5731_v58, %v5730_v50  ;;  %7105 = vmatprep.subr.bf16.mxu1 %v7104_v14  ;;  %7161 = vmatprep.subr.bf16.mxu0 %v7160_v48  ;;  %v10381_v18 = vld [vmem:[%s11366_s10 + $0x1] ss:$0 sm:$0xff] }
 0x5e0   : > { %v10282_v29 = vadd.f32 %v5709_v36, %v3568_v25  ;;  %7107 = vmatpush3.bf16.msra.mxu1 %v7104_v14  ;;  %v7124_v36 = vpack.c.bf16 %v5739_v60, %v5738_v21  ;;  %7163 = vmatpush3.bf16.msra.mxu0 %v7160_v48 }
 0x5e1   : > { %7109 = vmatprep.subr.bf16.mxu1 %v7108_v59 }
 0x5e2   : > { %6649 = vmatprep.mubr.f32.mxu0 %v10282_v29 }
 0x5e3   : > { %6650 = vmatmul.mubr.f32.gmra.mrb[86].mxu0 %v10284_v52 }
 0x5e4   : > { %7111 = vmatpush3.bf16.msra.mxu1 %v7108_v59 }
 0x5e5   : > { %7113 = vmatprep.subr.bf16.mxu1 %v7112_v33 }
 0x5e8   : > { %7115 = vmatpush3.bf16.msra.mxu1 %v7112_v33 }
 0x5e9   : > { %7117 = vmatprep.subr.bf16.mxu1 %v7116_v49 }
 0x5ec   : > { %7119 = vmatpush3.bf16.msra.mxu1 %v7116_v49 }
 0x5ed   : > { %7121 = vmatprep.subr.bf16.mxu1 %v7120_v27 }
 0x5f0   : > { %7123 = vmatpush3.bf16.msra.mxu1 %v7120_v27 }
 0x5f1   : > { %7125 = vmatprep.subr.bf16.mxu1 %v7124_v36 }
 0x5f4   : > { %7127 = vmatpush3.bf16.msra.mxu1 %v7124_v36 }
 0x5f5   : > { %7129 = vmatprep.subr.bf16.mxu1 %v7128_v9 }
 0x5f8   : > { %7131 = vmatpush3.bf16.msra.mxu1 %v7128_v9 }
 0x5f9   : > { %7133 = vmatprep.subr.bf16.mxu1 %v7132_v24 }
 0x5fc   : > { %7135 = vmatpush3.bf16.msra.mxu1 %v7132_v24 }
 0x67e   : > { %v6630_v56 = vpop.f32.mrb[72].mxu0 }
 0x67f   : > { %v10384_v25 = vadd.f32 %v6630_v56, %v10381_v18  ;;  %v3684_v53 = vpop.f32.mrb[73].mxu0 }
 0x680   : > { %v10387_v37 = vadd.f32 %v10381_v18, %v3684_v53 }
 0x681   : > { %v3812_v50 = vand.u32 2147483647, %v10384_v25  ;;  %v3764_v57 = vmax.f32 %v10384_v25, 0.0  ;;  %vm3780_vm7 = vcmp.ne.f32.partialorder %v10384_v25, %v10384_v25 }
 0x682   : > { %v3811_v14 = vand.u32 2147483647, %v10387_v37  ;;  %vm3779_vm6 = vcmp.ne.f32.partialorder %v10387_v37, %v10387_v37 }
 0x683   : > { %v3828_v58 = vsub.f32 0.0, %v3812_v50  ;;  %v3763_v50 = vmax.f32 %v10387_v37, 0.0 }
 0x684   : > { %v3827_v59 = vsub.f32 0.0, %v3811_v14 }
 0x685   : > { %v3845_v15 = vmul.f32 1.442695, %v3828_v58 }
 0x686   : > { %v3843_v22 = vmul.f32 1.442695, %v3827_v59  ;;  %v6633_v62 = vpop.f32.mrb[74].mxu0 }
 0x687   : > { %7582 = vpow2.f32 %v3845_v15  ;;  %v10392_v33 = vadd.f32 %v6633_v62, %v10381_v18  ;;  %v3694_v5 = vpop.f32.mrb[75].mxu0 }
 0x688   : > { %7584 = vpow2.f32 %v3843_v22  ;;  %v10395_v49 = vadd.f32 %v10381_v18, %v3694_v5 }
 0x689   : > { %v3814_v17 = vand.u32 2147483647, %v10392_v33  ;;  %vm3782_vm12 = vcmp.ne.f32.partialorder %v10392_v33, %v10392_v33 }
 0x68a   : > { %v3813_v54 = vand.u32 2147483647, %v10395_v49  ;;  %v3765_v5 = vmax.f32 %v10395_v49, 0.0  ;;  %vm3781_vm11 = vcmp.ne.f32.partialorder %v10395_v49, %v10395_v49 }
 0x68b   : > { %v3830_v21 = vsub.f32 0.0, %v3814_v17  ;;  %v3766_v17 = vmax.f32 %v10392_v33, 0.0 }
 0x68c   : > { %v3829_v27 = vsub.f32 0.0, %v3813_v54 }
 0x68d   : > { %v3849_v60 = vmul.f32 1.442695, %v3830_v21 }
 0x68e   : > { %v3847_v36 = vmul.f32 1.442695, %v3829_v27  ;;  %v6636_v40 = vpop.f32.mrb[76].mxu0 }
 0x68f   : > { %7586 = vpow2.f32 %v3849_v60  ;;  %v10400_v26 = vadd.f32 %v6636_v40, %v10381_v18  ;;  %v3704_v23 = vpop.f32.mrb[77].mxu0 }
 0x690   : > { %7588 = vpow2.f32 %v3847_v36  ;;  %v10403_v9 = vadd.f32 %v10381_v18, %v3704_v23 }
 0x691   : > { %v7583_v39 = vpop.eup %7582  ;;  %v3816_v24 = vand.u32 2147483647, %v10400_v26  ;;  %vm3784_vm4 = vcmp.ne.f32.partialorder %v10400_v26, %v10400_v26 }
 0x692   : > { %v7585_v12 = vpop.eup %7584  ;;  %v3815_v28 = vand.u32 2147483647, %v10403_v9  ;;  %v3884_v4 = vadd.f32 1.0, %v7583_v39  ;;  %v3887_v41 = vmul.f32 -0.5, %v7583_v39  ;;  %v3890_v7 = vand.u32 2147483647, %v7583_v39 }
 0x693   : > { %v3832_v51 = vsub.f32 0.0, %v3816_v24  ;;  %v3875_v13 = vadd.f32 1.0, %v7585_v12  ;;  %v3878_v20 = vmul.f32 -0.5, %v7585_v12  ;;  %v3881_v44 = vand.u32 2147483647, %v7585_v12 }
 0x694   : > { %v3831_v63 = vsub.f32 0.0, %v3815_v28  ;;  %7590 = vlog2.f32 %v3884_v4  ;;  %v3888_v48 = vadd.f32 1.0, %v3887_v41  ;;  %vm10428_vm8 = vcmp.lt.f32.partialorder %v3890_v7, 0.0004427343 }
 0x695   : > { %v3853_v55 = vmul.f32 1.442695, %v3832_v51  ;;  %7592 = vlog2.f32 %v3875_v13  ;;  %v3879_v14 = vadd.f32 1.0, %v3878_v20  ;;  %vm10434_vm1 = vcmp.lt.f32.partialorder %v3881_v44, 0.0004427343 }
 0x696   : > { %v3851_v30 = vmul.f32 1.442695, %v3831_v63  ;;  %v3889_v36 = vmul.f32 %v7583_v39, %v3888_v48  ;;  %vm3783_vm0 = vcmp.ne.f32.partialorder %v10403_v9, %v10403_v9 }
 0x697   : > { %7594 = vpow2.f32 %v3853_v55  ;;  %v3880_v24 = vmul.f32 %v7585_v12, %v3879_v14 }
 0x698   : > { %7596 = vpow2.f32 %v3851_v30 }
 0x699   : > { %v10407_v45 = vpop.eup %7586  ;;  %v6639_v0 = vpop.f32.mrb[78].mxu0 }
 0x69a   : > { %v10409_v61 = vpop.eup %7588  ;;  %v10413_v43 = vadd.f32 %v6639_v0, %v10381_v18  ;;  %v3714_v6 = vpop.f32.mrb[79].mxu0  ;;  %v3902_v2 = vadd.f32 1.0, %v10407_v45  ;;  %v3905_v59 = vmul.f32 -0.5, %v10407_v45  ;;  %v3908_v30 = vand.u32 2147483647, %v10407_v45 }
 0x69b   : > { %v10417_v1 = vadd.f32 %v10381_v18, %v3714_v6  ;;  %v3893_v56 = vadd.f32 1.0, %v10409_v61  ;;  %v3896_v28 = vmul.f32 -0.5, %v10409_v61 }
 0x69c   : > { %v3818_v53 = vand.u32 2147483647, %v10413_v43  ;;  %7598 = vlog2.f32 %v3902_v2  ;;  %v3906_v55 = vadd.f32 1.0, %v3905_v59  ;;  %vm10472_vm13 = vcmp.lt.f32.partialorder %v3908_v30, 0.0004427343 }
 0x69d   : > { %v3817_v58 = vand.u32 2147483647, %v10417_v1  ;;  %7600 = vlog2.f32 %v3893_v56  ;;  %v3897_v48 = vadd.f32 1.0, %v3896_v28  ;;  %v3899_v56 = vand.u32 2147483647, %v10409_v61 }
 0x69e   : > { %v7591_v15 = vpop.eup %7590  ;;  %v3834_v22 = vsub.f32 0.0, %v3818_v53  ;;  %vm3785_vm9 = vcmp.ne.f32.partialorder %v10417_v1, %v10417_v1  ;;  %vm3786_vm10 = vcmp.ne.f32.partialorder %v10413_v43, %v10413_v43 }
 0x69f   : > { %v7593_v54 = vpop.eup %7592  ;;  %v3833_v21 = vsub.f32 0.0, %v3817_v58  ;;  %v3886_v60 = vmul.f32 0.6931472, %v7591_v15  ;;  %v3907_v15 = vmul.f32 %v10407_v45, %v3906_v55  ;;  %vm3900_vm14 = vcmp.lt.f32.partialorder %v3899_v56, 0.0004427343 }
 0x6a0   : > { %v3857_v40 = vmul.f32 1.442695, %v3834_v22  ;;  %v3877_v23 = vmul.f32 0.6931472, %v7593_v54 }
 0x6a1   : > { %v10439_v4 = vpop.eup %7594  ;;  %v3855_v51 = vmul.f32 1.442695, %v3833_v21  ;;  %v6642_v13 = vpop.f32.mrb[80].mxu0  ;;  %v3892_v63 = vsel %vm10428_vm8, %v3889_v36, %v3886_v60  ;;  %v3898_v36 = vmul.f32 %v10409_v61, %v3897_v48 }
 0x6a2   : > { %v10444_v41 = vpop.eup %7596  ;;  %7602 = vpow2.f32 %v3857_v40  ;;  %v10447_v39 = vadd.f32 %v6642_v13, %v10381_v18  ;;  %v3724_v20 = vpop.f32.mrb[81].mxu0  ;;  %v3883_v12 = vsel %vm10434_vm1, %v3880_v24, %v3877_v23  ;;  %v4020_v0 = vadd.f32 %v3892_v63, %v3764_v57 }
 0x6a3   : > { %7604 = vpow2.f32 %v3855_v51  ;;  %v10452_v6 = vadd.f32 %v10381_v18, %v3724_v20  ;;  %v4019_v7 = vadd.f32 %v3883_v12, %v3763_v50  ;;  %v3911_v2 = vadd.f32 1.0, %v10444_v41 }
 0x6a4   : > { %v3820_v44 = vand.u32 2147483647, %v10447_v39  ;;  %v3920_v50 = vadd.f32 1.0, %v10439_v4  ;;  %v4036_v59 = vsel %vm3780_vm7, %v10384_v25, %v4020_v0  ;;  %v3914_v21 = vmul.f32 -0.5, %v10444_v41 }
 0x6a5   : > { %v3819_v53 = vand.u32 2147483647, %v10452_v6  ;;  %v4035_v57 = vsel %vm3779_vm6, %v10387_v37, %v4019_v7  ;;  %7606 = vlog2.f32 %v3911_v2  ;;  %v3917_v40 = vand.u32 2147483647, %v10444_v41 }
 0x6a6   : > { %v7599_v14 = vpop.eup %7598  ;;  %v3836_v58 = vsub.f32 0.0, %v3820_v44  ;;  %6684 = vmatprep.mubr.f32.mxu1 %v4035_v57  ;;  %7608 = vlog2.f32 %v3920_v50  ;;  %v3923_v24 = vmul.f32 -0.5, %v10439_v4  ;;  %v3915_v30 = vadd.f32 1.0, %v3914_v21 }
 0x6a7   : > { %v7601_v37 = vpop.eup %7600  ;;  %v3835_v62 = vsub.f32 0.0, %v3819_v53  ;;  %6685 = vmatmul.mubr.f32.vlgmr.msra.gmra.mrb[88].mxu1 %v4036_v59  ;;  %v3904_v54 = vmul.f32 0.6931472, %v7599_v14  ;;  %v3767_v0 = vmax.f32 %v10403_v9, 0.0  ;;  %vm10494_vm15 = vcmp.lt.f32.partialorder %v3917_v40, 0.0004427343 }
 0x6a8   : > { %v3861_v27 = vmul.f32 1.442695, %v3836_v58  ;;  %v3895_v60 = vmul.f32 0.6931472, %v7601_v37  ;;  %v3924_v48 = vadd.f32 1.0, %v3923_v24  ;;  %v3916_v37 = vmul.f32 %v10444_v41, %v3915_v30 }
 0x6a9   : > { %v3859_v25 = vmul.f32 1.442695, %v3835_v62  ;;  %v6645_v23 = vpop.f32.mrb[82].mxu0  ;;  %v3910_v45 = vsel %vm10472_vm13, %v3907_v15, %v3904_v54  ;;  %v3926_v14 = vand.u32 2147483647, %v10439_v4  ;;  %vm3787_vm8 = vcmp.ne.f32.partialorder %v10452_v6, %v10452_v6 }
 0x6aa   : > { %7610 = vpow2.f32 %v3861_v27  ;;  %v10483_v28 = vadd.f32 %v6645_v23, %v10381_v18  ;;  %v3734_v51 = vpop.f32.mrb[83].mxu0  ;;  %v3901_v13 = vsel %vm3900_vm14, %v3898_v36, %v3895_v60  ;;  %v4022_v63 = vadd.f32 %v3910_v45, %v3766_v17 }
 0x6ab   : > { %7612 = vpow2.f32 %v3859_v25  ;;  %v10486_v61 = vadd.f32 %v10381_v18, %v3734_v51  ;;  %v4021_v55 = vadd.f32 %v3901_v13, %v3765_v5  ;;  %v3768_v17 = vmax.f32 %v10400_v26, 0.0 }
 0x6ac   : > { %v10490_v20 = vpop.eup %7602  ;;  %v3822_v12 = vand.u32 2147483647, %v10483_v28  ;;  %v4038_v50 = vsel %vm3782_vm12, %v10392_v33, %v4022_v63  ;;  %v3925_v36 = vmul.f32 %v10439_v4, %v3924_v48  ;;  %vm3927_vm3 = vcmp.lt.f32.partialorder %v3926_v14, 0.0004427343 }
 0x6ad   : > { %v10499_v2 = vpop.eup %7604  ;;  %v3821_v44 = vand.u32 2147483647, %v10486_v61  ;;  %v4037_v5 = vsel %vm3781_vm11, %v10395_v49, %v4021_v55  ;;  %v3938_v56 = vadd.f32 1.0, %v10490_v20  ;;  %v3941_v40 = vmul.f32 -0.5, %v10490_v20 }
 0x6ae   : > { %v3838_v53 = vsub.f32 0.0, %v3822_v12  ;;  %v6648_v57 = vpop.f32.mrb[84].mxu0  ;;  %6687 = vmatprep.mubr.f32.mxu1 %v4037_v5  ;;  %v3929_v58 = vadd.f32 1.0, %v10499_v2  ;;  %v3932_v45 = vmul.f32 -0.5, %v10499_v2  ;;  %vm3788_vm1 = vcmp.ne.f32.partialorder %v10447_v39, %v10447_v39 }
 0x6af   : > { %v7607_v59 = vpop.eup %7606  ;;  %v3837_v15 = vsub.f32 0.0, %v3821_v44  ;;  %v10514_v22 = vadd.f32 %v6648_v57, %v10381_v18  ;;  %v3744_v49 = vpop.f32.mrb[85].mxu0  ;;  %6688 = vmatmul.mubr.f32.gmra.mrb[90].mxu1 %v4038_v50  ;;  %7614 = vlog2.f32 %v3938_v56  ;;  %v3942_v48 = vadd.f32 1.0, %v3941_v40 }
 0x6b0   : > { %v3865_v62 = vmul.f32 1.442695, %v3838_v53  ;;  %v10518_v54 = vadd.f32 %v10381_v18, %v3744_v49  ;;  %v3913_v21 = vmul.f32 0.6931472, %v7607_v59  ;;  %7616 = vlog2.f32 %v3929_v58  ;;  %v7609_v33 = vpop.eup %7608 }
 0x6b1   : > { %v3863_v27 = vmul.f32 1.442695, %v3837_v15  ;;  %v3824_v60 = vand.u32 2147483647, %v10514_v22  ;;  %v3922_v23 = vmul.f32 0.6931472, %v7609_v33  ;;  %vm3789_vm11 = vcmp.ne.f32.partialorder %v10486_v61, %v10486_v61 }
 0x6b2   : > { %v3823_v25 = vand.u32 2147483647, %v10518_v54  ;;  %v3919_v41 = vsel %vm10494_vm15, %v3916_v37, %v3913_v21  ;;  %v3933_v5 = vadd.f32 1.0, %v3932_v45  ;;  %v3769_v49 = vmax.f32 %v10417_v1, 0.0 }
 0x6b3   : > { %7618 = vpow2.f32 %v3863_v27  ;;  %v3840_v24 = vsub.f32 0.0, %v3824_v60  ;;  %v4023_v51 = vadd.f32 %v3919_v41, %v3767_v0  ;;  %v3928_v4 = vsel %vm3927_vm3, %v3925_v36, %v3922_v23 }
 0x6b4   : > { %v10527_v13 = vpop.eup %7610  ;;  %7620 = vpow2.f32 %v3865_v62  ;;  %v3839_v63 = vsub.f32 0.0, %v3823_v25  ;;  %v4024_v7 = vadd.f32 %v3928_v4, %v3768_v17  ;;  %v3935_v17 = vand.u32 2147483647, %v10499_v2 }
 0x6b5   : > { %v10531_v55 = vpop.eup %7612  ;;  %v3869_v30 = vmul.f32 1.442695, %v3840_v24  ;;  %v4039_v12 = vsel %vm3783_vm0, %v10403_v9, %v4023_v51  ;;  %v3944_v9 = vand.u32 2147483647, %v10490_v20  ;;  %v3956_v58 = vadd.f32 1.0, %v10527_v13 }
 0x6b6   : > { %v3867_v44 = vmul.f32 1.442695, %v3839_v63  ;;  %v6651_v0 = vpop.f32.mrb[86].mxu0  ;;  %6690 = vmatprep.mubr.f32.mxu1 %v4039_v12  ;;  %v3947_v56 = vadd.f32 1.0, %v10531_v55  ;;  %v4040_v50 = vsel %vm3784_vm4, %v10400_v26, %v4024_v7  ;;  %v3770_v37 = vmax.f32 %v10413_v43, 0.0 }
 0x6b7   : > { %7622 = vpow2.f32 %v3869_v30  ;;  %v10538_v53 = vadd.f32 %v6651_v0, %v10381_v18  ;;  %v3754_v57 = vpop.f32.mrb[87].mxu0  ;;  %6691 = vmatmul.mubr.f32.gmra.mrb[92].mxu1 %v4040_v50  ;;  %v3934_v60 = vmul.f32 %v10499_v2, %v3933_v5  ;;  %vm3945_vm5 = vcmp.lt.f32.partialorder %v3944_v9, 0.0004427343 }
 0x6b8   : > { %7624 = vpow2.f32 %v3867_v44  ;;  %v10543_v14 = vadd.f32 %v10381_v18, %v3754_v57  ;;  %v3943_v18 = vmul.f32 %v10490_v20, %v3942_v48  ;;  %vm3936_vm2 = vcmp.lt.f32.partialorder %v3935_v17, 0.0004427343 }
 0x6b9   : > { %v7615_v59 = vpop.eup %7614  ;;  %v3826_v15 = vand.u32 2147483647, %v10538_v53  ;;  %7626 = vlog2.f32 %v3947_v56  ;;  %v3950_v25 = vmul.f32 -0.5, %v10531_v55  ;;  %v3959_v51 = vmul.f32 -0.5, %v10527_v13 }
 0x6ba   : > { %v7617_v26 = vpop.eup %7616  ;;  %v3825_v62 = vand.u32 2147483647, %v10543_v14  ;;  %v3940_v21 = vmul.f32 0.6931472, %v7615_v59  ;;  %7628 = vlog2.f32 %v3956_v58  ;;  %v3953_v7 = vand.u32 2147483647, %v10531_v55 }
 0x6bb   : > { %v3842_v33 = vsub.f32 0.0, %v3826_v15  ;;  %v3931_v27 = vmul.f32 0.6931472, %v7617_v26  ;;  %v3951_v12 = vadd.f32 1.0, %v3950_v25  ;;  %v3960_v5 = vadd.f32 1.0, %v3959_v51 }
 0x6bc   : > { %v3841_v36 = vsub.f32 0.0, %v3825_v62  ;;  %v3946_v40 = vsel %vm3945_vm5, %v3943_v18, %v3940_v21  ;;  %v3962_v57 = vand.u32 2147483647, %v10527_v13  ;;  %vm3954_vm6 = vcmp.lt.f32.partialorder %v3953_v7, 0.0004427343 }
 0x6bd   : > { %v10554_v41 = vpop.eup %7618  ;;  %v3873_v23 = vmul.f32 1.442695, %v3842_v33  ;;  %v3937_v45 = vsel %vm3936_vm2, %v3934_v60, %v3931_v27  ;;  %v4026_v24 = vadd.f32 %v3946_v40, %v3770_v37  ;;  %v3952_v59 = vmul.f32 %v10531_v55, %v3951_v12 }
 0x6be   : > { %v10557_v63 = vpop.eup %7620  ;;  %v3871_v20 = vmul.f32 1.442695, %v3841_v36  ;;  %v4025_v4 = vadd.f32 %v3937_v45, %v3769_v49  ;;  %v3965_v30 = vadd.f32 1.0, %v10554_v41  ;;  %v3968_v15 = vmul.f32 -0.5, %v10554_v41 }
 0x6bf   : > { %7630 = vpow2.f32 %v3873_v23  ;;  %v4042_v0 = vsel %vm3786_vm10, %v10413_v43, %v4026_v24  ;;  %v3974_v48 = vadd.f32 1.0, %v10557_v63  ;;  %v3772_v43 = vmax.f32 %v10447_v39, 0.0 }
 0x6c0   : > { %7632 = vpow2.f32 %v3871_v20  ;;  %v4041_v2 = vsel %vm3785_vm9, %v10417_v1, %v4025_v4  ;;  %v3771_v1 = vmax.f32 %v10452_v6, 0.0  ;;  %v3961_v37 = vmul.f32 %v10527_v13, %v3960_v5 }
 0x6c1   : > { %v10566_v44 = vpop.eup %7622  ;;  %6693 = vmatprep.mubr.f32.mxu1 %v4041_v2  ;;  %7634 = vlog2.f32 %v3965_v30  ;;  %vm3963_vm7 = vcmp.lt.f32.partialorder %v3962_v57, 0.0004427343  ;;  %v3977_v62 = vmul.f32 -0.5, %v10557_v63  ;;  %v3969_v60 = vadd.f32 1.0, %v3968_v15 }
 0x6c2   : > { %v10570_v56 = vpop.eup %7624  ;;  %6694 = vmatmul.mubr.f32.gmra.mrb[94].mxu1 %v4042_v0  ;;  %7636 = vlog2.f32 %v3974_v48  ;;  %v3992_v21 = vadd.f32 1.0, %v10566_v44  ;;  %v3971_v40 = vand.u32 2147483647, %v10554_v41  ;;  %v3980_v24 = vand.u32 2147483647, %v10557_v63 }
 0x6c3   : > { %v7627_v50 = vpop.eup %7626  ;;  %v3983_v9 = vadd.f32 1.0, %v10570_v56  ;;  %v3986_v27 = vmul.f32 -0.5, %v10570_v56  ;;  %v3978_v45 = vadd.f32 1.0, %v3977_v62  ;;  %v3773_v2 = vmax.f32 %v10486_v61, 0.0 }
 0x6c4   : > { %v7629_v17 = vpop.eup %7628  ;;  %v3949_v58 = vmul.f32 0.6931472, %v7627_v50  ;;  %v3774_v7 = vmax.f32 %v10483_v28, 0.0  ;;  %vm3972_vm12 = vcmp.lt.f32.partialorder %v3971_v40, 0.0004427343  ;;  %v3775_v5 = vmax.f32 %v10518_v54, 0.0 }
 0x6c5   : > { %v3958_v49 = vmul.f32 0.6931472, %v7629_v17  ;;  %7638 = vlog2.f32 %v3983_v9  ;;  %v3987_v20 = vadd.f32 1.0, %v3986_v27  ;;  %v3989_v48 = vand.u32 2147483647, %v10570_v56 }
 0x6c6   : > { %v3955_v26 = vsel %vm3954_vm6, %v3952_v59, %v3949_v58  ;;  %7640 = vlog2.f32 %v3992_v21  ;;  %vm3981_vm13 = vcmp.lt.f32.partialorder %v3980_v24, 0.0004427343  ;;  %v3998_v15 = vand.u32 2147483647, %v10566_v44 }
 0x6c7   : > { %v4027_v18 = vadd.f32 %v3955_v26, %v3771_v1  ;;  %v3964_v33 = vsel %vm3963_vm7, %v3961_v37, %v3958_v49  ;;  %v3979_v1 = vmul.f32 %v10557_v63, %v3978_v45  ;;  %v3988_v58 = vmul.f32 %v10570_v56, %v3987_v20 }
 0x6c8   : > { %v4028_v55 = vadd.f32 %v3964_v33, %v3772_v43  ;;  %vm3990_vm14 = vcmp.lt.f32.partialorder %v3989_v48, 0.0004427343  ;;  %vm3790_vm15 = vcmp.ne.f32.partialorder %v10483_v28, %v10483_v28  ;;  %vm3791_vm3 = vcmp.ne.f32.partialorder %v10518_v54, %v10518_v54 }
 0x6c9   : > { %v10584_v36 = vpop.eup %7630  ;;  %v4043_v13 = vsel %vm3787_vm8, %v10452_v6, %v4027_v18  ;;  %v3995_v6 = vmul.f32 -0.5, %v10566_v44  ;;  %vm3999_vm0 = vcmp.lt.f32.partialorder %v3998_v15, 0.0004427343  ;;  %vm3792_vm4 = vcmp.ne.f32.partialorder %v10514_v22, %v10514_v22 }
 0x6ca   : > { %v10590_v25 = vpop.eup %7632  ;;  %6696 = vmatprep.mubr.f32.mxu1 %v4043_v13  ;;  %v4044_v23 = vsel %vm3788_vm1, %v10447_v39, %v4028_v55  ;;  %v4010_v30 = vadd.f32 1.0, %v10584_v36  ;;  %v3970_v39 = vmul.f32 %v10554_v41, %v3969_v60  ;;  %v4013_v63 = vmul.f32 -0.5, %v10584_v36 }
 0x6cb   : > { %v7635_v51 = vpop.eup %7634  ;;  %6697 = vmatmul.mubr.f32.gmra.mrb[96].mxu1 %v4044_v23  ;;  %v4001_v4 = vadd.f32 1.0, %v10590_v25  ;;  %v3996_v41 = vadd.f32 1.0, %v3995_v6  ;;  %v4004_v49 = vmul.f32 -0.5, %v10590_v25  ;;  %v4007_v40 = vand.u32 2147483647, %v10590_v25 }
 0x6cc   : > { %v3967_v12 = vmul.f32 0.6931472, %v7635_v51  ;;  %v7637_v0 = vpop.eup %7636  ;;  %v4014_v23 = vadd.f32 1.0, %v4013_v63  ;;  %v4016_v45 = vand.u32 2147483647, %v10584_v36  ;;  %vm3793_vm9 = vcmp.ne.f32.partialorder %v10543_v14, %v10543_v14 }
 0x6cd   : > { %7642 = vlog2.f32 %v4001_v4  ;;  %v3976_v50 = vmul.f32 0.6931472, %v7637_v0  ;;  %v3997_v27 = vmul.f32 %v10566_v44, %v3996_v41  ;;  %v4005_v55 = vadd.f32 1.0, %v4004_v49 }
 0x6ce   : > { %v3973_v57 = vsel %vm3972_vm12, %v3970_v39, %v3967_v12  ;;  %7644 = vlog2.f32 %v4010_v30  ;;  %vm4008_vm5 = vcmp.lt.f32.partialorder %v4007_v40, 0.0004427343  ;;  %v4015_v30 = vmul.f32 %v10584_v36, %v4014_v23  ;;  %v5760_v36 = vld [vmem:[%s11365_s9 + $0x170] sm:$0xff] }
 0x6cf   : > { %v7639_v9 = vpop.eup %7638  ;;  %v4029_v17 = vadd.f32 %v3973_v57, %v3773_v2  ;;  %v3982_v59 = vsel %vm3981_vm13, %v3979_v1, %v3976_v50  ;;  %v4006_v6 = vmul.f32 %v10590_v25, %v4005_v55  ;;  %v3778_v12 = vmax.f32 %v10538_v53, 0.0  ;;  %v5745_v50 = vld [vmem:[%s11549_s29 + $0x1] ss:$0 sm:$0xff] }
 0x6d0   : > { %v3985_v43 = vmul.f32 0.6931472, %v7639_v9  ;;  %v4030_v26 = vadd.f32 %v3982_v59, %v3774_v7  ;;  %v7641_v62 = vpop.eup %7640  ;;  %vm4017_vm2 = vcmp.lt.f32.partialorder %v4016_v45, 0.0004427343  ;;  %vm3794_vm10 = vcmp.ne.f32.partialorder %v10538_v53, %v10538_v53 }
 0x6d1   : > { %v4045_v37 = vsel %vm3789_vm11, %v10486_v61, %v4029_v17  ;;  %v3994_v33 = vmul.f32 0.6931472, %v7641_v62  ;;  %v3776_v61 = vmax.f32 %v10514_v22, 0.0 }
 0x6d2   : > { %6699 = vmatprep.mubr.f32.mxu1 %v4045_v37  ;;  %v3991_v56 = vsel %vm3990_vm14, %v3988_v58, %v3985_v43  ;;  %v4046_v21 = vsel %vm3790_vm15, %v10483_v28, %v4030_v26 }
 0x6d3   : > { %v4031_v18 = vadd.f32 %v3991_v56, %v3775_v5  ;;  %6700 = vmatmul.mubr.f32.gmra.mrb[98].mxu1 %v4046_v21  ;;  %v4000_v13 = vsel %vm3999_vm0, %v3997_v27, %v3994_v33  ;;  %v5761_v5 = vld [vmem:[%s11365_s9 + $0x178] sm:$0xff] }
 0x6d4   : > { %v4032_v28 = vadd.f32 %v4000_v13, %v3776_v61  ;;  %v7164_v48 = vpack.c.bf16 %v5761_v5, %v5760_v36  ;;  %v5772_v36 = vld [vmem:[%s11367_s11 + $0x140] sm:$0xff]  ;;  %v5773_v5 = vld [vmem:[%s11367_s11 + $0x148] sm:$0xff] }
 0x6d5   : > { %v4047_v60 = vsel %vm3791_vm3, %v10518_v54, %v4031_v18  ;;  %v3777_v54 = vmax.f32 %v10543_v14, 0.0 }
 0x6d6   : > { %6702 = vmatprep.mubr.f32.mxu1 %v4047_v60  ;;  %v4048_v51 = vsel %vm3792_vm4, %v10514_v22, %v4032_v28  ;;  %7165 = vmatprep.subr.bf16.mxu0 %v7164_v48 }
 0x6d7   : > { %v7643_v24 = vpop.eup %7642  ;;  %6703 = vmatmul.mubr.f32.gmra.mrb[100].mxu1 %v4048_v51  ;;  %7167 = vmatpush3.bf16.msra.mxu0 %v7164_v48  ;;  %v5774_v48 = vld [vmem:[%s11367_s11 + $0x150] sm:$0xff] }
 0x6d8   : > { %v7645_v44 = vpop.eup %7644  ;;  %v4003_v20 = vmul.f32 0.6931472, %v7643_v24 }
 0x6d9   : > { %v4012_v4 = vmul.f32 0.6931472, %v7645_v44 }
 0x6da   : > { %v4009_v2 = vsel %vm4008_vm5, %v4006_v6, %v4003_v20 }
 0x6db   : > { %v4033_v39 = vadd.f32 %v4009_v2, %v3777_v54  ;;  %v4018_v7 = vsel %vm4017_vm2, %v4015_v30, %v4012_v4  ;;  %v5765_v4 = vld [vmem:[%s11367_s11 + $0x108] sm:$0xff]  ;;  %v5767_v30 = vld [vmem:[%s11367_s11 + $0x118] sm:$0xff] }
 0x6dc   : > { %v4034_v22 = vadd.f32 %v4018_v7, %v3778_v12  ;;  %v5768_v12 = vld [vmem:[%s11367_s11 + $0x120] sm:$0xff]  ;;  %v5770_v7 = vld [vmem:[%s11367_s11 + $0x130] sm:$0xff] }
 0x6dd   : > { %v4049_v0 = vsel %vm3793_vm9, %v10543_v14, %v4033_v39  ;;  %v5769_v39 = vld [vmem:[%s11367_s11 + $0x128] sm:$0xff] }
 0x6de   : > { %6705 = vmatprep.mubr.f32.mxu1 %v4049_v0  ;;  %v4050_v25 = vsel %vm3794_vm10, %v10538_v53, %v4034_v22  ;;  %v7176_v22 = vpack.c.bf16 %v5769_v39, %v5768_v12  ;;  %v5771_v0 = vld [vmem:[%s11367_s11 + $0x138] sm:$0xff] }
 0x6df   : > { %6706 = vmatmul.mubr.f32.gmra.mrb[102].mxu1 %v4050_v25  ;;  %v7180_v25 = vpack.c.bf16 %v5771_v0, %v5770_v7 }
 0x77a   : > { %v6686_v57 = vpop.f32.mrb[88].mxu1 }
 0x77b   : > { %v4214_v14 = vadd.f32 %v6686_v57, %v10228_v11  ;;  %v4134_v53 = vpop.f32.mrb[89].mxu1  ;;  %v7184_v57 = vpack.c.bf16 %v5773_v5, %v5772_v36 }
 0x77c   : > { %v4213_v1 = vadd.f32 %v4134_v53, %v10226_v46  ;;  %v5776_v53 = vld [vmem:[%s11367_s11 + $0x160] sm:$0xff] }
 0x77d   : > { %v10649_v17 = vadd.f32 %v5745_v50, %v4214_v14  ;;  %v5775_v14 = vld [vmem:[%s11367_s11 + $0x158] sm:$0xff] }
 0x77e   : > { %v10647_v9 = vadd.f32 %v5745_v50, %v4213_v1  ;;  %v5777_v1 = vld [vmem:[%s11367_s11 + $0x168] sm:$0xff] }
 0x780   : > { %6740 = vmatprep.mubr.f32.mxu0 %v10647_v9 }
 0x781   : > { %6741 = vmatmul.mubr.f32.vlgmr.msra.gmra.mrb[88].mxu0 %v10649_v17 }
 0x782   : > { %v6689_v58 = vpop.f32.mrb[90].mxu1 }
 0x783   : > { %v4216_v41 = vadd.f32 %v6689_v58, %v10236_v19  ;;  %v4144_v59 = vpop.f32.mrb[91].mxu1  ;;  %v5778_v58 = vld [vmem:[%s11367_s11 + $0x170] sm:$0xff] }
 0x784   : > { %v4215_v11 = vadd.f32 %v4144_v59, %v10234_v10  ;;  %v5779_v59 = vld [vmem:[%s11367_s11 + $0x178] sm:$0xff] }
 0x785   : > { %v10657_v15 = vadd.f32 %v5745_v50, %v4216_v41  ;;  %v7192_v41 = vpack.c.bf16 %v5777_v1, %v5776_v53 }
 0x786   : > { %v10655_v43 = vadd.f32 %v5745_v50, %v4215_v11  ;;  %v7196_v11 = vpack.c.bf16 %v5779_v59, %v5778_v58 }
 0x788   : > { %6743 = vmatprep.mubr.f32.mxu0 %v10655_v43 }
 0x789   : > { %6744 = vmatmul.mubr.f32.gmra.mrb[90].mxu0 %v10657_v15 }
 0x78a   : > { %v6692_v46 = vpop.f32.mrb[92].mxu1 }
 0x78b   : > { %v4218_v49 = vadd.f32 %v6692_v46, %v10244_v34  ;;  %v4154_v37 = vpop.f32.mrb[93].mxu1  ;;  %v10760_v46 = vld [vmem:[%s11366_s10 + $0x2] ss:$0 sm:$0xff] }
 0x78c   : > { %v4217_v26 = vadd.f32 %v4154_v37, %v10242_v42 }
 0x78d   : > { %v10665_v19 = vadd.f32 %v5745_v50, %v4218_v49 }
 0x78e   : > { %v10663_v63 = vadd.f32 %v5745_v50, %v4217_v26 }
 0x790   : > { %6746 = vmatprep.mubr.f32.mxu0 %v10663_v63 }
 0x791   : > { %6747 = vmatmul.mubr.f32.gmra.mrb[92].mxu0 %v10665_v19 }
 0x795   : > { %v6695_v10 = vpop.f32.mrb[94].mxu1 }
 0x796   : > { %v4220_v62 = vadd.f32 %v6695_v10, %v10252_v8  ;;  %v4164_v56 = vpop.f32.mrb[95].mxu1 }
 0x797   : > { %v4219_v21 = vadd.f32 %v4164_v56, %v10250_v47 }
 0x798   : > { %v10673_v34 = vadd.f32 %v5745_v50, %v4220_v62 }
 0x799   : > { %v10671_v18 = vadd.f32 %v5745_v50, %v4219_v21 }
 0x79b   : > { %6749 = vmatprep.mubr.f32.mxu0 %v10671_v18 }
 0x79c   : > { %6750 = vmatmul.mubr.f32.gmra.mrb[94].mxu0 %v10673_v34 }
 0x79e   : > { %v6698_v42 = vpop.f32.mrb[96].mxu1 }
 0x79f   : > { %v4222_v33 = vadd.f32 %v6698_v42, %v10260_v31  ;;  %v4174_v27 = vpop.f32.mrb[97].mxu1 }
 0x7a0   : > { %v4221_v61 = vadd.f32 %v4174_v27, %v10258_v38 }
 0x7a1   : > { %v10681_v8 = vadd.f32 %v5745_v50, %v4222_v33 }
 0x7a2   : > { %v10679_v55 = vadd.f32 %v5745_v50, %v4221_v61 }
 0x7a4   : > { %6752 = vmatprep.mubr.f32.mxu0 %v10679_v55 }
 0x7a5   : > { %6753 = vmatmul.mubr.f32.gmra.mrb[96].mxu0 %v10681_v8 }
 0x7a6   : > { %v6701_v47 = vpop.f32.mrb[98].mxu1 }
 0x7a7   : > { %v4224_v60 = vadd.f32 %v6701_v47, %v10268_v16  ;;  %v4184_v13 = vpop.f32.mrb[99].mxu1 }
 0x7a8   : > { %v4223_v40 = vadd.f32 %v4184_v13, %v10266_v35 }
 0x7a9   : > { %v10689_v31 = vadd.f32 %v5745_v50, %v4224_v60 }
 0x7aa   : > { %v10687_v23 = vadd.f32 %v5745_v50, %v4223_v40  ;;  %v6704_v28 = vpop.f32.mrb[100].mxu1 }
 0x7ab   : > { %v4226_v38 = vadd.f32 %v6704_v28, %v10276_v32  ;;  %v4194_v45 = vpop.f32.mrb[101].mxu1 }
 0x7ac   : > { %6755 = vmatprep.mubr.f32.mxu0 %v10687_v23  ;;  %v4225_v24 = vadd.f32 %v4194_v45, %v10274_v3  ;;  %v5764_v3 = vld [vmem:[%s11367_s11 + $0x100] sm:$0xff] }
 0x7ad   : > { %6756 = vmatmul.mubr.f32.gmra.mrb[98].mxu0 %v10689_v31  ;;  %v10697_v16 = vadd.f32 %v5745_v50, %v4226_v38 }
 0x7ae   : > { %v10695_v44 = vadd.f32 %v5745_v50, %v4225_v24 }
 0x7b0   : > { %6758 = vmatprep.mubr.f32.mxu0 %v10695_v44 }
 0x7b1   : > { %6759 = vmatmul.mubr.f32.gmra.mrb[100].mxu0 %v10697_v16 }
 0x7b2   : > { %v6707_v35 = vpop.f32.mrb[102].mxu1 }
 0x7b3   : > { %v4228_v51 = vadd.f32 %v6707_v35, %v10284_v52  ;;  %v4204_v20 = vpop.f32.mrb[103].mxu1  ;;  %v7168_v52 = vpack.c.bf16 %v5765_v4, %v5764_v3 }
 0x7b4   : > { %v4227_v6 = vadd.f32 %v4204_v20, %v10282_v29  ;;  %v5766_v29 = vld [vmem:[%s11367_s11 + $0x110] sm:$0xff] }
 0x7b5   : > { %v10705_v54 = vadd.f32 %v5745_v50, %v4228_v51  ;;  %v7172_v2 = vpack.c.bf16 %v5767_v30, %v5766_v29  ;;  %7169 = vmatprep.subr.bf16.mxu1 %v7168_v52 }
 0x7b6   : > { %v10703_v32 = vadd.f32 %v5745_v50, %v4227_v6  ;;  %7171 = vmatpush3.bf16.msra.mxu1 %v7168_v52  ;;  %v7188_v50 = vpack.c.bf16 %v5775_v14, %v5774_v48 }
 0x7b7   : > { %7173 = vmatprep.subr.bf16.mxu1 %v7172_v2 }
 0x7b8   : > { %6761 = vmatprep.mubr.f32.mxu0 %v10703_v32 }
 0x7b9   : > { %6762 = vmatmul.mubr.f32.gmra.mrb[102].mxu0 %v10705_v54 }
 0x7ba   : > { %7175 = vmatpush3.bf16.msra.mxu1 %v7172_v2 }
 0x7bb   : > { %7177 = vmatprep.subr.bf16.mxu1 %v7176_v22 }
 0x7be   : > { %7179 = vmatpush3.bf16.msra.mxu1 %v7176_v22 }
 0x7bf   : > { %7181 = vmatprep.subr.bf16.mxu1 %v7180_v25 }
 0x7c2   : > { %7183 = vmatpush3.bf16.msra.mxu1 %v7180_v25 }
 0x7c3   : > { %7185 = vmatprep.subr.bf16.mxu1 %v7184_v57 }
 0x7c6   : > { %7187 = vmatpush3.bf16.msra.mxu1 %v7184_v57 }
 0x7c7   : > { %7189 = vmatprep.subr.bf16.mxu1 %v7188_v50 }
 0x7ca   : > { %7191 = vmatpush3.bf16.msra.mxu1 %v7188_v50 }
 0x7cb   : > { %7193 = vmatprep.subr.bf16.mxu1 %v7192_v41 }
 0x7ce   : > { %7195 = vmatpush3.bf16.msra.mxu1 %v7192_v41 }
 0x7cf   : > { %7197 = vmatprep.subr.bf16.mxu1 %v7196_v11 }
 0x7d2   : > { %7199 = vmatpush3.bf16.msra.mxu1 %v7196_v11 }
 0x854   : > { %v6742_v49 = vpop.f32.mrb[88].mxu0 }
 0x855   : > { %v10763_v37 = vadd.f32 %v6742_v49, %v10760_v46  ;;  %v4344_v26 = vpop.f32.mrb[89].mxu0 }
 0x856   : > { %v10766_v10 = vadd.f32 %v10760_v46, %v4344_v26 }
 0x857   : > { %v4472_v62 = vand.u32 2147483647, %v10763_v37  ;;  %v4424_v11 = vmax.f32 %v10763_v37, 0.0  ;;  %vm4440_vm6 = vcmp.ne.f32.partialorder %v10763_v37, %v10763_v37 }
 0x858   : > { %v4471_v56 = vand.u32 2147483647, %v10766_v10  ;;  %vm4439_vm7 = vcmp.ne.f32.partialorder %v10766_v10, %v10766_v10 }
 0x859   : > { %v4488_v21 = vsub.f32 0.0, %v4472_v62 }
 0x85a   : > { %v4487_v42 = vsub.f32 0.0, %v4471_v56  ;;  %v4423_v56 = vmax.f32 %v10766_v10, 0.0 }
 0x85b   : > { %v4505_v33 = vmul.f32 1.442695, %v4488_v21 }
 0x85c   : > { %v4503_v27 = vmul.f32 1.442695, %v4487_v42  ;;  %v6745_v61 = vpop.f32.mrb[90].mxu0 }
 0x85d   : > { %7646 = vpow2.f32 %v4505_v33  ;;  %v10771_v47 = vadd.f32 %v6745_v61, %v10760_v46  ;;  %v4354_v60 = vpop.f32.mrb[91].mxu0 }
 0x85e   : > { %7648 = vpow2.f32 %v4503_v27  ;;  %v10774_v13 = vadd.f32 %v10760_v46, %v4354_v60 }
 0x85f   : > { %v4474_v40 = vand.u32 2147483647, %v10771_v47  ;;  %v4426_v27 = vmax.f32 %v10771_v47, 0.0  ;;  %vm4442_vm11 = vcmp.ne.f32.partialorder %v10771_v47, %v10771_v47 }
 0x860   : > { %v4473_v28 = vand.u32 2147483647, %v10774_v13  ;;  %vm4441_vm13 = vcmp.ne.f32.partialorder %v10774_v13, %v10774_v13 }
 0x861   : > { %v4490_v38 = vsub.f32 0.0, %v4474_v40 }
 0x862   : > { %v4489_v45 = vsub.f32 0.0, %v4473_v28 }
 0x863   : > { %v4509_v24 = vmul.f32 1.442695, %v4490_v38 }
 0x864   : > { %v4507_v35 = vmul.f32 1.442695, %v4489_v45  ;;  %v6748_v51 = vpop.f32.mrb[92].mxu0 }
 0x865   : > { %7650 = vpow2.f32 %v4509_v24  ;;  %v10779_v20 = vadd.f32 %v6748_v51, %v10760_v46  ;;  %v4364_v6 = vpop.f32.mrb[93].mxu0 }
 0x866   : > { %7652 = vpow2.f32 %v4507_v35  ;;  %v10782_v4 = vadd.f32 %v10760_v46, %v4364_v6 }
 0x867   : > { %v7647_v3 = vpop.eup %7646  ;;  %v4476_v52 = vand.u32 2147483647, %v10779_v20  ;;  %vm4444_vm3 = vcmp.ne.f32.partialorder %v10779_v20, %v10779_v20 }
 0x868   : > { %v7649_v29 = vpop.eup %7648  ;;  %v4544_v30 = vadd.f32 1.0, %v7647_v3  ;;  %v4475_v2 = vand.u32 2147483647, %v10782_v4  ;;  %v4547_v25 = vmul.f32 -0.5, %v7647_v3  ;;  %v4550_v41 = vand.u32 2147483647, %v7647_v3 }
 0x869   : > { %v4535_v12 = vadd.f32 1.0, %v7649_v29  ;;  %v4492_v39 = vsub.f32 0.0, %v4476_v52  ;;  %v4538_v36 = vmul.f32 -0.5, %v7649_v29  ;;  %v4541_v21 = vand.u32 2147483647, %v7649_v29 }
 0x86a   : > { %7654 = vlog2.f32 %v4544_v30  ;;  %v4491_v7 = vsub.f32 0.0, %v4475_v2  ;;  %v4548_v58 = vadd.f32 1.0, %v4547_v25  ;;  %vm4551_vm8 = vcmp.lt.f32.partialorder %v4550_v41, 0.0004427343 }
 0x86b   : > { %7656 = vlog2.f32 %v4535_v12  ;;  %v4513_v22 = vmul.f32 1.442695, %v4492_v39  ;;  %v4539_v26 = vadd.f32 1.0, %v4538_v36  ;;  %vm4542_vm1 = vcmp.lt.f32.partialorder %v4541_v21, 0.0004427343 }
 0x86c   : > { %v4511_v0 = vmul.f32 1.442695, %v4491_v7  ;;  %v4549_v38 = vmul.f32 %v7647_v3, %v4548_v58  ;;  %v4425_v30 = vmax.f32 %v10774_v13, 0.0  ;;  %vm4443_vm15 = vcmp.ne.f32.partialorder %v10782_v4, %v10782_v4 }
 0x86d   : > { %7658 = vpow2.f32 %v4513_v22  ;;  %v4540_v35 = vmul.f32 %v7649_v29, %v4539_v26 }
 0x86e   : > { %7660 = vpow2.f32 %v4511_v0 }
 0x86f   : > { %v10786_v5 = vpop.eup %7650  ;;  %v6751_v48 = vpop.f32.mrb[94].mxu0 }
 0x870   : > { %v10788_v57 = vpop.eup %7652  ;;  %v10791_v14 = vadd.f32 %v6751_v48, %v10760_v46  ;;  %v4374_v50 = vpop.f32.mrb[95].mxu0  ;;  %v4562_v53 = vadd.f32 1.0, %v10786_v5  ;;  %v4565_v61 = vmul.f32 -0.5, %v10786_v5 }
 0x871   : > { %v10795_v1 = vadd.f32 %v10760_v46, %v4374_v50  ;;  %v4553_v59 = vadd.f32 1.0, %v10788_v57  ;;  %v4556_v51 = vmul.f32 -0.5, %v10788_v57 }
 0x872   : > { %v4478_v49 = vand.u32 2147483647, %v10791_v14  ;;  %7662 = vlog2.f32 %v4562_v53  ;;  %v4566_v22 = vadd.f32 1.0, %v4565_v61  ;;  %v4568_v53 = vand.u32 2147483647, %v10786_v5 }
 0x873   : > { %v4477_v62 = vand.u32 2147483647, %v10795_v1  ;;  %7664 = vlog2.f32 %v4553_v59  ;;  %v4557_v50 = vadd.f32 1.0, %v4556_v51  ;;  %vm4445_vm9 = vcmp.ne.f32.partialorder %v10795_v1, %v10795_v1 }
 0x874   : > { %v7655_v42 = vpop.eup %7654  ;;  %v4494_v33 = vsub.f32 0.0, %v4478_v49  ;;  %vm4569_vm12 = vcmp.lt.f32.partialorder %v4568_v53, 0.0004427343  ;;  %vm4446_vm10 = vcmp.ne.f32.partialorder %v10791_v14, %v10791_v14 }
 0x875   : > { %v7657_v60 = vpop.eup %7656  ;;  %v4493_v40 = vsub.f32 0.0, %v4477_v62  ;;  %v4546_v28 = vmul.f32 0.6931472, %v7655_v42 }
 0x876   : > { %v4517_v45 = vmul.f32 1.442695, %v4494_v33  ;;  %v4537_v24 = vmul.f32 0.6931472, %v7657_v60  ;;  %v4567_v33 = vmul.f32 %v10786_v5, %v4566_v22  ;;  %v4427_v22 = vmax.f32 %v10782_v4, 0.0 }
 0x877   : > { %v4515_v6 = vmul.f32 1.442695, %v4493_v40  ;;  %v4552_v52 = vsel %vm4551_vm8, %v4549_v38, %v4546_v28  ;;  %v10810_v2 = vpop.eup %7658  ;;  %v4558_v28 = vmul.f32 %v10788_v57, %v4557_v50 }
 0x878   : > { %7666 = vpow2.f32 %v4517_v45  ;;  %v6754_v12 = vpop.f32.mrb[96].mxu0  ;;  %v4543_v39 = vsel %vm4542_vm1, %v4540_v35, %v4537_v24  ;;  %v4680_v7 = vadd.f32 %v4552_v52, %v4424_v11  ;;  %v10812_v0 = vpop.eup %7660  ;;  %v4580_v36 = vadd.f32 1.0, %v10810_v2 }
 0x879   : > { %7668 = vpow2.f32 %v4515_v6  ;;  %v10815_v3 = vadd.f32 %v6754_v12, %v10760_v46  ;;  %v4384_v29 = vpop.f32.mrb[97].mxu0  ;;  %v4679_v25 = vadd.f32 %v4543_v39, %v4423_v56  ;;  %v4571_v58 = vadd.f32 1.0, %v10812_v0 }
 0x87a   : > { %v10819_v48 = vadd.f32 %v10760_v46, %v4384_v29  ;;  %v4559_v11 = vand.u32 2147483647, %v10788_v57  ;;  %7670 = vlog2.f32 %v4580_v36  ;;  %v4696_v62 = vsel %vm4440_vm6, %v10763_v37, %v4680_v7 }
 0x87b   : > { %v4480_v41 = vand.u32 2147483647, %v10815_v3  ;;  %v4695_v59 = vsel %vm4439_vm7, %v10766_v10, %v4679_v25  ;;  %7672 = vlog2.f32 %v4571_v58  ;;  %v4574_v56 = vmul.f32 -0.5, %v10812_v0 }
 0x87c   : > { %v7663_v49 = vpop.eup %7662  ;;  %v4479_v26 = vand.u32 2147483647, %v10819_v48  ;;  %6796 = vmatprep.mubr.f32.mxu1 %v4695_v59  ;;  %v4583_v61 = vmul.f32 -0.5, %v10810_v2  ;;  %vm4560_vm14 = vcmp.lt.f32.partialorder %v4559_v11, 0.0004427343  ;;  %v4428_v29 = vmax.f32 %v10779_v20, 0.0 }
 0x87d   : > { %v7665_v21 = vpop.eup %7664  ;;  %v4496_v10 = vsub.f32 0.0, %v4480_v41  ;;  %6797 = vmatmul.mubr.f32.vlgmr.msra.gmra.mrb[104].mxu1 %v4696_v62  ;;  %v4564_v42 = vmul.f32 0.6931472, %v7663_v49  ;;  %v4575_v51 = vadd.f32 1.0, %v4574_v56  ;;  %v4586_v12 = vand.u32 2147483647, %v10810_v2 }
 0x87e   : > { %v4495_v60 = vsub.f32 0.0, %v4479_v26  ;;  %v4555_v40 = vmul.f32 0.6931472, %v7665_v21  ;;  %v4584_v52 = vadd.f32 1.0, %v4583_v61  ;;  %v4577_v36 = vand.u32 2147483647, %v10812_v0 }
 0x87f   : > { %v4521_v38 = vmul.f32 1.442695, %v4496_v10  ;;  %v4570_v37 = vsel %vm4569_vm12, %v4567_v33, %v4564_v42  ;;  %v4576_v41 = vmul.f32 %v10812_v0, %v4575_v51  ;;  %vm10874_vm0 = vcmp.lt.f32.partialorder %v4586_v12, 0.0004427343 }
 0x880   : > { %v4519_v45 = vmul.f32 1.442695, %v4495_v60  ;;  %v4561_v24 = vsel %vm4560_vm14, %v4558_v28, %v4555_v40  ;;  %v4682_v35 = vadd.f32 %v4570_v37, %v4426_v27  ;;  %v6757_v6 = vpop.f32.mrb[98].mxu0  ;;  %v4585_v49 = vmul.f32 %v10810_v2, %v4584_v52 }
 0x881   : > { %7674 = vpow2.f32 %v4521_v38  ;;  %v4681_v5 = vadd.f32 %v4561_v24, %v4425_v30  ;;  %v10846_v57 = vadd.f32 %v6757_v6, %v10760_v46  ;;  %v4394_v7 = vpop.f32.mrb[99].mxu0  ;;  %vm4578_vm4 = vcmp.lt.f32.partialorder %v4577_v36, 0.0004427343 }
 0x882   : > { %v10843_v39 = vpop.eup %7666  ;;  %7676 = vpow2.f32 %v4519_v45  ;;  %v10853_v27 = vadd.f32 %v10760_v46, %v4394_v7  ;;  %v4698_v58 = vsel %vm4442_vm11, %v10771_v47, %v4682_v35  ;;  %v4430_v6 = vmax.f32 %v10791_v14, 0.0 }
 0x883   : > { %v10850_v25 = vpop.eup %7668  ;;  %v4697_v30 = vsel %vm4441_vm13, %v10774_v13, %v4681_v5  ;;  %v4598_v50 = vadd.f32 1.0, %v10843_v39  ;;  %v4482_v53 = vand.u32 2147483647, %v10846_v57  ;;  %v4601_v21 = vmul.f32 -0.5, %v10843_v39 }
 0x884   : > { %6799 = vmatprep.mubr.f32.mxu1 %v4697_v30  ;;  %v4589_v13 = vadd.f32 1.0, %v10850_v25  ;;  %v7671_v59 = vpop.eup %7670  ;;  %v4481_v11 = vand.u32 2147483647, %v10853_v27  ;;  %v6760_v56 = vpop.f32.mrb[100].mxu0  ;;  %v4592_v2 = vmul.f32 -0.5, %v10850_v25  ;;  %vm4447_vm8 = vcmp.ne.f32.partialorder %v10819_v48, %v10819_v48 }
 0x885   : > { %6800 = vmatmul.mubr.f32.gmra.mrb[106].mxu1 %v4698_v58  ;;  %7678 = vlog2.f32 %v4598_v50  ;;  %v7673_v62 = vpop.eup %7672  ;;  %v4498_v47 = vsub.f32 0.0, %v4482_v53  ;;  %v4582_v0 = vmul.f32 0.6931472, %v7671_v59  ;;  %v10880_v42 = vadd.f32 %v6760_v56, %v10760_v46  ;;  %v4404_v33 = vpop.f32.mrb[101].mxu0 }
 0x886   : > { %7680 = vlog2.f32 %v4589_v13  ;;  %v4497_v10 = vsub.f32 0.0, %v4481_v11  ;;  %v4573_v61 = vmul.f32 0.6931472, %v7673_v62  ;;  %v10884_v40 = vadd.f32 %v10760_v46, %v4404_v33 }
 0x887   : > { %v4525_v60 = vmul.f32 1.442695, %v4498_v47  ;;  %v4588_v28 = vsel %vm10874_vm0, %v4585_v49, %v4582_v0  ;;  %v4484_v37 = vand.u32 2147483647, %v10880_v42  ;;  %v4593_v12 = vadd.f32 1.0, %v4592_v2 }
 0x888   : > { %v4523_v38 = vmul.f32 1.442695, %v4497_v10  ;;  %v4579_v45 = vsel %vm4578_vm4, %v4576_v41, %v4573_v61  ;;  %v4684_v24 = vadd.f32 %v4588_v28, %v4428_v29  ;;  %v4483_v35 = vand.u32 2147483647, %v10884_v40 }
 0x889   : > { %7682 = vpow2.f32 %v4525_v60  ;;  %v4683_v51 = vadd.f32 %v4579_v45, %v4427_v22  ;;  %v4500_v52 = vsub.f32 0.0, %v4484_v37  ;;  %v4602_v7 = vadd.f32 1.0, %v4601_v21 }
 0x88a   : > { %7684 = vpow2.f32 %v4523_v38  ;;  %v4499_v36 = vsub.f32 0.0, %v4483_v35  ;;  %v4604_v53 = vand.u32 2147483647, %v10843_v39  ;;  %v4700_v59 = vsel %vm4444_vm3, %v10779_v20, %v4684_v24 }
 0x88b   : > { %v10891_v5 = vpop.eup %7674  ;;  %v4699_v29 = vsel %vm4443_vm15, %v10782_v4, %v4683_v51  ;;  %v4529_v58 = vmul.f32 1.442695, %v4500_v52  ;;  %v4595_v26 = vand.u32 2147483647, %v10850_v25  ;;  %v4594_v56 = vmul.f32 %v10850_v25, %v4593_v12 }
 0x88c   : > { %v10893_v30 = vpop.eup %7676  ;;  %v6763_v50 = vpop.f32.mrb[102].mxu0  ;;  %v4616_v22 = vadd.f32 1.0, %v10891_v5  ;;  %6802 = vmatprep.mubr.f32.mxu1 %v4699_v29  ;;  %v4527_v49 = vmul.f32 1.442695, %v4499_v36  ;;  %v4603_v0 = vmul.f32 %v10843_v39, %v4602_v7  ;;  %vm4605_vm5 = vcmp.lt.f32.partialorder %v4604_v53, 0.0004427343 }
 0x88d   : > { %v10902_v41 = vadd.f32 %v6763_v50, %v10760_v46  ;;  %v4414_v13 = vpop.f32.mrb[103].mxu0  ;;  %v4607_v11 = vadd.f32 1.0, %v10893_v30  ;;  %6803 = vmatmul.mubr.f32.gmra.mrb[108].mxu1 %v4700_v59  ;;  %v4619_v61 = vmul.f32 -0.5, %v10891_v5  ;;  %v4429_v60 = vmax.f32 %v10795_v1, 0.0 }
 0x88e   : > { %v10910_v4 = vadd.f32 %v10760_v46, %v4414_v13  ;;  %7686 = vlog2.f32 %v4616_v22  ;;  %vm4596_vm2 = vcmp.lt.f32.partialorder %v4595_v26, 0.0004427343  ;;  %v4610_v35 = vmul.f32 -0.5, %v10893_v30 }
 0x88f   : > { %v7679_v62 = vpop.eup %7678  ;;  %7688 = vpow2.f32 %v4529_v58  ;;  %v4486_v47 = vand.u32 2147483647, %v10902_v41  ;;  %v4620_v52 = vadd.f32 1.0, %v4619_v61  ;;  %v4613_v58 = vand.u32 2147483647, %v10893_v30 }
 0x890   : > { %v7681_v21 = vpop.eup %7680  ;;  %7690 = vpow2.f32 %v4527_v49  ;;  %v4485_v20 = vand.u32 2147483647, %v10910_v4  ;;  %v4600_v10 = vmul.f32 0.6931472, %v7679_v62  ;;  %v4611_v53 = vadd.f32 1.0, %v4610_v35 }
 0x891   : > { %v4502_v46 = vsub.f32 0.0, %v4486_v47  ;;  %v4591_v33 = vmul.f32 0.6931472, %v7681_v21  ;;  %7692 = vlog2.f32 %v4607_v11  ;;  %v4621_v59 = vmul.f32 %v10891_v5, %v4620_v52 }
 0x892   : > { %v4501_v2 = vsub.f32 0.0, %v4485_v20  ;;  %v4606_v28 = vsel %vm4605_vm5, %v4603_v0, %v4600_v10  ;;  %vm4614_vm7 = vcmp.lt.f32.partialorder %v4613_v58, 0.0004427343  ;;  %vm4448_vm1 = vcmp.ne.f32.partialorder %v10815_v3, %v10815_v3 }
 0x893   : > { %v4533_v38 = vmul.f32 1.442695, %v4502_v46  ;;  %v4597_v25 = vsel %vm4596_vm2, %v4594_v56, %v4591_v33  ;;  %v4686_v37 = vadd.f32 %v4606_v28, %v4430_v6  ;;  %v10919_v39 = vpop.eup %7682  ;;  %v4622_v6 = vand.u32 2147483647, %v10891_v5 }
 0x894   : > { %v4531_v45 = vmul.f32 1.442695, %v4501_v2  ;;  %v4685_v24 = vadd.f32 %v4597_v25, %v4429_v60  ;;  %v7685_v51 = vpop.eup %7684  ;;  %v4634_v50 = vadd.f32 1.0, %v10919_v39  ;;  %v4612_v56 = vmul.f32 %v10893_v30, %v4611_v53 }
 0x895   : > { %7694 = vpow2.f32 %v4533_v38  ;;  %v4625_v7 = vadd.f32 1.0, %v7685_v51  ;;  %v4702_v36 = vsel %vm4446_vm10, %v10791_v14, %v4686_v37  ;;  %vm4623_vm6 = vcmp.lt.f32.partialorder %v4622_v6, 0.0004427343 }
 0x896   : > { %7696 = vpow2.f32 %v4531_v45  ;;  %v4701_v12 = vsel %vm4445_vm9, %v10795_v1, %v4685_v24  ;;  %v4432_v14 = vmax.f32 %v10815_v3, 0.0  ;;  %v4628_v26 = vmul.f32 -0.5, %v7685_v51 }
 0x897   : > { %6805 = vmatprep.mubr.f32.mxu1 %v4701_v12  ;;  %7698 = vlog2.f32 %v4625_v7  ;;  %v4637_v0 = vmul.f32 -0.5, %v10919_v39  ;;  %v4431_v5 = vmax.f32 %v10819_v48, 0.0  ;;  %v4631_v2 = vand.u32 2147483647, %v7685_v51 }
 0x898   : > { %v7687_v29 = vpop.eup %7686  ;;  %6806 = vmatmul.mubr.f32.gmra.mrb[110].mxu1 %v4702_v36  ;;  %7700 = vlog2.f32 %v4634_v50  ;;  %v4629_v61 = vadd.f32 1.0, %v4628_v26  ;;  %v4640_v25 = vand.u32 2147483647, %v10919_v39  ;;  %v4433_v52 = vmax.f32 %v10853_v27, 0.0 }
 0x899   : > { %v10930_v22 = vpop.eup %7688  ;;  %v4618_v13 = vmul.f32 0.6931472, %v7687_v29  ;;  %v4638_v30 = vadd.f32 1.0, %v4637_v0  ;;  %v4434_v12 = vmax.f32 %v10846_v57, 0.0  ;;  %vm4632_vm11 = vcmp.lt.f32.partialorder %v4631_v2, 0.0004427343 }
 0x89a   : > { %v10934_v1 = vpop.eup %7690  ;;  %v4652_v21 = vadd.f32 1.0, %v10930_v22  ;;  %v4655_v37 = vmul.f32 -0.5, %v10930_v22  ;;  %vm4641_vm12 = vcmp.lt.f32.partialorder %v4640_v25, 0.0004427343  ;;  %vm4449_vm13 = vcmp.ne.f32.partialorder %v10853_v27, %v10853_v27 }
 0x89b   : > { %v7693_v11 = vpop.eup %7692  ;;  %v4624_v49 = vsel %vm4623_vm6, %v4621_v59, %v4618_v13  ;;  %v4643_v62 = vadd.f32 1.0, %v10934_v1  ;;  %v4646_v28 = vmul.f32 -0.5, %v10934_v1  ;;  %v4639_v29 = vmul.f32 %v10919_v39, %v4638_v30 }
 0x89c   : > { %v4609_v47 = vmul.f32 0.6931472, %v7693_v11  ;;  %v4688_v10 = vadd.f32 %v4624_v49, %v4432_v14  ;;  %v4656_v13 = vadd.f32 1.0, %v4655_v37  ;;  %v4658_v14 = vand.u32 2147483647, %v10930_v22 }
 0x89d   : > { %7702 = vlog2.f32 %v4643_v62  ;;  %v4647_v53 = vadd.f32 1.0, %v4646_v28  ;;  %vm4450_vm14 = vcmp.ne.f32.partialorder %v10846_v57, %v10846_v57  ;;  %vm4451_vm0 = vcmp.ne.f32.partialorder %v10884_v40, %v10884_v40 }
 0x89e   : > { %v4615_v20 = vsel %vm4614_vm7, %v4612_v56, %v4609_v47  ;;  %7704 = vlog2.f32 %v4652_v21  ;;  %v4704_v35 = vsel %vm4448_vm1, %v10815_v3, %v4688_v10  ;;  %v4649_v3 = vand.u32 2147483647, %v10934_v1 }
 0x89f   : > { %v10942_v46 = vpop.eup %7694  ;;  %v4687_v33 = vadd.f32 %v4615_v20, %v4431_v5  ;;  %v4435_v56 = vmax.f32 %v10884_v40, 0.0  ;;  %v4648_v21 = vmul.f32 %v10934_v1, %v4647_v53  ;;  %v4657_v10 = vmul.f32 %v10930_v22, %v4656_v13  ;;  %v5203_v53 = vld [vmem:[#allocation7 + $0x10] sm:$0xff] }
 0x8a0   : > { %v10944_v60 = vpop.eup %7696  ;;  %v4670_v6 = vadd.f32 1.0, %v10942_v46  ;;  %vm4650_vm15 = vcmp.lt.f32.partialorder %v4649_v3, 0.0004427343  ;;  %vm4659_vm3 = vcmp.lt.f32.partialorder %v4658_v14, 0.0004427343  ;;  %vm4452_vm4 = vcmp.ne.f32.partialorder %v10880_v42, %v10880_v42  ;;  %v5204_v3 = vld [vmem:[#allocation7 + $0x18] sm:$0xff] }
 0x8a1   : > { %v4703_v38 = vsel %vm4447_vm8, %v10819_v48, %v4687_v33  ;;  %v4661_v45 = vadd.f32 1.0, %v10944_v60  ;;  %v7699_v24 = vpop.eup %7698  ;;  %v4630_v48 = vmul.f32 %v7685_v51, %v4629_v61  ;;  %v4664_v49 = vmul.f32 -0.5, %v10944_v60 }
 0x8a2   : > { %6808 = vmatprep.mubr.f32.mxu1 %v4703_v38  ;;  %v7701_v7 = vpop.eup %7700  ;;  %v4627_v36 = vmul.f32 0.6931472, %v7699_v24  ;;  %v4673_v51 = vmul.f32 -0.5, %v10942_v46  ;;  %v4436_v61 = vmax.f32 %v10880_v42, 0.0  ;;  %v4667_v28 = vand.u32 2147483647, %v10944_v60 }
 0x8a3   : > { %6809 = vmatmul.mubr.f32.gmra.mrb[112].mxu1 %v4704_v35  ;;  %7706 = vlog2.f32 %v4661_v45  ;;  %v4636_v50 = vmul.f32 0.6931472, %v7701_v7  ;;  %v4665_v2 = vadd.f32 1.0, %v4664_v49  ;;  %vm4453_vm9 = vcmp.ne.f32.partialorder %v10910_v4, %v10910_v4  ;;  %v5208_v49 = vld [vmem:[#allocation7 + $0x38] sm:$0xff] }
 0x8a4   : > { %7708 = vlog2.f32 %v4670_v6  ;;  %v4633_v58 = vsel %vm4632_vm11, %v4630_v48, %v4627_v36  ;;  %v4674_v38 = vadd.f32 1.0, %v4673_v51  ;;  %vm4668_vm5 = vcmp.lt.f32.partialorder %v4667_v28, 0.0004427343  ;;  %v5211_v51 = vld [vmem:[#allocation7 + $0x50] sm:$0xff] }
 0x8a5   : > { %v4689_v59 = vadd.f32 %v4633_v58, %v4433_v52  ;;  %v4642_v11 = vsel %vm4641_vm12, %v4639_v29, %v4636_v50  ;;  %v4666_v35 = vmul.f32 %v10944_v60, %v4665_v2  ;;  %v4437_v52 = vmax.f32 %v10910_v4, 0.0  ;;  %v5202_v29 = vld [vmem:[#allocation7 + $0x8] sm:$0xff]  ;;  %v10995_v2 = vld [vmem:[%s11549_s29 + $0x2] ss:$0 sm:$0xff] }
 0x8a6   : > { %v4690_v39 = vadd.f32 %v4642_v11, %v4434_v12  ;;  %v4675_v6 = vmul.f32 %v10942_v46, %v4674_v38  ;;  %vm4454_vm10 = vcmp.ne.f32.partialorder %v10902_v41, %v10902_v41  ;;  %v7204_v13 = vpack.c.bf16 %v5204_v3, %v5203_v53  ;;  %v5206_v11 = vld [vmem:[#allocation7 + $0x28] sm:$0xff] }
 0x8a7   : > { %v7703_v26 = vpop.eup %7702  ;;  %v4705_v47 = vsel %vm4449_vm13, %v10853_v27, %v4689_v59  ;;  %v5205_v59 = vld [vmem:[#allocation7 + $0x20] sm:$0xff] }
 0x8a8   : > { %v7705_v62 = vpop.eup %7704  ;;  %v4645_v0 = vmul.f32 0.6931472, %v7703_v26  ;;  %6811 = vmatprep.mubr.f32.mxu1 %v4705_v47  ;;  %v4706_v5 = vsel %vm4450_vm14, %v10846_v57, %v4690_v39  ;;  %v4676_v57 = vand.u32 2147483647, %v10942_v46  ;;  %v5201_v46 = vld [vmem:[#allocation7] sm:$0xff]  ;;  %v7208_v14 = vpack.c.bf16 %v5206_v11, %v5205_v59  ;;  %v5210_v39 = vld [vmem:[#allocation7 + $0x48] sm:$0xff] }
 0x8a9   : > { %v4654_v20 = vmul.f32 0.6931472, %v7705_v62  ;;  %6812 = vmatmul.mubr.f32.gmra.mrb[114].mxu1 %v4706_v5  ;;  %v7200_v58 = vpack.c.bf16 %v5202_v29, %v5201_v46  ;;  %v5212_v47 = vld [vmem:[#allocation7 + $0x58] sm:$0xff]  ;;  %v5215_v5 = vld [vmem:[#allocation7 + $0x70] sm:$0xff] }
 0x8aa   : > { %v4651_v33 = vsel %vm4650_vm15, %v4648_v21, %v4645_v0  ;;  %vm4677_vm2 = vcmp.lt.f32.partialorder %v4676_v57, 0.0004427343  ;;  %v5213_v0 = vld [vmem:[#allocation7 + $0x60] sm:$0xff]  ;;  %v5214_v21 = vld [vmem:[#allocation7 + $0x68] sm:$0xff] }
 0x8ab   : > { %v4691_v30 = vadd.f32 %v4651_v33, %v4435_v56  ;;  %v4660_v27 = vsel %vm4659_vm3, %v4657_v10, %v4654_v20  ;;  %7201 = vmatprep.subr.bf16.mxu0 %v7200_v58  ;;  %v7220_v56 = vpack.c.bf16 %v5212_v47, %v5211_v51  ;;  %v7224_v20 = vpack.c.bf16 %v5214_v21, %v5213_v0  ;;  %v5216_v10 = vld [vmem:[#allocation7 + $0x78] sm:$0xff] }
 0x8ac   : > { %v4692_v1 = vadd.f32 %v4660_v27, %v4436_v61  ;;  %7203 = vmatpush3.bf16.msra.mxu0 %v7200_v58  ;;  %v7228_v33 = vpack.c.bf16 %v5216_v10, %v5215_v5 }
 0x8ad   : > { %v7707_v25 = vpop.eup %7706  ;;  %v4707_v22 = vsel %vm4451_vm0, %v10884_v40, %v4691_v30  ;;  %v4438_v40 = vmax.f32 %v10902_v41, 0.0  ;;  %7205 = vmatprep.subr.bf16.mxu0 %v7204_v13 }
 0x8ae   : > { %v7709_v37 = vpop.eup %7708  ;;  %6814 = vmatprep.mubr.f32.mxu1 %v4707_v22  ;;  %v4708_v45 = vsel %vm4452_vm4, %v10880_v42, %v4692_v1  ;;  %v4663_v24 = vmul.f32 0.6931472, %v7707_v25 }
 0x8af   : > { %6815 = vmatmul.mubr.f32.gmra.mrb[116].mxu1 %v4708_v45  ;;  %v4672_v12 = vmul.f32 0.6931472, %v7709_v37 }
 0x8b0   : > { %v4669_v7 = vsel %vm4668_vm5, %v4666_v35, %v4663_v24  ;;  %7207 = vmatpush3.bf16.msra.mxu0 %v7204_v13 }
 0x8b1   : > { %v4693_v36 = vadd.f32 %v4669_v7, %v4437_v52  ;;  %v4678_v48 = vsel %vm4677_vm2, %v4675_v6, %v4672_v12  ;;  %7209 = vmatprep.subr.bf16.mxu0 %v7208_v14 }
 0x8b2   : > { %v4694_v42 = vadd.f32 %v4678_v48, %v4438_v40 }
 0x8b3   : > { %v4709_v50 = vsel %vm4453_vm9, %v10910_v4, %v4693_v36  ;;  %v5207_v4 = vld [vmem:[#allocation7 + $0x30] sm:$0xff] }
 0x8b4   : > { %6817 = vmatprep.mubr.f32.mxu1 %v4709_v50  ;;  %v4710_v60 = vsel %vm4454_vm10, %v10902_v41, %v4694_v42  ;;  %v7212_v26 = vpack.c.bf16 %v5208_v49, %v5207_v4  ;;  %7211 = vmatpush3.bf16.msra.mxu0 %v7208_v14  ;;  %v5209_v41 = vld [vmem:[#allocation7 + $0x40] sm:$0xff] }
 0x8b5   : > { %6818 = vmatmul.mubr.f32.gmra.mrb[118].mxu1 %v4710_v60  ;;  %v7216_v62 = vpack.c.bf16 %v5210_v39, %v5209_v41 }
 0x8b6   : > { %7213 = vmatprep.subr.bf16.mxu0 %v7212_v26 }
 0x8b8   : > { %7215 = vmatpush3.bf16.msra.mxu0 %v7212_v26 }
 0x8b9   : > { %7217 = vmatprep.subr.bf16.mxu0 %v7216_v62 }
 0x8bc   : > { %7219 = vmatpush3.bf16.msra.mxu0 %v7216_v62 }
 0x8bd   : > { %7221 = vmatprep.subr.bf16.mxu0 %v7220_v56 }
 0x8c0   : > { %7223 = vmatpush3.bf16.msra.mxu0 %v7220_v56 }
 0x8c1   : > { %7225 = vmatprep.subr.bf16.mxu0 %v7224_v20 }
 0x8c4   : > { %7227 = vmatpush3.bf16.msra.mxu0 %v7224_v20 }
 0x8c5   : > { %7229 = vmatprep.subr.bf16.mxu0 %v7228_v33 }
 0x8c8   : > { %7231 = vmatpush3.bf16.msra.mxu0 %v7228_v33 }
 0x950   : > { %v6798_v61 = vpop.f32.mrb[104].mxu1 }
 0x951   : > { %v4874_v30 = vadd.f32 %v6798_v61, %v10649_v17  ;;  %v4794_v27 = vpop.f32.mrb[105].mxu1 }
 0x952   : > { %v4873_v28 = vadd.f32 %v4794_v27, %v10647_v9 }
 0x953   : > { %v11000_v38 = vadd.f32 %v10995_v2, %v4874_v30 }
 0x954   : > { %v11003_v1 = vadd.f32 %v10995_v2, %v4873_v28 }
 0x955   : > { %v4962_v57 = vand.u32 2147483647, %v11000_v38  ;;  %v4914_v56 = vmax.f32 %v11000_v38, 0.0  ;;  %vm4930_vm7 = vcmp.ne.f32.partialorder %v11000_v38, %v11000_v38 }
 0x956   : > { %v4961_v25 = vand.u32 2147483647, %v11003_v1  ;;  %v4913_v30 = vmax.f32 %v11003_v1, 0.0  ;;  %vm4929_vm6 = vcmp.ne.f32.partialorder %v11003_v1, %v11003_v1 }
 0x957   : > { %v4978_v22 = vsub.f32 0.0, %v4962_v57 }
 0x958   : > { %v4977_v37 = vsub.f32 0.0, %v4961_v25  ;;  %v6801_v45 = vpop.f32.mrb[106].mxu1 }
 0x959   : > { %v4995_v24 = vmul.f32 1.442695, %v4978_v22  ;;  %v4876_v35 = vadd.f32 %v6801_v45, %v10657_v15  ;;  %v4804_v17 = vpop.f32.mrb[107].mxu1 }
 0x95a   : > { %v4993_v52 = vmul.f32 1.442695, %v4977_v37  ;;  %v4875_v9 = vadd.f32 %v4804_v17, %v10655_v43 }
 0x95b   : > { %7710 = vpow2.f32 %v4995_v24  ;;  %v11010_v12 = vadd.f32 %v10995_v2, %v4876_v35 }
 0x95c   : > { %7712 = vpow2.f32 %v4993_v52  ;;  %v11013_v6 = vadd.f32 %v10995_v2, %v4875_v9 }
 0x95d   : > { %v4964_v7 = vand.u32 2147483647, %v11010_v12  ;;  %v4916_v28 = vmax.f32 %v11010_v12, 0.0  ;;  %vm4932_vm14 = vcmp.ne.f32.partialorder %v11010_v12, %v11010_v12 }
 0x95e   : > { %v4963_v40 = vand.u32 2147483647, %v11013_v6  ;;  %v4915_v25 = vmax.f32 %v11013_v6, 0.0  ;;  %vm4931_vm11 = vcmp.ne.f32.partialorder %v11013_v6, %v11013_v6 }
 0x95f   : > { %v4980_v36 = vsub.f32 0.0, %v4964_v7 }
 0x960   : > { %v4979_v48 = vsub.f32 0.0, %v4963_v40  ;;  %v6804_v15 = vpop.f32.mrb[108].mxu1 }
 0x961   : > { %v4999_v42 = vmul.f32 1.442695, %v4980_v36  ;;  %v4878_v60 = vadd.f32 %v6804_v15, %v10665_v19  ;;  %v4814_v43 = vpop.f32.mrb[109].mxu1 }
 0x962   : > { %v4997_v50 = vmul.f32 1.442695, %v4979_v48  ;;  %v4877_v46 = vadd.f32 %v4814_v43, %v10663_v63 }
 0x963   : > { %7714 = vpow2.f32 %v4999_v42  ;;  %v11020_v29 = vadd.f32 %v10995_v2, %v4878_v60 }
 0x964   : > { %7716 = vpow2.f32 %v4997_v50  ;;  %v11023_v58 = vadd.f32 %v10995_v2, %v4877_v46 }
 0x965   : > { %v7711_v53 = vpop.eup %7710  ;;  %v4966_v13 = vand.u32 2147483647, %v11020_v29  ;;  %v4918_v42 = vmax.f32 %v11020_v29, 0.0  ;;  %vm4934_vm3 = vcmp.ne.f32.partialorder %v11020_v29, %v11020_v29 }
 0x966   : > { %v7713_v3 = vpop.eup %7712  ;;  %v5034_v59 = vadd.f32 1.0, %v7711_v53  ;;  %v4965_v11 = vand.u32 2147483647, %v11023_v58  ;;  %v5037_v49 = vmul.f32 -0.5, %v7711_v53  ;;  %v5040_v21 = vand.u32 2147483647, %v7711_v53 }
 0x967   : > { %v5025_v4 = vadd.f32 1.0, %v7713_v3  ;;  %v4982_v19 = vsub.f32 0.0, %v4966_v13  ;;  %v5028_v62 = vmul.f32 -0.5, %v7713_v3  ;;  %v5031_v10 = vand.u32 2147483647, %v7713_v3 }
 0x968   : > { %7718 = vlog2.f32 %v5034_v59  ;;  %v4981_v14 = vsub.f32 0.0, %v4965_v11  ;;  %v5038_v33 = vadd.f32 1.0, %v5037_v49  ;;  %vm11051_vm8 = vcmp.lt.f32.partialorder %v5040_v21, 0.0004427343 }
 0x969   : > { %7720 = vlog2.f32 %v5025_v4  ;;  %v5003_v63 = vmul.f32 1.442695, %v4982_v19  ;;  %v5029_v57 = vadd.f32 1.0, %v5028_v62  ;;  %vm11056_vm1 = vcmp.lt.f32.partialorder %v5031_v10, 0.0004427343 }
 0x96a   : > { %v5001_v26 = vmul.f32 1.442695, %v4981_v14  ;;  %v5039_v52 = vmul.f32 %v7711_v53, %v5038_v33  ;;  %v4917_v48 = vmax.f32 %v11023_v58, 0.0  ;;  %vm4933_vm15 = vcmp.ne.f32.partialorder %v11023_v58, %v11023_v58 }
 0x96b   : > { %v6807_v41 = vpop.f32.mrb[110].mxu1  ;;  %7722 = vpow2.f32 %v5003_v63  ;;  %v5030_v60 = vmul.f32 %v7713_v3, %v5029_v57 }
 0x96c   : > { %v4880_v39 = vadd.f32 %v6807_v41, %v10673_v34  ;;  %v4824_v51 = vpop.f32.mrb[111].mxu1  ;;  %7724 = vpow2.f32 %v5001_v26 }
 0x96d   : > { %v11028_v47 = vpop.eup %7714  ;;  %v4879_v0 = vadd.f32 %v4824_v51, %v10671_v18 }
 0x96e   : > { %v11032_v5 = vpop.eup %7716  ;;  %v11035_v20 = vadd.f32 %v10995_v2, %v4880_v39  ;;  %v5052_v61 = vadd.f32 1.0, %v11028_v47  ;;  %v5055_v45 = vmul.f32 -0.5, %v11028_v47  ;;  %v5058_v43 = vand.u32 2147483647, %v11028_v47 }
 0x96f   : > { %v11039_v34 = vadd.f32 %v10995_v2, %v4879_v0  ;;  %v5043_v27 = vadd.f32 1.0, %v11032_v5  ;;  %v5046_v9 = vmul.f32 -0.5, %v11032_v5  ;;  %v5049_v53 = vand.u32 2147483647, %v11032_v5 }
 0x970   : > { %v4968_v18 = vand.u32 2147483647, %v11035_v20  ;;  %7726 = vlog2.f32 %v5052_v61  ;;  %v5056_v59 = vadd.f32 1.0, %v5055_v45  ;;  %vm11078_vm12 = vcmp.lt.f32.partialorder %v5058_v43, 0.0004427343 }
 0x971   : > { %v4967_v22 = vand.u32 2147483647, %v11039_v34  ;;  %7728 = vlog2.f32 %v5043_v27  ;;  %v5047_v63 = vadd.f32 1.0, %v5046_v9  ;;  %vm11091_vm13 = vcmp.lt.f32.partialorder %v5049_v53, 0.0004427343 }
 0x972   : > { %v7719_v24 = vpop.eup %7718  ;;  %v4984_v35 = vsub.f32 0.0, %v4968_v18  ;;  %vm4935_vm9 = vcmp.ne.f32.partialorder %v11039_v34, %v11039_v34  ;;  %vm4936_vm10 = vcmp.ne.f32.partialorder %v11035_v20, %v11035_v20 }
 0x973   : > { %v7721_v7 = vpop.eup %7720  ;;  %v4983_v40 = vsub.f32 0.0, %v4967_v22  ;;  %v5036_v36 = vmul.f32 0.6931472, %v7719_v24  ;;  %v5048_v18 = vmul.f32 %v11032_v5, %v5047_v63  ;;  %v5057_v22 = vmul.f32 %v11028_v47, %v5056_v59 }
 0x974   : > { %v5007_v15 = vmul.f32 1.442695, %v4984_v35  ;;  %v5027_v50 = vmul.f32 0.6931472, %v7721_v7  ;;  %v4919_v7 = vmax.f32 %v11039_v34, 0.0 }
 0x975   : > { %v5005_v46 = vmul.f32 1.442695, %v4983_v40  ;;  %v5042_v13 = vsel %vm11051_vm8, %v5039_v52, %v5036_v36  ;;  %v11067_v11 = vpop.eup %7722 }
 0x976   : > { %7730 = vpow2.f32 %v5007_v15  ;;  %v6810_v4 = vpop.f32.mrb[112].mxu1  ;;  %v5033_v19 = vsel %vm11056_vm1, %v5030_v60, %v5027_v50  ;;  %v5170_v14 = vadd.f32 %v5042_v13, %v4914_v56  ;;  %v11071_v49 = vpop.eup %7724  ;;  %v5070_v39 = vadd.f32 1.0, %v11067_v11 }
 0x977   : > { %7732 = vpow2.f32 %v5005_v46  ;;  %v4882_v3 = vadd.f32 %v6810_v4, %v10681_v8  ;;  %v4834_v26 = vpop.f32.mrb[113].mxu1  ;;  %v5169_v41 = vadd.f32 %v5033_v19, %v4913_v30  ;;  %v5061_v56 = vadd.f32 1.0, %v11071_v49 }
 0x978   : > { %v4881_v51 = vadd.f32 %v4834_v26, %v10679_v55  ;;  %v5064_v0 = vmul.f32 -0.5, %v11071_v49  ;;  %7734 = vlog2.f32 %v5070_v39  ;;  %v5186_v61 = vsel %vm4930_vm7, %v11000_v38, %v5170_v14 }
 0x979   : > { %v11085_v21 = vadd.f32 %v10995_v2, %v4882_v3  ;;  %v5185_v8 = vsel %vm4929_vm6, %v11003_v1, %v5169_v41  ;;  %7736 = vlog2.f32 %v5061_v56  ;;  %v5073_v1 = vmul.f32 -0.5, %v11067_v11 }
 0x97a   : > { %v7727_v10 = vpop.eup %7726  ;;  %v11098_v33 = vadd.f32 %v10995_v2, %v4881_v51  ;;  %6852 = vmatprep.mubr.f32.mxu0 %v5185_v8  ;;  %v5065_v24 = vadd.f32 1.0, %v5064_v0  ;;  %v5067_v9 = vand.u32 2147483647, %v11071_v49  ;;  %v5076_v46 = vand.u32 2147483647, %v11067_v11 }
 0x97b   : > { %v7729_v30 = vpop.eup %7728  ;;  %v4970_v27 = vand.u32 2147483647, %v11085_v21  ;;  %6853 = vmatmul.mubr.f32.vlgmr.msra.gmra.mrb[104].mxu0 %v5186_v61  ;;  %v5054_v57 = vmul.f32 0.6931472, %v7727_v10  ;;  %v5074_v35 = vadd.f32 1.0, %v5073_v1  ;;  %vm4938_vm1 = vcmp.ne.f32.partialorder %v11085_v21, %v11085_v21 }
 0x97c   : > { %v4969_v37 = vand.u32 2147483647, %v11098_v33  ;;  %v5045_v45 = vmul.f32 0.6931472, %v7729_v30  ;;  %v6813_v52 = vpop.f32.mrb[114].mxu1  ;;  %v5066_v59 = vmul.f32 %v11071_v49, %v5065_v24  ;;  %vm4937_vm7 = vcmp.ne.f32.partialorder %v11098_v33, %v11098_v33 }
 0x97d   : > { %v4986_v17 = vsub.f32 0.0, %v4970_v27  ;;  %v5060_v38 = vsel %vm11078_vm12, %v5057_v22, %v5054_v57  ;;  %v4884_v5 = vadd.f32 %v6813_v52, %v10689_v31  ;;  %v4844_v36 = vpop.f32.mrb[115].mxu1  ;;  %v5075_v4 = vmul.f32 %v11067_v11, %v5074_v35 }
 0x97e   : > { %v4985_v40 = vsub.f32 0.0, %v4969_v37  ;;  %v5051_v47 = vsel %vm11091_vm13, %v5048_v18, %v5045_v45  ;;  %v5172_v15 = vadd.f32 %v5060_v38, %v4916_v28  ;;  %v4883_v60 = vadd.f32 %v4844_v36, %v10687_v23 }
 0x97f   : > { %v5011_v50 = vmul.f32 1.442695, %v4986_v17  ;;  %v5171_v43 = vadd.f32 %v5051_v47, %v4915_v25  ;;  %v11125_v31 = vadd.f32 %v10995_v2, %v4884_v5  ;;  %vm11151_vm0 = vcmp.lt.f32.partialorder %v5076_v46, 0.0004427343 }
 0x980   : > { %v11122_v13 = vpop.eup %7730  ;;  %v5009_v53 = vmul.f32 1.442695, %v4985_v40  ;;  %v11132_v23 = vadd.f32 %v10995_v2, %v4883_v60  ;;  %v5188_v63 = vsel %vm4932_vm14, %v11010_v12, %v5172_v15  ;;  %vm5068_vm4 = vcmp.lt.f32.partialorder %v5067_v9, 0.0004427343 }
 0x981   : > { %v11129_v19 = vpop.eup %7732  ;;  %7738 = vpow2.f32 %v5011_v50  ;;  %v5187_v28 = vsel %vm4931_vm11, %v11013_v6, %v5171_v43  ;;  %v5088_v25 = vadd.f32 1.0, %v11122_v13  ;;  %v4972_v14 = vand.u32 2147483647, %v11125_v31 }
 0x982   : > { %7740 = vpow2.f32 %v5009_v53  ;;  %v6816_v11 = vpop.f32.mrb[116].mxu1  ;;  %6855 = vmatprep.mubr.f32.mxu0 %v5187_v28  ;;  %v5079_v6 = vadd.f32 1.0, %v11129_v19  ;;  %v7735_v49 = vpop.eup %7734  ;;  %v4971_v3 = vand.u32 2147483647, %v11132_v23  ;;  %v4920_v45 = vmax.f32 %v11035_v20, 0.0 }
 0x983   : > { %v4886_v26 = vadd.f32 %v6816_v11, %v10697_v16  ;;  %v4854_v41 = vpop.f32.mrb[117].mxu1  ;;  %6856 = vmatmul.mubr.f32.gmra.mrb[106].mxu0 %v5188_v63  ;;  %7742 = vlog2.f32 %v5088_v25  ;;  %v7737_v51 = vpop.eup %7736  ;;  %v4988_v62 = vsub.f32 0.0, %v4972_v14  ;;  %v5072_v56 = vmul.f32 0.6931472, %v7735_v49 }
 0x984   : > { %v4885_v12 = vadd.f32 %v4854_v41, %v10695_v44  ;;  %7744 = vlog2.f32 %v5079_v6  ;;  %v4987_v0 = vsub.f32 0.0, %v4971_v3  ;;  %v5063_v55 = vmul.f32 0.6931472, %v7737_v51 }
 0x985   : > { %v11157_v8 = vadd.f32 %v10995_v2, %v4886_v26  ;;  %v5082_v16 = vmul.f32 -0.5, %v11129_v19  ;;  %v5015_v10 = vmul.f32 1.442695, %v4988_v62  ;;  %v5078_v1 = vsel %vm11151_vm0, %v5075_v4, %v5072_v56 }
 0x986   : > { %v11161_v61 = vadd.f32 %v10995_v2, %v4885_v12  ;;  %v5013_v30 = vmul.f32 1.442695, %v4987_v0  ;;  %v5069_v27 = vsel %vm5068_vm4, %v5066_v59, %v5063_v55  ;;  %v5174_v18 = vadd.f32 %v5078_v1, %v4918_v42 }
 0x987   : > { %v4974_v44 = vand.u32 2147483647, %v11157_v8  ;;  %7746 = vpow2.f32 %v5015_v10  ;;  %v5173_v37 = vadd.f32 %v5069_v27, %v4917_v48  ;;  %v5083_v52 = vadd.f32 1.0, %v5082_v16 }
 0x988   : > { %v4973_v57 = vand.u32 2147483647, %v11161_v61  ;;  %v6819_v22 = vpop.f32.mrb[118].mxu1  ;;  %7748 = vpow2.f32 %v5013_v30  ;;  %v5091_v40 = vmul.f32 -0.5, %v11122_v13  ;;  %v5085_v50 = vand.u32 2147483647, %v11129_v19 }
 0x989   : > { %v4990_v24 = vsub.f32 0.0, %v4974_v44  ;;  %v4888_v35 = vadd.f32 %v6819_v22, %v10705_v54  ;;  %v4864_v17 = vpop.f32.mrb[119].mxu1  ;;  %v5189_v42 = vsel %vm4933_vm15, %v11023_v58, %v5173_v37  ;;  %v5190_v54 = vsel %vm4934_vm3, %v11020_v29, %v5174_v18 }
 0x98a   : > { %v4989_v38 = vsub.f32 0.0, %v4973_v57  ;;  %v4887_v9 = vadd.f32 %v4864_v17, %v10703_v32  ;;  %6858 = vmatprep.mubr.f32.mxu0 %v5189_v42  ;;  %v5094_v32 = vand.u32 2147483647, %v11122_v13  ;;  %v5092_v60 = vadd.f32 1.0, %v5091_v40 }
 0x98b   : > { %v11179_v5 = vpop.eup %7738  ;;  %v5019_v48 = vmul.f32 1.442695, %v4990_v24  ;;  %v11182_v36 = vadd.f32 %v10995_v2, %v4888_v35  ;;  %6859 = vmatmul.mubr.f32.gmra.mrb[108].mxu0 %v5190_v54  ;;  %v5084_v53 = vmul.f32 %v11129_v19, %v5083_v52  ;;  %vm5086_vm2 = vcmp.lt.f32.partialorder %v5085_v50, 0.0004427343 }
 0x98c   : > { %v7741_v47 = vpop.eup %7740  ;;  %v5017_v15 = vmul.f32 1.442695, %v4989_v38  ;;  %v11190_v58 = vadd.f32 %v10995_v2, %v4887_v9  ;;  %v5093_v25 = vmul.f32 %v11122_v13, %v5092_v60  ;;  %vm5095_vm5 = vcmp.lt.f32.partialorder %v5094_v32, 0.0004427343 }
 0x98d   : > { %v7743_v43 = vpop.eup %7742  ;;  %7750 = vpow2.f32 %v5019_v48  ;;  %v4976_v46 = vand.u32 2147483647, %v11182_v36  ;;  %v5097_v59 = vadd.f32 1.0, %v7741_v47  ;;  %v5106_v6 = vadd.f32 1.0, %v11179_v5 }
 0x98e   : > { %v7745_v4 = vpop.eup %7744  ;;  %7752 = vpow2.f32 %v5017_v15  ;;  %v4975_v29 = vand.u32 2147483647, %v11190_v58  ;;  %v5090_v28 = vmul.f32 0.6931472, %v7743_v43  ;;  %v5100_v19 = vmul.f32 -0.5, %v7741_v47 }
 0x98f   : > { %v4992_v2 = vsub.f32 0.0, %v4976_v46  ;;  %v5081_v14 = vmul.f32 0.6931472, %v7745_v4  ;;  %7754 = vlog2.f32 %v5097_v59  ;;  %v5109_v56 = vmul.f32 -0.5, %v11179_v5 }
 0x990   : > { %v4991_v11 = vsub.f32 0.0, %v4975_v29  ;;  %v5096_v63 = vsel %vm5095_vm5, %v5093_v25, %v5090_v28  ;;  %7756 = vlog2.f32 %v5106_v6  ;;  %v5103_v16 = vand.u32 2147483647, %v7741_v47 }
 0x991   : > { %v5087_v49 = vsel %vm5086_vm2, %v5084_v53, %v5081_v14  ;;  %v5176_v3 = vadd.f32 %v5096_v63, %v4920_v45  ;;  %v11198_v26 = vpop.eup %7746  ;;  %v5023_v41 = vmul.f32 1.442695, %v4992_v2  ;;  %v5110_v30 = vadd.f32 1.0, %v5109_v56 }
 0x992   : > { %v5021_v39 = vmul.f32 1.442695, %v4991_v11  ;;  %v5175_v51 = vadd.f32 %v5087_v49, %v4919_v7  ;;  %v11202_v13 = vpop.eup %7748  ;;  %v5101_v7 = vadd.f32 1.0, %v5100_v19  ;;  %v5124_v10 = vadd.f32 1.0, %v11198_v26 }
 0x993   : > { %v5192_v12 = vsel %vm4936_vm10, %v11035_v20, %v5176_v3  ;;  %v5115_v0 = vadd.f32 1.0, %v11202_v13  ;;  %v5118_v44 = vmul.f32 -0.5, %v11202_v13  ;;  %v5112_v57 = vand.u32 2147483647, %v11179_v5 }
 0x994   : > { %7758 = vpow2.f32 %v5021_v39  ;;  %v5191_v62 = vsel %vm4935_vm9, %v11039_v34, %v5175_v51  ;;  %v5102_v18 = vmul.f32 %v7741_v47, %v5101_v7  ;;  %v4921_v22 = vmax.f32 %v11098_v33, 0.0 }
 0x995   : > { %6861 = vmatprep.mubr.f32.mxu0 %v5191_v62  ;;  %7760 = vpow2.f32 %v5023_v41  ;;  %vm5104_vm6 = vcmp.lt.f32.partialorder %v5103_v16, 0.0004427343  ;;  %v5127_v24 = vmul.f32 -0.5, %v11198_v26  ;;  %v5111_v38 = vmul.f32 %v11179_v5, %v5110_v30 }
 0x996   : > { %6862 = vmatmul.mubr.f32.gmra.mrb[110].mxu0 %v5192_v12  ;;  %7762 = vlog2.f32 %v5115_v0  ;;  %v5119_v9 = vadd.f32 1.0, %v5118_v44  ;;  %v4922_v40 = vmax.f32 %v11085_v21, 0.0  ;;  %vm5113_vm8 = vcmp.lt.f32.partialorder %v5112_v57, 0.0004427343 }
 0x997   : > { %v11212_v55 = vpop.eup %7750  ;;  %7764 = vlog2.f32 %v5124_v10  ;;  %v5121_v47 = vand.u32 2147483647, %v11202_v13  ;;  %v5128_v50 = vadd.f32 1.0, %v5127_v24  ;;  %v4923_v53 = vmax.f32 %v11132_v23, 0.0 }
 0x998   : > { %v11215_v34 = vpop.eup %7752  ;;  %v5142_v35 = vadd.f32 1.0, %v11212_v55  ;;  %v5145_v60 = vmul.f32 -0.5, %v11212_v55  ;;  %vm4939_vm11 = vcmp.ne.f32.partialorder %v11132_v23, %v11132_v23  ;;  %v5130_v59 = vand.u32 2147483647, %v11198_v26 }
 0x999   : > { %v7755_v1 = vpop.eup %7754  ;;  %v5133_v20 = vadd.f32 1.0, %v11215_v34  ;;  %v5136_v48 = vmul.f32 -0.5, %v11215_v34  ;;  %vm5122_vm12 = vcmp.lt.f32.partialorder %v5121_v47, 0.0004427343  ;;  %v4924_v2 = vmax.f32 %v11125_v31, 0.0 }
 0x99a   : > { %v5099_v27 = vmul.f32 0.6931472, %v7755_v1  ;;  %v7757_v37 = vpop.eup %7756  ;;  %v5139_v14 = vand.u32 2147483647, %v11215_v34  ;;  %v5129_v49 = vmul.f32 %v11198_v26, %v5128_v50  ;;  %v5146_v3 = vadd.f32 1.0, %v5145_v60 }
 0x99b   : > { %7766 = vlog2.f32 %v5133_v20  ;;  %v5108_v52 = vmul.f32 0.6931472, %v7757_v37  ;;  %v5137_v28 = vadd.f32 1.0, %v5136_v48  ;;  %vm5131_vm13 = vcmp.lt.f32.partialorder %v5130_v59, 0.0004427343 }
 0x99c   : > { %v5105_v45 = vsel %vm5104_vm6, %v5102_v18, %v5099_v27  ;;  %7768 = vlog2.f32 %v5142_v35  ;;  %v5148_v62 = vand.u32 2147483647, %v11212_v55  ;;  %v4925_v26 = vmax.f32 %v11161_v61, 0.0 }
 0x99d   : > { %v5177_v17 = vadd.f32 %v5105_v45, %v4921_v22  ;;  %v5114_v32 = vsel %vm5113_vm8, %v5111_v38, %v5108_v52  ;;  %vm5140_vm14 = vcmp.lt.f32.partialorder %v5139_v14, 0.0004427343  ;;  %vm4940_vm15 = vcmp.ne.f32.partialorder %v11125_v31, %v11125_v31 }
 0x99e   : > { %v11226_v42 = vpop.eup %7758  ;;  %v5178_v5 = vadd.f32 %v5114_v32, %v4922_v40  ;;  %v5147_v16 = vmul.f32 %v11212_v55, %v5146_v3  ;;  %vm4941_vm3 = vcmp.ne.f32.partialorder %v11161_v61, %v11161_v61  ;;  %vm5149_vm0 = vcmp.lt.f32.partialorder %v5148_v62, 0.0004427343  ;;  %v5782_v32 = vld [vmem:[%s11571_s19] ss:$0 sm:$0xff] }
 0x99f   : > { %v5193_v54 = vsel %vm4937_vm7, %v11098_v33, %v5177_v17  ;;  %v11234_v15 = vpop.eup %7760  ;;  %v5151_v43 = vadd.f32 1.0, %v11226_v42  ;;  %v5120_v33 = vmul.f32 %v11202_v13, %v5119_v9  ;;  %v5138_v13 = vmul.f32 %v11215_v34, %v5137_v28 }
 0x9a0   : > { %6864 = vmatprep.mubr.f32.mxu0 %v5193_v54  ;;  %v7763_v46 = vpop.eup %7762  ;;  %v5194_v4 = vsel %vm4938_vm1, %v11085_v21, %v5178_v5  ;;  %v5160_v11 = vadd.f32 1.0, %v11234_v15  ;;  %v5154_v21 = vmul.f32 -0.5, %v11226_v42  ;;  %v5163_v10 = vmul.f32 -0.5, %v11234_v15 }
 0x9a1   : > { %v5117_v29 = vmul.f32 0.6931472, %v7763_v46  ;;  %7770 = vlog2.f32 %v5151_v43  ;;  %v7765_v25 = vpop.eup %7764  ;;  %6865 = vmatmul.mubr.f32.gmra.mrb[112].mxu0 %v5194_v4  ;;  %v5157_v20 = vand.u32 2147483647, %v11226_v42  ;;  %vm4942_vm4 = vcmp.ne.f32.partialorder %v11157_v8, %v11157_v8 }
 0x9a2   : > { %v5126_v6 = vmul.f32 0.6931472, %v7765_v25  ;;  %7772 = vlog2.f32 %v5160_v11  ;;  %v5155_v44 = vadd.f32 1.0, %v5154_v21  ;;  %v5164_v22 = vadd.f32 1.0, %v5163_v10 }
 0x9a3   : > { %v5123_v63 = vsel %vm5122_vm12, %v5120_v33, %v5117_v29  ;;  %v5166_v45 = vand.u32 2147483647, %v11234_v15  ;;  %v4927_v35 = vmax.f32 %v11190_v58, 0.0  ;;  %vm5158_vm5 = vcmp.lt.f32.partialorder %v5157_v20, 0.0004427343 }
 0x9a4   : > { %v5179_v41 = vadd.f32 %v5123_v63, %v4923_v53  ;;  %v5132_v39 = vsel %vm5131_vm13, %v5129_v49, %v5126_v6  ;;  %v5156_v37 = vmul.f32 %v11226_v42, %v5155_v44  ;;  %v5165_v9 = vmul.f32 %v11234_v15, %v5164_v22 }
 0x9a5   : > { %v7767_v19 = vpop.eup %7766  ;;  %v5180_v56 = vadd.f32 %v5132_v39, %v4924_v2  ;;  %vm4943_vm2 = vcmp.ne.f32.partialorder %v11190_v58, %v11190_v58  ;;  %v4928_v42 = vmax.f32 %v11182_v36, 0.0  ;;  %vm5167_vm9 = vcmp.lt.f32.partialorder %v5166_v45, 0.0004427343 }
 0x9a6   : > { %v5135_v51 = vmul.f32 0.6931472, %v7767_v19  ;;  %v5195_v12 = vsel %vm4939_vm11, %v11132_v23, %v5179_v41  ;;  %v7769_v0 = vpop.eup %7768  ;;  %v4926_v23 = vmax.f32 %v11157_v8, 0.0  ;;  %vm4944_vm10 = vcmp.ne.f32.partialorder %v11182_v36, %v11182_v36 }
 0x9a7   : > { %6867 = vmatprep.mubr.f32.mxu0 %v5195_v12  ;;  %v5196_v34 = vsel %vm4940_vm15, %v11125_v31, %v5180_v56  ;;  %v5144_v30 = vmul.f32 0.6931472, %v7769_v0 }
 0x9a8   : > { %v5141_v7 = vsel %vm5140_vm14, %v5138_v13, %v5135_v51  ;;  %6868 = vmatmul.mubr.f32.gmra.mrb[114].mxu0 %v5196_v34 }
 0x9a9   : > { %v5181_v1 = vadd.f32 %v5141_v7, %v4925_v26  ;;  %v5150_v18 = vsel %vm5149_vm0, %v5147_v16, %v5144_v30 }
 0x9aa   : > { %v5182_v57 = vadd.f32 %v5150_v18, %v4926_v23 }
 0x9ab   : > { %v5197_v27 = vsel %vm4941_vm3, %v11161_v61, %v5181_v1  ;;  %v7771_v55 = vpop.eup %7770 }
 0x9ac   : > { %6870 = vmatprep.mubr.f32.mxu0 %v5197_v27  ;;  %v5153_v31 = vmul.f32 0.6931472, %v7771_v55  ;;  %v5198_v24 = vsel %vm4942_vm4, %v11157_v8, %v5182_v57  ;;  %v7773_v17 = vpop.eup %7772 }
 0x9ad   : > { %6871 = vmatmul.mubr.f32.gmra.mrb[116].mxu0 %v5198_v24  ;;  %v5162_v38 = vmul.f32 0.6931472, %v7773_v17 }
 0x9ae   : > { %v5159_v61 = vsel %vm5158_vm5, %v5156_v37, %v5153_v31 }
 0x9af   : > { %v5183_v52 = vadd.f32 %v5159_v61, %v4927_v35  ;;  %v5168_v40 = vsel %vm5167_vm9, %v5165_v9, %v5162_v38 }
 0x9b0   : > { %v5184_v48 = vadd.f32 %v5168_v40, %v4928_v42 }
 0x9b1   : > { %v5199_v8 = vsel %vm4943_vm2, %v11190_v58, %v5183_v52 }
 0x9b2   : > { %6873 = vmatprep.mubr.f32.mxu0 %v5199_v8  ;;  %v5200_v54 = vsel %vm4944_vm10, %v11182_v36, %v5184_v48 }
 0x9b3   : > { %6874 = vmatmul.mubr.f32.gmra.mrb[118].mxu0 %v5200_v54 }
 0xa4e   : > { %v6854_v47 = vpop.f32.mrb[104].mxu0 }
 0xa4f   : > { %v5296_v15 = vadd.f32 %v6854_v47, %v5782_v32  ;;  %v5290_v5 = vpop.f32.mrb[105].mxu0 }
 0xa50   : > { %v5291_v58 = vadd.f32 %v5782_v32, %v5290_v5 }
 0xa51   : > { %5370 = vst [vmem:[%s11286_s28 + $0x8] sm:$0xff] %v5296_v15 }
 0xa52   : > { %5369 = vst [vmem:[%s11286_s28] sm:$0xff] %v5291_v58 }
 0xa56   : > { %v6857_v36 = vpop.f32.mrb[106].mxu0 }
 0xa57   : > { %v5306_v50 = vadd.f32 %v6857_v36, %v5782_v32  ;;  %v5300_v60 = vpop.f32.mrb[107].mxu0 }
 0xa58   : > { %v5301_v43 = vadd.f32 %v5782_v32, %v5300_v60 }
 0xa59   : > { %5372 = vst [vmem:[%s11286_s28 + $0x18] sm:$0xff] %v5306_v50 }
 0xa5a   : > { %5371 = vst [vmem:[%s11286_s28 + $0x10] sm:$0xff] %v5301_v43 }
 0xa5e   : > { %v6860_v46 = vpop.f32.mrb[108].mxu0 }
 0xa5f   : > { %v5316_v53 = vadd.f32 %v6860_v46, %v5782_v32  ;;  %v5310_v33 = vpop.f32.mrb[109].mxu0 }
 0xa60   : > { %v5311_v59 = vadd.f32 %v5782_v32, %v5310_v33 }
 0xa61   : > { %5374 = vst [vmem:[%s11286_s28 + $0x28] sm:$0xff] %v5316_v53 }
 0xa62   : > { %5373 = vst [vmem:[%s11286_s28 + $0x20] sm:$0xff] %v5311_v59 }
 0xa69   : > { %v6863_v4 = vpop.f32.mrb[110].mxu0 }
 0xa6a   : > { %v5326_v29 = vadd.f32 %v6863_v4, %v5782_v32  ;;  %v5320_v28 = vpop.f32.mrb[111].mxu0 }
 0xa6b   : > { %v5321_v25 = vadd.f32 %v5782_v32, %v5320_v28 }
 0xa6c   : > { %5376 = vst [vmem:[%s11286_s28 + $0x38] sm:$0xff] %v5326_v29 }
 0xa6d   : > { %5375 = vst [vmem:[%s11286_s28 + $0x30] sm:$0xff] %v5321_v25 }
 0xa74   : > { %v6866_v2 = vpop.f32.mrb[112].mxu0 }
 0xa75   : > { %v5336_v14 = vadd.f32 %v6866_v2, %v5782_v32  ;;  %v5330_v11 = vpop.f32.mrb[113].mxu0 }
 0xa76   : > { %v5331_v63 = vadd.f32 %v5782_v32, %v5330_v11 }
 0xa77   : > { %5378 = vst [vmem:[%s11286_s28 + $0x48] sm:$0xff] %v5336_v14 }
 0xa78   : > { %5377 = vst [vmem:[%s11286_s28 + $0x40] sm:$0xff] %v5331_v63 }
 0xa7b   : > { %v6869_v6 = vpop.f32.mrb[114].mxu0 }
 0xa7c   : > { %v5346_v49 = vadd.f32 %v6869_v6, %v5782_v32  ;;  %v5340_v3 = vpop.f32.mrb[115].mxu0 }
 0xa7d   : > { %v5341_v19 = vadd.f32 %v5782_v32, %v5340_v3 }
 0xa7e   : > { %5380 = vst [vmem:[%s11286_s28 + $0x58] sm:$0xff] %v5346_v49 }
 0xa7f   : > { %5379 = vst [vmem:[%s11286_s28 + $0x50] sm:$0xff] %v5341_v19 }
 0xa80   : > { %v6872_v41 = vpop.f32.mrb[116].mxu0 }
 0xa81   : > { %v5356_v21 = vadd.f32 %v6872_v41, %v5782_v32  ;;  %v5350_v39 = vpop.f32.mrb[117].mxu0 }
 0xa82   : > { %v5351_v51 = vadd.f32 %v5782_v32, %v5350_v39 }
 0xa83   : > { %5382 = vst [vmem:[%s11286_s28 + $0x68] sm:$0xff] %v5356_v21 }
 0xa84   : > { %5381 = vst [vmem:[%s11286_s28 + $0x60] sm:$0xff] %v5351_v51 }
 0xa86   : > { %v6875_v13 = vpop.f32.mrb[118].mxu0 }
 0xa87   : > { %v5366_v62 = vadd.f32 %v6875_v13, %v5782_v32  ;;  %v5360_v12 = vpop.f32.mrb[119].mxu0 }
 0xa88   : > { %v5361_v56 = vadd.f32 %v5782_v32, %v5360_v12 }
 0xa89   : > { %5384 = vst [vmem:[%s11286_s28 + $0x78] sm:$0xff] %v5366_v62 }
 0xa8a   : > { %5383 = vst [vmem:[%s11286_s28 + $0x70] sm:$0xff] %v5361_v56 }
 0xa8b   : > { %7871 = shalt.err (!%p7868_p0)
}
 0xa8c   : > { %s7872_s20 = scalar_lea.hbm %s11307_s26, 2048  ;;  %s7876_s19 = scalar_lea.hbm %s11573_s17, 4096 }
 0xa8d   : > { %p7873_p3 = scmp.ne.s32.totalorder %s11307_s26, %s7872_s20  ;;  %p7877_p4 = scmp.lt.u32.totalorder %s11307_s26, %s11573_s17 }
 0xa8e   : > { %p7878_p12 = scmp.lt.u32.totalorder %s7876_s19, %s7872_s20  ;;  %p7880_p8 = scmp.lt.u32.totalorder %s7872_s20, %s11307_s26 }
 0xa8f   : > { %p7874_p5 = pnand %p7873_p3, %p11574_p11 }
 0xa90   : > { %p7879_p7 = por %p7878_p12, %p7877_p4 }
 0xa91   : > { %p7875_p10 = pneg %p7874_p5 }
 0xa92   : > { %p7881_p13 = por %p7880_p8, %p7879_p7 }
 0xa94   : > { %p7882_p1 = pnand %p7881_p13, %p7875_p10 }
 0xa96   : > { %7885 = shalt.err (!%p7882_p1)
}
 0xa97   : > { %s7938_s27 = smov 128   ;;  %s7939_s21 = smov 8  }
 0xa98   : > { %7260 = dma.vmem_to_hbm [thread:$0]  (%p11574_p11), %s11309_s25, 2048, %s11307_s26, %s11315_s12, %s7938_s27, %s7938_s27, %s7939_s21  }
 0xa99 PF: > { %s11575_s22 = sld [smem:[#allocation15_spill]]  ;;  %s11576_s15 = sld [smem:[#allocation12_spill]] }
 0xa9a   : > { %s11577_s23 = sld [smem:[#allocation19_spill]] }
 0xa9f   : > { %p7282_p6 = scmp.ge.s32.totalorder %s11575_s22, 2  ;;  %s5414_s24 = sand.u32 1, %s11576_s15  }
 0xaa0   : > { %p11578_p9 = scmp.ne.s32.totalorder %s11577_s23, 0  ;;  %s5415_s20 = scalar_lea.sflag [#allocation4], %s5414_s24 }
 0xaa2   : > { %p7273_p2 = pnand %p7282_p6, %p11578_p9 }
 0xaa4   : > { %7911 = dma.done.wait (!%p7273_p2), %s5415_s20, 2048  }
 0xaa5   : > { %7913 = vsyncadd (!%p7273_p2), %s5415_s20, 4294965248  ;;  %s11579_s21 = sld [smem:[#allocation16_spill]]  ;;  %s11580_s18 = sld [smem:[#allocation13_spill]] }
 0xaa6   : > { %s11581_s19 = sld [smem:[#allocation14_spill]]  ;;  %s11582_s20 = sld [smem:[#allocation17_spill]] }
 0xaab   : > { %p27_p0 = scmp.ge.s32.totalorder %s11579_s21, 4  }
 0xaad   :  { %29 = sbr.rel (!%p27_p0) target bundleno = 9 (0x9), region = 145 }
 0xab4   :  { %5420 = vsyncpa [#allocation3], 1 }
 0xab5   :  { %5422 = vsyncpa [#allocation3 + $0x1], 1 }
 0xab6   :  { %5423 = vsyncpa [#allocation6], 1 }
 0xab7   :  { %5424 = vsyncpa [#allocation4], 1 }
 0xab8   :  { %5426 = vsyncpa [#allocation4 + $0x1], 1 }

</bundles_post_ra>
